<compile_context>
chip_gen: v5e
topology: v5e:2x2
jax: 0.10.0
libtpu: 0.0.40
codegen_flags: <defaults>
</compile_context>

<pallas_src>
import functools

import jax
import jax.numpy as jnp
from jax import lax
from jax.experimental import pallas as pl
from jax.experimental.pallas import tpu as pltpu

F_DIM = 512
LN_EPS = 1e-5


def _round_up(x, m):
    return (x + m - 1) // m * m


def _layernorm(x, gamma, beta):
    # Two-pass (mean, then variance of the centered values): numerically safe
    # and the extra cross-lane reduction is free in a memory-bound kernel.
    inv_f = 1.0 / x.shape[-1]
    mean = jnp.sum(x, axis=-1, keepdims=True) * inv_f
    d = x - mean
    var = jnp.sum(d * d, axis=-1, keepdims=True) * inv_f
    return d * lax.rsqrt(var + LN_EPS) * gamma + beta


def gsfusion_kernel(
    ax_ref, vx_ref, da_ref,
    w1a_ref, w1b_ref, b1_ref,
    w2_ref, b2_ref,
    wp_ref, bp_ref, alpha_ref,
    g1_ref, be1_ref,
    g2_ref, be2_ref,
    ax_out_ref, da_out_ref,
):
    ax = ax_ref[...].astype(jnp.float32)          # no-op when input is f32

    # dense_audio += ax  (with the PRE-gate ax, matching in-place semantics).
    # Written back immediately so the output buffer can retire early and the
    # compiler does not have to keep an extra (tm, 512) f32 temp alive.
    da_new = da_ref[...].astype(jnp.float32) + ax
    da_out_ref[...] = da_new.astype(da_out_ref.dtype)

    # bf16 MXU operands, f32 accumulation (weights & vx already bf16).
    ax_bf = ax.astype(jnp.bfloat16)
    vx_bf = vx_ref[...].astype(jnp.bfloat16)

    # gate: Linear(1024->512) on cat([ax, vx]) == ax @ W1a + vx @ W1b + b1
    h = (jnp.dot(ax_bf, w1a_ref[...], preferred_element_type=jnp.float32)
         + jnp.dot(vx_bf, w1b_ref[...], preferred_element_type=jnp.float32)
         + b1_ref[...])
    h = jnp.maximum(h, 0.0)                                   # ReLU
    g = jnp.dot(h.astype(jnp.bfloat16), w2_ref[...],
                preferred_element_type=jnp.float32) + b2_ref[...]
    g = jax.nn.sigmoid(g)                                     # Sigmoid gate

    # ax *= gate
    axg = ax * g

    # projection block: Linear(512->512) -> PReLU -> LayerNorm(512)
    p = jnp.dot(axg.astype(jnp.bfloat16), wp_ref[...],
                preferred_element_type=jnp.float32) + bp_ref[...]
    alpha = alpha_ref[0, 0]                # scalar from SMEM (nn.PReLU default
    p = jnp.where(p >= 0.0, p, alpha * p)  # num_parameters=1 -> single alpha)
    p = _layernorm(p, g1_ref[...], be1_ref[...])

    # ax += dense_audio ; ax = LayerNorm(ax)
    p = p + da_new
    p = _layernorm(p, g2_ref[...], be2_ref[...])

    ax_out_ref[...] = p.astype(ax_out_ref.dtype)


def _default_tile_and_vmem():
    """Pick row tile & VMEM limit per TPU generation (64 MiB VMEM => v7x-class)."""
    try:
        vmem_cap = int(getattr(pltpu.get_tpu_info(), "vmem_capacity_bytes",
                               128 * 1024 * 1024))
    except Exception:
        vmem_cap = 128 * 1024 * 1024
    if vmem_cap <= 64 * 1024 * 1024:
        return 512, 48 * 1024 * 1024       # v7x: cap tile, leave headroom
    return 1024, 96 * 1024 * 1024          # v5e/v6e: amortize step overhead


def prepare_params(params):
    """One-time weight prep: cast matmul weights to bf16 (do this ONCE, not per call)."""
    p = dict(params)
    for k in ("w1a", "w1b", "w2", "wp"):
        p[k] = params[k].astype(jnp.bfloat16)
    return p


def gsfusion_pallas(vx, ax, dense_audio, params, *, tm=None, vmem_limit_bytes=None):
    """vx: (B, T, 512) bf16 or f32; ax, dense_audio: (B, T, 512) f32.

    Returns (ax_out, dense_audio_out), matching GSFusion.forward((vx, ax), da).
    For true in-place behavior, callers should donate ax / dense_audio.
    """
    B, T, F = ax.shape
    assert F == F_DIM
    N = B * T

    auto_tm, auto_vmem = _default_tile_and_vmem()
    tm = auto_tm if tm is None else tm
    vmem_limit_bytes = auto_vmem if vmem_limit_bytes is None else vmem_limit_bytes

    # Tile rounded to the sublane multiple of 8; force >= 2 grid steps when N
    # allows it so both v7x TensorCores get work.  No padding: Pallas masks
    # the ragged final block.
    half = _round_up(max(pl.cdiv(N, 2), 1), 8)
    tm_eff = max(8, min(tm, half))
    grid = pl.cdiv(N, tm_eff)

    ax2 = ax.reshape(N, F)
    vx2 = vx.reshape(N, F)
    da2 = dense_audio.reshape(N, F)

    row_spec = pl.BlockSpec((tm_eff, F), lambda i: (i, 0))
    # Constant-index weight/bias blocks: same tile every step (no re-fetch).
    mat_spec = pl.BlockSpec((F, F), lambda i: (0, 0))
    vec_spec = pl.BlockSpec((1, F), lambda i: (0, 0))
    smem_spec = pl.BlockSpec(memory_space=pltpu.MemorySpace.SMEM)  # PReLU alpha

    weight_keys = ("w1a", "w1b", "w2", "wp", "b1", "b2", "bp",
                   "g1", "be1", "g2", "be2", "alpha")
    bytes_accessed = (
        ax2.size * ax2.dtype.itemsize
        + vx2.size * vx2.dtype.itemsize
        + da2.size * da2.dtype.itemsize
        + 2 * N * F * ax.dtype.itemsize                       # two (N, F) outputs
        + sum(int(params[k].size) * params[k].dtype.itemsize for k in weight_keys))
    cost = pl.CostEstimate(flops=8 * N * F * F,               # 4 matmuls
                           transcendentals=2 * N * F,         # sigmoid + rsqrt
                           bytes_accessed=int(bytes_accessed))

    out_ax, out_da = pl.pallas_call(
        gsfusion_kernel,
        out_shape=(
            jax.ShapeDtypeStruct((N, F), ax.dtype),
            jax.ShapeDtypeStruct((N, F), dense_audio.dtype),
        ),
        grid_spec=pltpu.PrefetchScalarGridSpec(
            num_scalar_prefetch=0,
            grid=(grid,),
            in_specs=[
                row_spec, row_spec, row_spec,          # ax, vx, dense_audio
                mat_spec, mat_spec, vec_spec,          # W1a, W1b, b1
                mat_spec, vec_spec,                    # W2, b2
                mat_spec, vec_spec, smem_spec,         # Wp, bp, prelu alpha
                vec_spec, vec_spec,                    # proj LN gamma, beta
                vec_spec, vec_spec,                    # final LN gamma, beta
            ],
            out_specs=[row_spec, row_spec],
        ),
        # In-place semantics: ax -> ax_out, dense_audio -> da_out.
        input_output_aliases={0: 0, 2: 1},
        compiler_params=pltpu.CompilerParams(
            dimension_semantics=("parallel",),
            vmem_limit_bytes=vmem_limit_bytes),
        cost_estimate=cost,
    )(ax2, vx2, da2,
      params["w1a"], params["w1b"], params["b1"],
      params["w2"], params["b2"],
      params["wp"], params["bp"], params["alpha"],
      params["g1"], params["be1"],
      params["g2"], params["be2"])

    return out_ax.reshape(B, T, F), out_da.reshape(B, T, F)


# ---------------------------------------------------------------------------
# Pure-JAX reference (replicates the PyTorch forward exactly, all f32).
# ---------------------------------------------------------------------------
def _layernorm_ref(x, gamma, beta):
    mean = jnp.mean(x, axis=-1, keepdims=True)
    var = jnp.mean(jnp.square(x - mean), axis=-1, keepdims=True)
    return (x - mean) * lax.rsqrt(var + LN_EPS) * gamma + beta


def gsfusion_reference(vx, ax, dense_audio, params):
    vx = vx.astype(jnp.float32)
    cat = jnp.concatenate([ax, vx], axis=2)
    w1 = jnp.concatenate([params["w1a"], params["w1b"]], axis=0)  # (1024, 512)
    h = jnp.maximum(cat @ w1 + params["b1"], 0.0)
    gate = jax.nn.sigmoid(h @ params["w2"] + params["b2"])
    da = dense_audio + ax
    axg = ax * gate
    p = axg @ params["wp"] + params["bp"]
    alpha = params["alpha"][0, 0]
    p = jnp.where(p >= 0, p, alpha * p)
    p = _layernorm_ref(p, params["g1"], params["be1"])
    p = p + da
    p = _layernorm_ref(p, params["g2"], params["be2"])
    return p, da


def make_params(key):
    ks = jax.random.split(key, 8)
    s = 0.02
    return {
        "w1a": s * jax.random.normal(ks[0], (F_DIM, F_DIM), jnp.float32),
        "w1b": s * jax.random.normal(ks[1], (F_DIM, F_DIM), jnp.float32),
        "b1": s * jax.random.normal(ks[2], (1, F_DIM), jnp.float32),
        "w2": s * jax.random.normal(ks[3], (F_DIM, F_DIM), jnp.float32),
        "b2": s * jax.random.normal(ks[4], (1, F_DIM), jnp.float32),
        "wp": s * jax.random.normal(ks[5], (F_DIM, F_DIM), jnp.float32),
        "bp": s * jax.random.normal(ks[6], (1, F_DIM), jnp.float32),
        "alpha": jnp.full((1, 1), 0.25, jnp.float32),   # PReLU default init
        "g1": jnp.ones((1, F_DIM), jnp.float32),        # LayerNorm defaults
        "be1": jnp.zeros((1, F_DIM), jnp.float32),
        "g2": jnp.ones((1, F_DIM), jnp.float32),
        "be2": jnp.zeros((1, F_DIM), jnp.float32),
    }


if __name__ == "__main__":
    key = jax.random.PRNGKey(0)
    k_vx, k_ax, k_da, k_p = jax.random.split(key, 4)
    B, T = 2, 8  # feature dim fixed at 512 by the module
    vx_f32 = jax.random.normal(k_vx, (B, T, F_DIM), jnp.float32)
    ax = jax.random.normal(k_ax, (B, T, F_DIM), jnp.float32)
    dense_audio = jax.random.normal(k_da, (B, T, F_DIM), jnp.float32)
    params = make_params(k_p)

    # One-time prep (outside jit / the hot path): bf16 weights, bf16 vx stream.
    kernel_params = prepare_params(params)
    vx_bf16 = vx_f32.astype(jnp.bfloat16)

    fn = jax.jit(gsfusion_pallas)
    ax_out, da_out = fn(vx_bf16, ax, dense_audio, kernel_params)
    jax.block_until_ready((ax_out, da_out))

    ax_ref, da_ref = gsfusion_reference(vx_bf16, ax, dense_audio, params)
    # da_out is a pure f32 add -> tight tolerance; ax_out goes through bf16
    # weights / MXU operands (f32 accumulate) -> relaxed tolerance.
    assert jnp.allclose(da_out, da_ref, atol=1e-5, rtol=1e-5)
    assert jnp.allclose(ax_out, ax_ref, atol=3e-2, rtol=3e-2), float(
        jnp.max(jnp.abs(ax_out - ax_ref)))

    print("KERNEL_OK")
</pallas_src>

<mosaic_0001>
module attributes {stable_mosaic.version = 11 : i64} {
  func.func @gsfusion_kernel(%arg0: i32, %arg1: memref<8x512xf32, #tpu.memory_space<vmem>>, %arg2: memref<8x512xbf16, #tpu.memory_space<vmem>>, %arg3: memref<8x512xf32, #tpu.memory_space<vmem>>, %arg4: memref<512x512xbf16, #tpu.memory_space<vmem>>, %arg5: memref<512x512xbf16, #tpu.memory_space<vmem>>, %arg6: memref<1x512xf32, #tpu.memory_space<vmem>>, %arg7: memref<512x512xbf16, #tpu.memory_space<vmem>>, %arg8: memref<1x512xf32, #tpu.memory_space<vmem>>, %arg9: memref<512x512xbf16, #tpu.memory_space<vmem>>, %arg10: memref<1x512xf32, #tpu.memory_space<vmem>>, %arg11: memref<1x1xf32, #tpu.memory_space<smem>>, %arg12: memref<1x512xf32, #tpu.memory_space<vmem>>, %arg13: memref<1x512xf32, #tpu.memory_space<vmem>>, %arg14: memref<1x512xf32, #tpu.memory_space<vmem>>, %arg15: memref<1x512xf32, #tpu.memory_space<vmem>>, %arg16: memref<8x512xf32, #tpu.memory_space<vmem>>, %arg17: memref<8x512xf32, #tpu.memory_space<vmem>>) attributes {dimension_semantics = [#tpu.dimension_semantics<parallel>], iteration_bounds = array<i64: 2>, scalar_prefetch = 0 : i64, scratch_operands = 0 : i64, tpu.core_type = #tpu.core_type<tc>, window_params = [{transform_indices = @transform_0, window_bounds = array<i64: 8, 512>}, {transform_indices = @transform_1, window_bounds = array<i64: 8, 512>}, {transform_indices = @transform_2, window_bounds = array<i64: 8, 512>}, {pipeline_mode = #tpu.pipeline_mode<synchronous>, transform_indices = @transform_3, window_bounds = array<i64: 512, 512>}, {pipeline_mode = #tpu.pipeline_mode<synchronous>, transform_indices = @transform_4, window_bounds = array<i64: 512, 512>}, {pipeline_mode = #tpu.pipeline_mode<synchronous>, transform_indices = @transform_5, window_bounds = array<i64: 1, 512>}, {pipeline_mode = #tpu.pipeline_mode<synchronous>, transform_indices = @transform_6, window_bounds = array<i64: 512, 512>}, {pipeline_mode = #tpu.pipeline_mode<synchronous>, transform_indices = @transform_7, window_bounds = array<i64: 1, 512>}, {pipeline_mode = #tpu.pipeline_mode<synchronous>, transform_indices = @transform_8, window_bounds = array<i64: 512, 512>}, {pipeline_mode = #tpu.pipeline_mode<synchronous>, transform_indices = @transform_9, window_bounds = array<i64: 1, 512>}, {transform_indices = @transform_10, window_bounds = array<i64: 1, 1>}, {pipeline_mode = #tpu.pipeline_mode<synchronous>, transform_indices = @transform_11, window_bounds = array<i64: 1, 512>}, {pipeline_mode = #tpu.pipeline_mode<synchronous>, transform_indices = @transform_12, window_bounds = array<i64: 1, 512>}, {pipeline_mode = #tpu.pipeline_mode<synchronous>, transform_indices = @transform_13, window_bounds = array<i64: 1, 512>}, {pipeline_mode = #tpu.pipeline_mode<synchronous>, transform_indices = @transform_14, window_bounds = array<i64: 1, 512>}, {transform_indices = @transform_15, window_bounds = array<i64: 8, 512>}, {transform_indices = @transform_16, window_bounds = array<i64: 8, 512>}]} {
    %c0 = arith.constant 0 : index
    %c0_0 = arith.constant 0 : index
    %0 = vector.load %arg1[%c0, %c0_0] : memref<8x512xf32, #tpu.memory_space<vmem>>, vector<8x512xf32>
    %c0_1 = arith.constant 0 : index
    %c0_2 = arith.constant 0 : index
    %1 = vector.load %arg3[%c0_1, %c0_2] : memref<8x512xf32, #tpu.memory_space<vmem>>, vector<8x512xf32>
    %2 = arith.addf %1, %0 : vector<8x512xf32>
    %c0_3 = arith.constant 0 : index
    %c0_4 = arith.constant 0 : index
    %3 = vector.load %arg17[%c0_3, %c0_4] : memref<8x512xf32, #tpu.memory_space<vmem>>, vector<8x512xf32>
    tpu.vector_store %arg17[%c0_3, %c0_4], %2 {strides = array<i32>} : memref<8x512xf32, #tpu.memory_space<vmem>>, vector<8x512xf32>,
    %4 = arith.truncf %0 : vector<8x512xf32> to vector<8x512xbf16>
    %c0_5 = arith.constant 0 : index
    %c0_6 = arith.constant 0 : index
    %5 = vector.load %arg2[%c0_5, %c0_6] : memref<8x512xbf16, #tpu.memory_space<vmem>>, vector<8x512xbf16>
    %c0_7 = arith.constant 0 : index
    %c0_8 = arith.constant 0 : index
    %6 = vector.load %arg4[%c0_7, %c0_8] : memref<512x512xbf16, #tpu.memory_space<vmem>>, vector<512x512xbf16>
    %cst = arith.constant dense<0.000000e+00> : vector<8x512xf32>
    %7 = tpu.matmul %4, %6, %cst {dimension_numbers = #tpu.dot_dimension_numbers<[1], [0], [0], [1], [0, 0, 1, 1], [], []>} : vector<8x512xbf16>, vector<512x512xbf16>, vector<8x512xf32> -> vector<8x512xf32>
    %c0_9 = arith.constant 0 : index
    %c0_10 = arith.constant 0 : index
    %8 = vector.load %arg5[%c0_9, %c0_10] : memref<512x512xbf16, #tpu.memory_space<vmem>>, vector<512x512xbf16>
    %cst_11 = arith.constant dense<0.000000e+00> : vector<8x512xf32>
    %9 = tpu.matmul %5, %8, %cst_11 {dimension_numbers = #tpu.dot_dimension_numbers<[1], [0], [0], [1], [0, 0, 1, 1], [], []>} : vector<8x512xbf16>, vector<512x512xbf16>, vector<8x512xf32> -> vector<8x512xf32>
    %10 = arith.addf %7, %9 : vector<8x512xf32>
    %c0_12 = arith.constant 0 : index
    %c0_13 = arith.constant 0 : index
    %11 = vector.load %arg6[%c0_12, %c0_13] : memref<1x512xf32, #tpu.memory_space<vmem>>, vector<1x512xf32>
    %12 = vector.broadcast %11 : vector<1x512xf32> to vector<8x512xf32>
    %13 = arith.addf %10, %12 : vector<8x512xf32>
    %cst_14 = arith.constant 0.000000e+00 : f32
    %14 = vector.broadcast %cst_14 : f32 to vector<8x512xf32>
    %15 = arith.maximumf %13, %14 : vector<8x512xf32>
    %16 = arith.truncf %15 : vector<8x512xf32> to vector<8x512xbf16>
    %c0_15 = arith.constant 0 : index
    %c0_16 = arith.constant 0 : index
    %17 = vector.load %arg7[%c0_15, %c0_16] : memref<512x512xbf16, #tpu.memory_space<vmem>>, vector<512x512xbf16>
    %cst_17 = arith.constant dense<0.000000e+00> : vector<8x512xf32>
    %18 = tpu.matmul %16, %17, %cst_17 {dimension_numbers = #tpu.dot_dimension_numbers<[1], [0], [0], [1], [0, 0, 1, 1], [], []>} : vector<8x512xbf16>, vector<512x512xbf16>, vector<8x512xf32> -> vector<8x512xf32>
    %c0_18 = arith.constant 0 : index
    %c0_19 = arith.constant 0 : index
    %19 = vector.load %arg8[%c0_18, %c0_19] : memref<1x512xf32, #tpu.memory_space<vmem>>, vector<1x512xf32>
    %20 = vector.broadcast %19 : vector<1x512xf32> to vector<8x512xf32>
    %21 = arith.addf %18, %20 : vector<8x512xf32>
    %22 = arith.negf %21 : vector<8x512xf32>
    %23 = math.exp %22 : vector<8x512xf32>
    %cst_20 = arith.constant 1.000000e+00 : f32
    %24 = vector.broadcast %cst_20 : f32 to vector<8x512xf32>
    %25 = arith.addf %24, %23 : vector<8x512xf32>
    %26 = arith.divf %24, %25 : vector<8x512xf32>
    %27 = arith.mulf %0, %26 : vector<8x512xf32>
    %28 = arith.truncf %27 : vector<8x512xf32> to vector<8x512xbf16>
    %c0_21 = arith.constant 0 : index
    %c0_22 = arith.constant 0 : index
    %29 = vector.load %arg9[%c0_21, %c0_22] : memref<512x512xbf16, #tpu.memory_space<vmem>>, vector<512x512xbf16>
    %cst_23 = arith.constant dense<0.000000e+00> : vector<8x512xf32>
    %30 = tpu.matmul %28, %29, %cst_23 {dimension_numbers = #tpu.dot_dimension_numbers<[1], [0], [0], [1], [0, 0, 1, 1], [], []>} : vector<8x512xbf16>, vector<512x512xbf16>, vector<8x512xf32> -> vector<8x512xf32>
    %c0_24 = arith.constant 0 : index
    %c0_25 = arith.constant 0 : index
    %31 = vector.load %arg10[%c0_24, %c0_25] : memref<1x512xf32, #tpu.memory_space<vmem>>, vector<1x512xf32>
    %32 = vector.broadcast %31 : vector<1x512xf32> to vector<8x512xf32>
    %33 = arith.addf %30, %32 : vector<8x512xf32>
    %c0_26 = arith.constant 0 : index
    %c0_27 = arith.constant 0 : index
    %34 = memref.load %arg11[%c0_26, %c0_27] : memref<1x1xf32, #tpu.memory_space<smem>>
    %cst_28 = arith.constant 0.000000e+00 : f32
    %35 = vector.broadcast %cst_28 : f32 to vector<8x512xf32>
    %36 = arith.cmpf oge, %33, %35 : vector<8x512xf32>
    %37 = vector.broadcast %34 : f32 to vector<8x512xf32>
    %38 = arith.mulf %37, %33 : vector<8x512xf32>
    %39 = arith.select %36, %33, %38 : vector<8x512xi1>, vector<8x512xf32>
    %c0_29 = arith.constant 0 : index
    %c0_30 = arith.constant 0 : index
    %40 = vector.load %arg12[%c0_29, %c0_30] : memref<1x512xf32, #tpu.memory_space<vmem>>, vector<1x512xf32>
    %c0_31 = arith.constant 0 : index
    %c0_32 = arith.constant 0 : index
    %41 = vector.load %arg13[%c0_31, %c0_32] : memref<1x512xf32, #tpu.memory_space<vmem>>, vector<1x512xf32>
    %cst_33 = arith.constant dense<0.000000e+00> : vector<8xf32>
    %42 = vector.multi_reduction <add>, %39, %cst_33 [1] : vector<8x512xf32> to vector<8xf32>
    %43 = vector.shape_cast %42 : vector<8xf32> to vector<8x1xf32>
    %cst_34 = arith.constant 0.001953125 : f32
    %44 = vector.broadcast %cst_34 : f32 to vector<8x1xf32>
    %45 = arith.mulf %43, %44 : vector<8x1xf32>
    %46 = vector.broadcast %45 : vector<8x1xf32> to vector<8x512xf32>
    %47 = arith.subf %39, %46 : vector<8x512xf32>
    %48 = arith.mulf %47, %47 : vector<8x512xf32>
    %cst_35 = arith.constant dense<0.000000e+00> : vector<8xf32>
    %49 = vector.multi_reduction <add>, %48, %cst_35 [1] : vector<8x512xf32> to vector<8xf32>
    %50 = vector.shape_cast %49 : vector<8xf32> to vector<8x1xf32>
    %cst_36 = arith.constant 0.001953125 : f32
    %51 = vector.broadcast %cst_36 : f32 to vector<8x1xf32>
    %52 = arith.mulf %50, %51 : vector<8x1xf32>
    %cst_37 = arith.constant 9.99999974E-6 : f32
    %53 = vector.broadcast %cst_37 : f32 to vector<8x1xf32>
    %54 = arith.addf %52, %53 : vector<8x1xf32>
    %55 = math.rsqrt %54 : vector<8x1xf32>
    %56 = vector.broadcast %55 : vector<8x1xf32> to vector<8x512xf32>
    %57 = arith.mulf %47, %56 : vector<8x512xf32>
    %58 = vector.broadcast %40 : vector<1x512xf32> to vector<8x512xf32>
    %59 = arith.mulf %57, %58 : vector<8x512xf32>
    %60 = vector.broadcast %41 : vector<1x512xf32> to vector<8x512xf32>
    %61 = arith.addf %59, %60 : vector<8x512xf32>
    %62 = arith.addf %61, %2 : vector<8x512xf32>
    %c0_38 = arith.constant 0 : index
    %c0_39 = arith.constant 0 : index
    %63 = vector.load %arg14[%c0_38, %c0_39] : memref<1x512xf32, #tpu.memory_space<vmem>>, vector<1x512xf32>
    %c0_40 = arith.constant 0 : index
    %c0_41 = arith.constant 0 : index
    %64 = vector.load %arg15[%c0_40, %c0_41] : memref<1x512xf32, #tpu.memory_space<vmem>>, vector<1x512xf32>
    %cst_42 = arith.constant dense<0.000000e+00> : vector<8xf32>
    %65 = vector.multi_reduction <add>, %62, %cst_42 [1] : vector<8x512xf32> to vector<8xf32>
    %66 = vector.shape_cast %65 : vector<8xf32> to vector<8x1xf32>
    %cst_43 = arith.constant 0.001953125 : f32
    %67 = vector.broadcast %cst_43 : f32 to vector<8x1xf32>
    %68 = arith.mulf %66, %67 : vector<8x1xf32>
    %69 = vector.broadcast %68 : vector<8x1xf32> to vector<8x512xf32>
    %70 = arith.subf %62, %69 : vector<8x512xf32>
    %71 = arith.mulf %70, %70 : vector<8x512xf32>
    %cst_44 = arith.constant dense<0.000000e+00> : vector<8xf32>
    %72 = vector.multi_reduction <add>, %71, %cst_44 [1] : vector<8x512xf32> to vector<8xf32>
    %73 = vector.shape_cast %72 : vector<8xf32> to vector<8x1xf32>
    %cst_45 = arith.constant 0.001953125 : f32
    %74 = vector.broadcast %cst_45 : f32 to vector<8x1xf32>
    %75 = arith.mulf %73, %74 : vector<8x1xf32>
    %cst_46 = arith.constant 9.99999974E-6 : f32
    %76 = vector.broadcast %cst_46 : f32 to vector<8x1xf32>
    %77 = arith.addf %75, %76 : vector<8x1xf32>
    %78 = math.rsqrt %77 : vector<8x1xf32>
    %79 = vector.broadcast %78 : vector<8x1xf32> to vector<8x512xf32>
    %80 = arith.mulf %70, %79 : vector<8x512xf32>
    %81 = vector.broadcast %63 : vector<1x512xf32> to vector<8x512xf32>
    %82 = arith.mulf %80, %81 : vector<8x512xf32>
    %83 = vector.broadcast %64 : vector<1x512xf32> to vector<8x512xf32>
    %84 = arith.addf %82, %83 : vector<8x512xf32>
    %c0_47 = arith.constant 0 : index
    %c0_48 = arith.constant 0 : index
    %85 = vector.load %arg16[%c0_47, %c0_48] : memref<8x512xf32, #tpu.memory_space<vmem>>, vector<8x512xf32>
    tpu.vector_store %arg16[%c0_47, %c0_48], %84 {strides = array<i32>} : memref<8x512xf32, #tpu.memory_space<vmem>>, vector<8x512xf32>,
    return
  }
  func.func @transform_0(%arg0: i32) -> (i32, i32) {
    %c0_i32 = arith.constant 0 : i32
    %c0_i32_0 = arith.constant 0 : i32
    return %arg0, %c0_i32 : i32, i32
  }
  func.func @transform_1(%arg0: i32) -> (i32, i32) {
    %c0_i32 = arith.constant 0 : i32
    %c0_i32_0 = arith.constant 0 : i32
    return %arg0, %c0_i32 : i32, i32
  }
  func.func @transform_2(%arg0: i32) -> (i32, i32) {
    %c0_i32 = arith.constant 0 : i32
    %c0_i32_0 = arith.constant 0 : i32
    return %arg0, %c0_i32 : i32, i32
  }
  func.func @transform_3(%arg0: i32) -> (i32, i32) {
    %c0_i32 = arith.constant 0 : i32
    %c0_i32_0 = arith.constant 0 : i32
    %c0_i32_1 = arith.constant 0 : i32
    return %c0_i32, %c0_i32_0 : i32, i32
  }
  func.func @transform_4(%arg0: i32) -> (i32, i32) {
    %c0_i32 = arith.constant 0 : i32
    %c0_i32_0 = arith.constant 0 : i32
    %c0_i32_1 = arith.constant 0 : i32
    return %c0_i32, %c0_i32_0 : i32, i32
  }
  func.func @transform_5(%arg0: i32) -> (i32, i32) {
    %c0_i32 = arith.constant 0 : i32
    %c0_i32_0 = arith.constant 0 : i32
    %c0_i32_1 = arith.constant 0 : i32
    return %c0_i32, %c0_i32_0 : i32, i32
  }
  func.func @transform_6(%arg0: i32) -> (i32, i32) {
    %c0_i32 = arith.constant 0 : i32
    %c0_i32_0 = arith.constant 0 : i32
    %c0_i32_1 = arith.constant 0 : i32
    return %c0_i32, %c0_i32_0 : i32, i32
  }
  func.func @transform_7(%arg0: i32) -> (i32, i32) {
    %c0_i32 = arith.constant 0 : i32
    %c0_i32_0 = arith.constant 0 : i32
    %c0_i32_1 = arith.constant 0 : i32
    return %c0_i32, %c0_i32_0 : i32, i32
  }
  func.func @transform_8(%arg0: i32) -> (i32, i32) {
    %c0_i32 = arith.constant 0 : i32
    %c0_i32_0 = arith.constant 0 : i32
    %c0_i32_1 = arith.constant 0 : i32
    return %c0_i32, %c0_i32_0 : i32, i32
  }
  func.func @transform_9(%arg0: i32) -> (i32, i32) {
    %c0_i32 = arith.constant 0 : i32
    %c0_i32_0 = arith.constant 0 : i32
    %c0_i32_1 = arith.constant 0 : i32
    return %c0_i32, %c0_i32_0 : i32, i32
  }
  func.func @transform_10(%arg0: i32) -> (i32, i32) {
    %c0_i32 = arith.constant 0 : i32
    %c0_i32_0 = arith.constant 0 : i32
    %c0_i32_1 = arith.constant 0 : i32
    return %c0_i32, %c0_i32_0 : i32, i32
  }
  func.func @transform_11(%arg0: i32) -> (i32, i32) {
    %c0_i32 = arith.constant 0 : i32
    %c0_i32_0 = arith.constant 0 : i32
    %c0_i32_1 = arith.constant 0 : i32
    return %c0_i32, %c0_i32_0 : i32, i32
  }
  func.func @transform_12(%arg0: i32) -> (i32, i32) {
    %c0_i32 = arith.constant 0 : i32
    %c0_i32_0 = arith.constant 0 : i32
    %c0_i32_1 = arith.constant 0 : i32
    return %c0_i32, %c0_i32_0 : i32, i32
  }
  func.func @transform_13(%arg0: i32) -> (i32, i32) {
    %c0_i32 = arith.constant 0 : i32
    %c0_i32_0 = arith.constant 0 : i32
    %c0_i32_1 = arith.constant 0 : i32
    return %c0_i32, %c0_i32_0 : i32, i32
  }
  func.func @transform_14(%arg0: i32) -> (i32, i32) {
    %c0_i32 = arith.constant 0 : i32
    %c0_i32_0 = arith.constant 0 : i32
    %c0_i32_1 = arith.constant 0 : i32
    return %c0_i32, %c0_i32_0 : i32, i32
  }
  func.func @transform_15(%arg0: i32) -> (i32, i32) {
    %c0_i32 = arith.constant 0 : i32
    %c0_i32_0 = arith.constant 0 : i32
    return %arg0, %c0_i32 : i32, i32
  }
  func.func @transform_16(%arg0: i32) -> (i32, i32) {
    %c0_i32 = arith.constant 0 : i32
    %c0_i32_0 = arith.constant 0 : i32
    return %arg0, %c0_i32 : i32, i32
  }
}

</mosaic_0001>

<bundles_post_ra>
// kernel: gsfusion_pallas.1
= control target key start
LH: loop header
LB: loop body
LE: loop exit
PB: predicated region body
PF: predicated region fallthrough
CT: control target
= control target key end

     0   :  { %s8246_s0 = inlined_call_operand.vmem [shape: f32[16,512], index: 0, kind: input, shape index: {}, may-alias: {0,15}]   ;;  %s8247_s1 = inlined_call_operand.vmem [shape: bf16[16,512], index: 1, kind: input, shape index: {}]   ;;  %s8248_s2 = inlined_call_operand.vmem [shape: f32[16,512], index: 2, kind: input, shape index: {}, may-alias: {2,16}]   ;;  %s8249_s3 = inlined_call_operand.hbm [shape: bf16[512,512], index: 3, kind: input, shape index: {}]   ;;  %s8250_s4 = inlined_call_operand.hbm [shape: bf16[512,512], index: 4, kind: input, shape index: {}]   ;;  %s8251_s5 = inlined_call_operand.vmem [shape: f32[1,512], index: 5, kind: input, shape index: {}]   ;;  %s8252_s6 = inlined_call_operand.hbm [shape: bf16[512,512], index: 6, kind: input, shape index: {}]   ;;  %s8253_s7 = inlined_call_operand.vmem [shape: f32[1,512], index: 7, kind: input, shape index: {}]   ;;  %s8254_s8 = inlined_call_operand.hbm [shape: bf16[512,512], index: 8, kind: input, shape index: {}]   ;;  %s8255_s9 = inlined_call_operand.vmem [shape: f32[1,512], index: 9, kind: input, shape index: {}]   ;;  %s8256_s10 = inlined_call_operand.<no memory space> [shape: f32[1,1], index: 10, kind: input, shape index: {}]   ;;  %s8257_s11 = inlined_call_operand.vmem [shape: f32[1,512], index: 11, kind: input, shape index: {}]   ;;  %s8258_s12 = inlined_call_operand.vmem [shape: f32[1,512], index: 12, kind: input, shape index: {}]   ;;  %s8259_s13 = inlined_call_operand.vmem [shape: f32[1,512], index: 13, kind: input, shape index: {}]   ;;  %s8260_s14 = inlined_call_operand.vmem [shape: f32[1,512], index: 14, kind: input, shape index: {}]   ;;  %s8261_s15 = inlined_call_operand.vmem [shape: f32[16,512], index: 15, kind: output, shape index: {0}, may-alias: {0,15}]   ;;  %s8262_s16 = inlined_call_operand.vmem [shape: f32[16,512], index: 16, kind: output, shape index: {1}, may-alias: {2,16}]  }
   0x1   :  { %8264 = sst [smem:[#allocation14_spill]] %s8246_s0 }
   0x2   :  { %8265 = sst [smem:[#allocation15_spill]] %s8249_s3 }
   0x3   :  { %8266 = sst [smem:[#allocation16_spill]] %s8250_s4 }
   0x4   :  { %22 = sst [smem:[#allocation2]] %s8256_s10 }
   0x5   :  { %23 = vsyncpa [#allocation4], 0 }
   0x6   :  { %24 = vsyncpa [#allocation6], 0 }
   0x7   :  { %25 = vsyncpa [#allocation9], 0  ;;  %s7913_s23 = smov 0  }
   0x8 LB: > { %8267 = sst [smem:[#allocation13_spill]] %s7817_s23  ;;  %s7919_s24 = sadd.s32 4294967295, %s7817_s23   ;;  %s7817_s23 = sphi %s7913_s23, %s31_s23  }
   0x9   : > { %p5012_p0 = scmp.ge.s32.totalorder %s7817_s23, 1  ;;  %p418_p1 = scmp.lt.s32.totalorder %s7817_s23, 3 }
   0xa   : > { %p7633_p2 = scmp.eq.s32.totalorder %s7919_s24, 0  ;;  %s8268_s4 = sld [smem:[#allocation16_spill]] }
   0xb   : > { %p7927_p3 = pnand %p5012_p0, %p418_p1  ;;  %s8270_s3 = sld [smem:[#allocation15_spill]] }
   0xc   : > { %s7819_s0 = smov [#allocation5]   ;;  %s7820_s19 = smov [#allocation3]  }
   0xd   : > { %p7620_p4 = pneg %p7927_p3  ;;  %s445_s17 = sshll.u32 %s7819_s0, 4  ;;  %s446_s17 = int_to_ptr.vmem [resolvable:$true] %s445_s17 }
   0xe   : > { %s431_s20 = sshll.u32 %s7820_s19, 4  ;;  %s460_s10 = sshll.u32 %s8252_s6, 4  ;;  %s432_s20 = int_to_ptr.vmem [resolvable:$true] %s431_s20  ;;  %s461_s10 = int_to_ptr.hbm [resolvable:$true] %s460_s10 }
   0xf   : > { %p7938_p5 = pnand %p7633_p2, %p7620_p4  ;;  %s7821_s25 = smov 256  }
  0x10   : > { %s443_s26 = sshll.u32 %s8268_s4, 4  ;;  %s7822_s28 = smov 16   ;;  %s444_s26 = int_to_ptr.hbm [resolvable:$true] %s443_s26 }
  0x11   : > { %s429_s30 = sshll.u32 %s8270_s3, 4  ;;  %s7823_s29 = smov [#allocation7]   ;;  %s430_s30 = int_to_ptr.hbm [resolvable:$true] %s429_s30 }
  0x12   : > { %7626 = dma.hbm_to_vmem [thread:$0]  (!%p7938_p5), %s444_s26, 16384, %s446_s17, [#allocation6], %s7821_s25, %s7821_s25, %s7822_s28  }
  0x13   : > { %7623 = dma.hbm_to_vmem [thread:$0]  (!%p7938_p5), %s430_s30, 16384, %s432_s20, [#allocation4], %s7821_s25, %s7821_s25, %s7822_s28  }
  0x14   : > { %s462_s0 = sshll.u32 %s7823_s29, 4  ;;  %s477_s23 = sshll.u32 %s8254_s8, 4  ;;  %s463_s0 = int_to_ptr.vmem [resolvable:$true] %s462_s0  ;;  %s478_s23 = int_to_ptr.hbm [resolvable:$true] %s477_s23 }
  0x15   : > { %7629 = dma.hbm_to_vmem [thread:$0]  (!%p7938_p5), %s461_s10, 16384, %s463_s0, [#allocation6], %s7821_s25, %s7821_s25, %s7822_s28  }
  0x16   : > { %s7824_s19 = smov [#allocation8]   ;;  %537 = sbr.rel (%p7927_p3) target bundleno = 1423 (0x58f), region = 80 }
  0x17   : > { %s479_s21 = sshll.u32 %s7824_s19, 4  ;;  %s480_s21 = int_to_ptr.vmem [resolvable:$true] %s479_s21 }
  0x18   : > { %7632 = dma.hbm_to_vmem [thread:$0]  (!%p7938_p5), %s478_s23, 16384, %s480_s21, [#allocation9], %s7821_s25, %s7821_s25, %s7822_s28  }
  0x1b   : > { %7804 = dma.done.wait (%p7633_p2), [#allocation4], 16384  }
  0x1c   : > { %7806 = vsyncadd (%p7633_p2), [#allocation4], 4294950912 }
  0x1d   : > { %7808 = dma.done.wait (%p7633_p2), [#allocation6], 32768  }
  0x1e   : > { %7810 = vsyncadd (%p7633_p2), [#allocation6], 4294934528 }
  0x1f   : > { %7812 = dma.done.wait (%p7633_p2), [#allocation9], 16384  }
  0x20   : > { %7814 = vsyncadd (%p7633_p2), [#allocation9], 4294950912  ;;  %v5147_v0 = vld [vmem:[#allocation5 + $0xe0] sm:$0xf]  ;;  %v7250_v1 = vld [vmem:[#allocation5 + $0xec] sm:$0xf0] }
  0x21   : > { %v5275_v2 = vld [vmem:[#allocation5 + $0x1e0] sm:$0xf]  ;;  %v5148_v3 = vor.u32 %v7250_v1, %v5147_v0  ;;  %v7282_v4 = vld [vmem:[#allocation5 + $0x1ec] sm:$0xf0]  ;;  %p618_p6 = scmp.lt.s32.totalorder %s7919_s24, 1  ;;  %s8272_s18 = sld [smem:[#allocation14_spill]] }
  0x22   : > { %v5403_v5 = vld [vmem:[#allocation5 + $0x2e0] sm:$0xf]  ;;  %v7314_v6 = vld [vmem:[#allocation5 + $0x2ec] sm:$0xf0]  ;;  %v5276_v7 = vor.u32 %v7282_v4, %v5275_v2  ;;  %s4709_s0 = sld [smem:[#allocation2]] }
  0x23   : > { %v5404_v8 = vor.u32 %v7314_v6, %v5403_v5  ;;  %v5531_v9 = vld [vmem:[#allocation5 + $0x3e0] sm:$0xf]  ;;  %v7346_v10 = vld [vmem:[#allocation5 + $0x3ec] sm:$0xf0]  ;;  %1575 = vmatpush.bf16.msra.mxu0 %v5148_v3  ;;  %s8279_s24 = smov (!%p618_p6, %s7919_s24), 1 }
  0x24   : > { %v5131_v11 = vld [vmem:[#allocation5 + $0xc0] sm:$0xf]  ;;  %v5532_v12 = vor.u32 %v7346_v10, %v5531_v9  ;;  %v7246_v13 = vld [vmem:[#allocation5 + $0xcc] sm:$0xf0]  ;;  %1588 = vmatpush.bf16.msra.mxu1 %v5276_v7  ;;  %s7088_s3 = sshll.u32 %s8279_s24, 4  ;;  %s8005_s27 = sshll.u32 %s8279_s24, 5 }
  0x25   : > { %v5259_v14 = vld [vmem:[#allocation5 + $0x1c0] sm:$0xf]  ;;  %v7278_v15 = vld [vmem:[#allocation5 + $0x1cc] sm:$0xf0]  ;;  %1601 = vmatpush.bf16.msra.mxu2 %v5404_v8  ;;  %v5132_v16 = vor.u32 %v7246_v13, %v5131_v11  ;;  %s627_s26 = scalar_lea.vmem %s8247_s1, %s7088_s3  ;;  %s632_s3 = scalar_lea.vmem %s8248_s2, %s8005_s27 }
  0x26   : > { %v5260_v17 = vor.u32 %v7278_v15, %v5259_v14  ;;  %v5387_v18 = vld [vmem:[#allocation5 + $0x2c0] sm:$0xf]  ;;  %v7310_v19 = vld [vmem:[#allocation5 + $0x2cc] sm:$0xf0]  ;;  %1614 = vmatpush.bf16.msra.mxu3 %v5532_v12 }
  0x27   : > { %v5515_v20 = vld [vmem:[#allocation5 + $0x3c0] sm:$0xf]  ;;  %v5388_v21 = vor.u32 %v7310_v19, %v5387_v18  ;;  %v7342_v22 = vld [vmem:[#allocation5 + $0x3cc] sm:$0xf0]  ;;  %1576 = vmatpush.bf16.msra.mxu0 %v5132_v16  ;;  %s8011_s20 = scalar_lea.vmem %s8272_s18, %s8005_s27 }
  0x28   : > { %v5115_v23 = vld [vmem:[#allocation5 + $0xa0] sm:$0xf]  ;;  %v7242_v24 = vld [vmem:[#allocation5 + $0xac] sm:$0xf0]  ;;  %v5516_v25 = vor.u32 %v7342_v22, %v5515_v20  ;;  %1589 = vmatpush.bf16.msra.mxu1 %v5260_v17 }
  0x29   : > { %v5243_v26 = vld [vmem:[#allocation5 + $0x1a0] sm:$0xf]  ;;  %v7274_v27 = vld [vmem:[#allocation5 + $0x1ac] sm:$0xf0]  ;;  %v5116_v29 = vor.u32 %v7242_v24, %v5115_v23  ;;  %1602 = vmatpush.bf16.msra.mxu2 %v5388_v21 }
  0x2a   : > { %v5371_v28 = vld [vmem:[#allocation5 + $0x2a0] sm:$0xf]  ;;  %v7306_v30 = vld [vmem:[#allocation5 + $0x2ac] sm:$0xf0]  ;;  %v5244_v33 = vor.u32 %v7274_v27, %v5243_v26  ;;  %1615 = vmatpush.bf16.msra.mxu3 %v5516_v25 }
  0x2b   : > { %v5499_v31 = vld [vmem:[#allocation5 + $0x3a0] sm:$0xf]  ;;  %v7338_v32 = vld [vmem:[#allocation5 + $0x3ac] sm:$0xf0]  ;;  %v5372_v34 = vor.u32 %v7306_v30, %v5371_v28  ;;  %1577 = vmatpush.bf16.msra.mxu0 %v5116_v29  ;;  %v7248_v28 = vld [vmem:[#allocation5 + $0xe4] sm:$0xf] }
  0x2c   : > { %v5099_v35 = vld [vmem:[#allocation5 + $0x80] sm:$0xf]  ;;  %v7238_v36 = vld [vmem:[#allocation5 + $0x8c] sm:$0xf0]  ;;  %v5500_v38 = vor.u32 %v7338_v32, %v5499_v31  ;;  %1590 = vmatpush.bf16.msra.mxu1 %v5244_v33  ;;  %v5149_v29 = vld [vmem:[#allocation5 + $0xf0] sm:$0xf0] }
  0x2d   : > { %v5227_v37 = vld [vmem:[#allocation5 + $0x180] sm:$0xf]  ;;  %v7270_v39 = vld [vmem:[#allocation5 + $0x18c] sm:$0xf0]  ;;  %v5100_v44 = vor.u32 %v7238_v36, %v5099_v35  ;;  %1603 = vmatpush.bf16.msra.mxu2 %v5372_v34  ;;  %v7280_v30 = vld [vmem:[#allocation5 + $0x1e4] sm:$0xf] }
  0x2e   : > { %v5355_v40 = vld [vmem:[#allocation5 + $0x280] sm:$0xf]  ;;  %v7302_v41 = vld [vmem:[#allocation5 + $0x28c] sm:$0xf0]  ;;  %v5228_v45 = vor.u32 %v7270_v39, %v5227_v37  ;;  %1616 = vmatpush.bf16.msra.mxu3 %v5500_v38  ;;  %v5277_v32 = vld [vmem:[#allocation5 + $0x1f0] sm:$0xf0] }
  0x2f   : > { %v5483_v42 = vld [vmem:[#allocation5 + $0x380] sm:$0xf]  ;;  %v7334_v43 = vld [vmem:[#allocation5 + $0x38c] sm:$0xf0]  ;;  %v5356_v46 = vor.u32 %v7302_v41, %v5355_v40  ;;  %1578 = vmatpush.bf16.msra.mxu0 %v5100_v44  ;;  %v7312_v33 = vld [vmem:[#allocation5 + $0x2e4] sm:$0xf]  ;;  %v5152_v40 = vor.u32 %v7248_v28, %v5149_v29  ;;  %v5280_v41 = vor.u32 %v7280_v30, %v5277_v32 }
  0x30   : > { %v5083_v47 = vld [vmem:[#allocation5 + $0x60] sm:$0xf]  ;;  %v7234_v48 = vld [vmem:[#allocation5 + $0x6c] sm:$0xf0]  ;;  %v5484_v50 = vor.u32 %v7334_v43, %v5483_v42  ;;  %1591 = vmatpush.bf16.msra.mxu1 %v5228_v45  ;;  %v5405_v34 = vld [vmem:[#allocation5 + $0x2f0] sm:$0xf0] }
  0x31   : > { %v5211_v49 = vld [vmem:[#allocation5 + $0x160] sm:$0xf]  ;;  %v7266_v51 = vld [vmem:[#allocation5 + $0x16c] sm:$0xf0]  ;;  %v5084_v56 = vor.u32 %v7234_v48, %v5083_v47  ;;  %1604 = vmatpush.bf16.msra.mxu2 %v5356_v46  ;;  %v7344_v37 = vld [vmem:[#allocation5 + $0x3e4] sm:$0xf]  ;;  %v5408_v42 = vor.u32 %v7312_v33, %v5405_v34 }
  0x32   : > { %v5339_v52 = vld [vmem:[#allocation5 + $0x260] sm:$0xf]  ;;  %v7298_v53 = vld [vmem:[#allocation5 + $0x26c] sm:$0xf0]  ;;  %v5212_v57 = vor.u32 %v7266_v51, %v5211_v49  ;;  %1617 = vmatpush.bf16.msra.mxu3 %v5484_v50  ;;  %v5533_v38 = vld [vmem:[#allocation5 + $0x3f0] sm:$0xf0] }
  0x33   : > { %v5467_v54 = vld [vmem:[#allocation5 + $0x360] sm:$0xf]  ;;  %v7330_v55 = vld [vmem:[#allocation5 + $0x36c] sm:$0xf0]  ;;  %v5340_v58 = vor.u32 %v7298_v53, %v5339_v52  ;;  %1579 = vmatpush.bf16.msra.mxu0 %v5084_v56  ;;  %v7244_v43 = vld [vmem:[#allocation5 + $0xc4] sm:$0xf]  ;;  %v5536_v46 = vor.u32 %v7344_v37, %v5533_v38 }
  0x34   : > { %v5067_v59 = vld [vmem:[#allocation5 + $0x40] sm:$0xf]  ;;  %v7230_v60 = vld [vmem:[#allocation5 + $0x4c] sm:$0xf0]  ;;  %v5468_v62 = vor.u32 %v7330_v55, %v5467_v54  ;;  %1592 = vmatpush.bf16.msra.mxu1 %v5212_v57  ;;  %v5133_v44 = vld [vmem:[#allocation5 + $0xd0] sm:$0xf0] }
  0x35   : > { %v5195_v61 = vld [vmem:[#allocation5 + $0x140] sm:$0xf]  ;;  %v7262_v63 = vld [vmem:[#allocation5 + $0x14c] sm:$0xf0]  ;;  %v5068_v4 = vor.u32 %v7230_v60, %v5067_v59  ;;  %1605 = vmatpush.bf16.msra.mxu2 %v5340_v58  ;;  %v7276_v45 = vld [vmem:[#allocation5 + $0x1c4] sm:$0xf]  ;;  %v5136_v52 = vor.u32 %v7244_v43, %v5133_v44 }
  0x36   : > { %v5323_v0 = vld [vmem:[#allocation5 + $0x240] sm:$0xf]  ;;  %v7294_v1 = vld [vmem:[#allocation5 + $0x24c] sm:$0xf0]  ;;  %v5196_v5 = vor.u32 %v7262_v63, %v5195_v61  ;;  %1618 = vmatpush.bf16.msra.mxu3 %v5468_v62  ;;  %v5261_v47 = vld [vmem:[#allocation5 + $0x1d0] sm:$0xf0] }
  0x37   : > { %v5451_v2 = vld [vmem:[#allocation5 + $0x340] sm:$0xf]  ;;  %v7326_v3 = vld [vmem:[#allocation5 + $0x34c] sm:$0xf0]  ;;  %v5324_v6 = vor.u32 %v7294_v1, %v5323_v0  ;;  %1580 = vmatpush.bf16.msra.mxu0 %v5068_v4  ;;  %v7308_v48 = vld [vmem:[#allocation5 + $0x2c4] sm:$0xf]  ;;  %v5264_v54 = vor.u32 %v7276_v45, %v5261_v47 }
  0x38   : > { %v5051_v7 = vld [vmem:[#allocation5 + $0x20] sm:$0xf]  ;;  %v7226_v8 = vld [vmem:[#allocation5 + $0x2c] sm:$0xf0]  ;;  %v5452_v10 = vor.u32 %v7326_v3, %v5451_v2  ;;  %1593 = vmatpush.bf16.msra.mxu1 %v5196_v5  ;;  %v5389_v49 = vld [vmem:[#allocation5 + $0x2d0] sm:$0xf0] }
  0x39   : > { %v5179_v9 = vld [vmem:[#allocation5 + $0x120] sm:$0xf]  ;;  %v7258_v11 = vld [vmem:[#allocation5 + $0x12c] sm:$0xf0]  ;;  %v5052_v16 = vor.u32 %v7226_v8, %v5051_v7  ;;  %1606 = vmatpush.bf16.msra.mxu2 %v5324_v6  ;;  %v7340_v50 = vld [vmem:[#allocation5 + $0x3c4] sm:$0xf]  ;;  %v5392_v55 = vor.u32 %v7308_v48, %v5389_v49 }
  0x3a   : > { %v5307_v12 = vld [vmem:[#allocation5 + $0x220] sm:$0xf]  ;;  %v7290_v13 = vld [vmem:[#allocation5 + $0x22c] sm:$0xf0]  ;;  %v5180_v19 = vor.u32 %v7258_v11, %v5179_v9  ;;  %1619 = vmatpush.bf16.msra.mxu3 %v5452_v10  ;;  %v5517_v51 = vld [vmem:[#allocation5 + $0x3d0] sm:$0xf0] }
  0x3b   : > { %v5435_v14 = vld [vmem:[#allocation5 + $0x320] sm:$0xf]  ;;  %v7322_v15 = vld [vmem:[#allocation5 + $0x32c] sm:$0xf0]  ;;  %v5308_v20 = vor.u32 %v7290_v13, %v5307_v12  ;;  %1581 = vmatpush.bf16.msra.mxu0 %v5052_v16  ;;  %v7240_v53 = vld [vmem:[#allocation5 + $0xa4] sm:$0xf]  ;;  %v5520_v59 = vor.u32 %v7340_v50, %v5517_v51 }
  0x3c   : > { %v5035_v17 = vld [vmem:[#allocation5] sm:$0xf]  ;;  %v7222_v18 = vld [vmem:[#allocation5 + $0xc] sm:$0xf0]  ;;  %v5436_v24 = vor.u32 %v7322_v15, %v5435_v14  ;;  %1594 = vmatpush.bf16.msra.mxu1 %v5180_v19  ;;  %v5117_v56 = vld [vmem:[#allocation5 + $0xb0] sm:$0xf0] }
  0x3d   : > { %v5163_v21 = vld [vmem:[#allocation5 + $0x100] sm:$0xf]  ;;  %v7254_v22 = vld [vmem:[#allocation5 + $0x10c] sm:$0xf0]  ;;  %v5036_v31 = vor.u32 %v7222_v18, %v5035_v17  ;;  %1607 = vmatpush.bf16.msra.mxu2 %v5308_v20  ;;  %v7272_v57 = vld [vmem:[#allocation5 + $0x1a4] sm:$0xf]  ;;  %v5120_v0 = vor.u32 %v7240_v53, %v5117_v56 }
  0x3e   : > { %v5291_v23 = vld [vmem:[#allocation5 + $0x200] sm:$0xf]  ;;  %v7286_v25 = vld [vmem:[#allocation5 + $0x20c] sm:$0xf0]  ;;  %v5164_v35 = vor.u32 %v7254_v22, %v5163_v21  ;;  %1620 = vmatpush.bf16.msra.mxu3 %v5436_v24  ;;  %v5245_v58 = vld [vmem:[#allocation5 + $0x1b0] sm:$0xf0] }
  0x3f   : > { %v5419_v26 = vld [vmem:[#allocation5 + $0x300] sm:$0xf]  ;;  %v7318_v27 = vld [vmem:[#allocation5 + $0x30c] sm:$0xf0]  ;;  %v5292_v36 = vor.u32 %v7286_v25, %v5291_v23  ;;  %1582 = vmatpush.bf16.msra.mxu0 %v5036_v31  ;;  %v7304_v60 = vld [vmem:[#allocation5 + $0x2a4] sm:$0xf]  ;;  %v5248_v1 = vor.u32 %v7272_v57, %v5245_v58 }
  0x40   : > { %v5420_v39 = vor.u32 %v7318_v27, %v5419_v26  ;;  %1595 = vmatpush.bf16.msra.mxu1 %v5164_v35  ;;  %v5373_v61 = vld [vmem:[#allocation5 + $0x2b0] sm:$0xf0]  ;;  %v7336_v62 = vld [vmem:[#allocation5 + $0x3a4] sm:$0xf]  ;;  %v664_v2 = vld [vmem:[%s627_s26 + $0x8] sm:$0xff] }
  0x41   : > { %1608 = vmatpush.bf16.msra.mxu2 %v5292_v36  ;;  %v5501_v63 = vld [vmem:[#allocation5 + $0x3b0] sm:$0xf0]  ;;  %v663_v3 = vld [vmem:[%s627_s26] sm:$0xff]  ;;  %v5376_v4 = vor.u32 %v7304_v60, %v5373_v61  ;;  %v925_v8 = vunpack.c.l.b16 %v664_v2  ;;  %v926_v10 = vunpack.c.h.b16 %v664_v2  ;;  %s642_s26 = scalar_lea.vmem %s8262_s16, %s8005_s27 }
  0x42   : > { %1621 = vmatpush.bf16.msra.mxu3 %v5420_v39  ;;  %v7236_v5 = vld [vmem:[#allocation5 + $0x84] sm:$0xf]  ;;  %v5101_v6 = vld [vmem:[#allocation5 + $0x90] sm:$0xf0]  ;;  %v923_v9 = vunpack.c.l.b16 %v663_v3  ;;  %v5504_v11 = vor.u32 %v7336_v62, %v5501_v63  ;;  %v924_v15 = vunpack.c.h.b16 %v663_v3 }
  0x43   : > { %1627 = vmatpush.bf16.msrb.mxu0 %v5152_v40  ;;  %v7268_v7 = vld [vmem:[#allocation5 + $0x184] sm:$0xf]  ;;  %v5229_v12 = vld [vmem:[#allocation5 + $0x190] sm:$0xf0]  ;;  %v7980_v18 = vpack.c.b16 %v925_v8, %v925_v8  ;;  %v7984_v20 = vpack.c.b16 %v926_v10, %v926_v10  ;;  %v5104_v21 = vor.u32 %v7236_v5, %v5101_v6  ;;  %v5155_v6 = vld [vmem:[#allocation5 + $0xe8] sm:$0xf] }
  0x44   : > { %1640 = vmatpush.bf16.msrb.mxu1 %v5280_v41  ;;  %v7300_v13 = vld [vmem:[#allocation5 + $0x284] sm:$0xf]  ;;  %v5357_v14 = vld [vmem:[#allocation5 + $0x290] sm:$0xf0]  ;;  %v7982_v19 = vpack.c.b16 %v923_v9, %v923_v9  ;;  %v7986_v22 = vpack.c.b16 %v924_v15, %v924_v15  ;;  %v5232_v23 = vor.u32 %v7268_v7, %v5229_v12  ;;  %v7251_v7 = vld [vmem:[#allocation5 + $0xf4] sm:$0xf0] }
  0x45   : > { %1653 = vmatpush.bf16.msrb.mxu2 %v5408_v42  ;;  %v7332_v16 = vld [vmem:[#allocation5 + $0x384] sm:$0xf]  ;;  %v5485_v17 = vld [vmem:[#allocation5 + $0x390] sm:$0xf0]  ;;  %v5360_v24 = vor.u32 %v7300_v13, %v5357_v14  ;;  %1622 = vmatmul.bf16.vlgmr.msra.gmra.mxu3 %v7984_v20  ;;  %v5283_v8 = vld [vmem:[#allocation5 + $0x1e8] sm:$0xf] }
  0x46   : > { %1666 = vmatpush.bf16.msrb.mxu3 %v5536_v46  ;;  %v7232_v25 = vld [vmem:[#allocation5 + $0x64] sm:$0xf]  ;;  %v5085_v26 = vld [vmem:[#allocation5 + $0x70] sm:$0xf0]  ;;  %v5488_v28 = vor.u32 %v7332_v16, %v5485_v17  ;;  %1609 = vmatmul.bf16.vlgmr.msra.gmra.mxu2 %v7980_v18  ;;  %v7283_v10 = vld [vmem:[#allocation5 + $0x1f4] sm:$0xf0] }
  0x47   : > { %1628 = vmatpush.bf16.msrb.mxu0 %v5136_v52  ;;  %v7264_v27 = vld [vmem:[#allocation5 + $0x164] sm:$0xf]  ;;  %v5213_v29 = vld [vmem:[#allocation5 + $0x170] sm:$0xf0]  ;;  %v5088_v34 = vor.u32 %v7232_v25, %v5085_v26  ;;  %1596 = vmatmul.bf16.vlgmr.msra.gmra.mxu1 %v7986_v22  ;;  %v7315_v12 = vld [vmem:[#allocation5 + $0x2f4] sm:$0xf0] }
  0x48   : > { %1641 = vmatpush.bf16.msrb.mxu1 %v5264_v54  ;;  %v7296_v30 = vld [vmem:[#allocation5 + $0x264] sm:$0xf]  ;;  %v5341_v31 = vld [vmem:[#allocation5 + $0x270] sm:$0xf0]  ;;  %1583 = vmatmul.bf16.vlgmr.msra.gmra.mxu0 %v7982_v19  ;;  %v5216_v35 = vor.u32 %v7264_v27, %v5213_v29  ;;  %v5539_v15 = vld [vmem:[#allocation5 + $0x3e8] sm:$0xf] }
  0x49   : > { %1654 = vmatpush.bf16.msrb.mxu2 %v5392_v55  ;;  %v7328_v32 = vld [vmem:[#allocation5 + $0x364] sm:$0xf]  ;;  %v5469_v33 = vld [vmem:[#allocation5 + $0x370] sm:$0xf0]  ;;  %v5344_v36 = vor.u32 %v7296_v30, %v5341_v31  ;;  %v7347_v16 = vld [vmem:[#allocation5 + $0x3f4] sm:$0xf0] }
  0x4a   : > { %1667 = vmatpush.bf16.msrb.mxu3 %v5520_v59  ;;  %v7228_v37 = vld [vmem:[#allocation5 + $0x44] sm:$0xf]  ;;  %v5069_v38 = vld [vmem:[#allocation5 + $0x50] sm:$0xf0]  ;;  %v5472_v40 = vor.u32 %v7328_v32, %v5469_v33  ;;  %v5139_v25 = vld [vmem:[#allocation5 + $0xc8] sm:$0xf] }
  0x4b   : > { %1629 = vmatpush.bf16.msrb.mxu0 %v5120_v0  ;;  %v7260_v39 = vld [vmem:[#allocation5 + $0x144] sm:$0xf]  ;;  %v5197_v41 = vld [vmem:[#allocation5 + $0x150] sm:$0xf0]  ;;  %v5072_v46 = vor.u32 %v7228_v37, %v5069_v38  ;;  %v7247_v26 = vld [vmem:[#allocation5 + $0xd4] sm:$0xf0] }
  0x4c   : > { %1642 = vmatpush.bf16.msrb.mxu1 %v5248_v1  ;;  %v7292_v42 = vld [vmem:[#allocation5 + $0x244] sm:$0xf]  ;;  %v5325_v43 = vld [vmem:[#allocation5 + $0x250] sm:$0xf0]  ;;  %v5200_v47 = vor.u32 %v7260_v39, %v5197_v41  ;;  %v5267_v27 = vld [vmem:[#allocation5 + $0x1c8] sm:$0xf] }
  0x4d   : > { %1655 = vmatpush.bf16.msrb.mxu2 %v5376_v4  ;;  %v7324_v44 = vld [vmem:[#allocation5 + $0x344] sm:$0xf]  ;;  %v5453_v45 = vld [vmem:[#allocation5 + $0x350] sm:$0xf0]  ;;  %v5328_v48 = vor.u32 %v7292_v42, %v5325_v43  ;;  %v7279_v29 = vld [vmem:[#allocation5 + $0x1d4] sm:$0xf0] }
  0x4e   : > { %1668 = vmatpush.bf16.msrb.mxu3 %v5504_v11  ;;  %v7224_v49 = vld [vmem:[#allocation5 + $0x24] sm:$0xf]  ;;  %v5053_v50 = vld [vmem:[#allocation5 + $0x30] sm:$0xf0]  ;;  %v5456_v52 = vor.u32 %v7324_v44, %v5453_v45  ;;  %v5411_v11 = vld [vmem:[#allocation5 + $0x2e8] sm:$0xf] }
  0x4f   : > { %1630 = vmatpush.bf16.msrb.mxu0 %v5104_v21  ;;  %v7256_v51 = vld [vmem:[#allocation5 + $0x124] sm:$0xf]  ;;  %v5181_v53 = vld [vmem:[#allocation5 + $0x130] sm:$0xf0]  ;;  %v5056_v58 = vor.u32 %v7224_v49, %v5053_v50  ;;  %v5156_v21 = vor.u32 %v7251_v7, %v5155_v6  ;;  %v5395_v30 = vld [vmem:[#allocation5 + $0x2c8] sm:$0xf] }
  0x50   : > { %1643 = vmatpush.bf16.msrb.mxu1 %v5232_v23  ;;  %v7288_v54 = vld [vmem:[#allocation5 + $0x224] sm:$0xf]  ;;  %v5309_v55 = vld [vmem:[#allocation5 + $0x230] sm:$0xf0]  ;;  %v5184_v61 = vor.u32 %v7256_v51, %v5181_v53  ;;  %v5284_v23 = vor.u32 %v7283_v10, %v5283_v8  ;;  %v7311_v31 = vld [vmem:[#allocation5 + $0x2d4] sm:$0xf0] }
  0x51   : > { %1656 = vmatpush.bf16.msrb.mxu2 %v5360_v24  ;;  %v7320_v56 = vld [vmem:[#allocation5 + $0x324] sm:$0xf]  ;;  %v5437_v57 = vld [vmem:[#allocation5 + $0x330] sm:$0xf0]  ;;  %v5312_v62 = vor.u32 %v7288_v54, %v5309_v55  ;;  %v5412_v24 = vor.u32 %v7315_v12, %v5411_v11  ;;  %v5523_v32 = vld [vmem:[#allocation5 + $0x3c8] sm:$0xf] }
  0x52   : > { %1669 = vmatpush.bf16.msrb.mxu3 %v5488_v28  ;;  %v7220_v59 = vld [vmem:[#allocation5 + $0x4] sm:$0xf]  ;;  %v5037_v60 = vld [vmem:[#allocation5 + $0x10] sm:$0xf0]  ;;  %v5440_v2 = vor.u32 %v7320_v56, %v5437_v57  ;;  %v5540_v28 = vor.u32 %v7347_v16, %v5539_v15  ;;  %v7343_v33 = vld [vmem:[#allocation5 + $0x3d4] sm:$0xf0] }
  0x53   : > { %1631 = vmatpush.bf16.msrb.mxu0 %v5088_v34  ;;  %v7252_v63 = vld [vmem:[#allocation5 + $0x104] sm:$0xf]  ;;  %v5165_v0 = vld [vmem:[#allocation5 + $0x110] sm:$0xf0]  ;;  %v5040_v9 = vor.u32 %v7220_v59, %v5037_v60  ;;  %v5140_v34 = vor.u32 %v7247_v26, %v5139_v25  ;;  %v5123_v37 = vld [vmem:[#allocation5 + $0xa8] sm:$0xf] }
  0x54   : > { %1644 = vmatpush.bf16.msrb.mxu1 %v5216_v35  ;;  %v7284_v1 = vld [vmem:[#allocation5 + $0x204] sm:$0xf]  ;;  %v5293_v3 = vld [vmem:[#allocation5 + $0x210] sm:$0xf0]  ;;  %v5168_v13 = vor.u32 %v7252_v63, %v5165_v0  ;;  %v5268_v35 = vor.u32 %v7279_v29, %v5267_v27  ;;  %v7243_v38 = vld [vmem:[#allocation5 + $0xb4] sm:$0xf0] }
  0x55   : > { %1657 = vmatpush.bf16.msrb.mxu2 %v5344_v36  ;;  %v7316_v4 = vld [vmem:[#allocation5 + $0x304] sm:$0xf]  ;;  %v5421_v5 = vld [vmem:[#allocation5 + $0x310] sm:$0xf0]  ;;  %v5296_v14 = vor.u32 %v7284_v1, %v5293_v3  ;;  %v5396_v36 = vor.u32 %v7311_v31, %v5395_v30  ;;  %v5251_v39 = vld [vmem:[#allocation5 + $0x1a8] sm:$0xf] }
  0x56   : > { %1670 = vmatpush.bf16.msrb.mxu3 %v5472_v40  ;;  %v5424_v17 = vor.u32 %v7316_v4, %v5421_v5  ;;  %v5524_v40 = vor.u32 %v7343_v33, %v5523_v32  ;;  %v7275_v41 = vld [vmem:[#allocation5 + $0x1b4] sm:$0xf0]  ;;  %v5379_v42 = vld [vmem:[#allocation5 + $0x2a8] sm:$0xf] }
  0x57   : > { %1632 = vmatpush.bf16.msrb.mxu0 %v5072_v46  ;;  %v7307_v43 = vld [vmem:[#allocation5 + $0x2b4] sm:$0xf0]  ;;  %v5507_v44 = vld [vmem:[#allocation5 + $0x3a8] sm:$0xf]  ;;  %v5124_v46 = vor.u32 %v7243_v38, %v5123_v37 }
  0x58   : > { %1645 = vmatpush.bf16.msrb.mxu1 %v5200_v47  ;;  %v7339_v45 = vld [vmem:[#allocation5 + $0x3b4] sm:$0xf0]  ;;  %v5252_v47 = vor.u32 %v7275_v41, %v5251_v39  ;;  %v5107_v49 = vld [vmem:[#allocation5 + $0x88] sm:$0xf] }
  0x59   : > { %1658 = vmatpush.bf16.msrb.mxu2 %v5328_v48  ;;  %v5380_v48 = vor.u32 %v7307_v43, %v5379_v42  ;;  %v7239_v50 = vld [vmem:[#allocation5 + $0x94] sm:$0xf0]  ;;  %v5235_v51 = vld [vmem:[#allocation5 + $0x188] sm:$0xf] }
  0x5a   : > { %1671 = vmatpush.bf16.msrb.mxu3 %v5456_v52  ;;  %v5508_v52 = vor.u32 %v7339_v45, %v5507_v44  ;;  %v7271_v53 = vld [vmem:[#allocation5 + $0x194] sm:$0xf0]  ;;  %v5363_v54 = vld [vmem:[#allocation5 + $0x288] sm:$0xf] }
  0x5b   : > { %1633 = vmatpush.bf16.msrb.mxu0 %v5056_v58  ;;  %v7303_v55 = vld [vmem:[#allocation5 + $0x294] sm:$0xf0]  ;;  %v5491_v56 = vld [vmem:[#allocation5 + $0x388] sm:$0xf]  ;;  %v5108_v58 = vor.u32 %v7239_v50, %v5107_v49  ;;  %v5236_v59 = vor.u32 %v7271_v53, %v5235_v51  ;;  %v5285_v50 = vld [vmem:[#allocation5 + $0x1f8] sm:$0xf0] }
  0x5c   : > { %1646 = vmatpush.bf16.msrb.mxu1 %v5184_v61  ;;  %v7335_v57 = vld [vmem:[#allocation5 + $0x394] sm:$0xf0]  ;;  %v5364_v60 = vor.u32 %v7303_v55, %v5363_v54  ;;  %v5091_v61 = vld [vmem:[#allocation5 + $0x68] sm:$0xf]  ;;  %v7313_v51 = vld [vmem:[#allocation5 + $0x2ec] sm:$0xf] }
  0x5d   : > { %1659 = vmatpush.bf16.msrb.mxu2 %v5312_v62  ;;  %v7235_v62 = vld [vmem:[#allocation5 + $0x74] sm:$0xf0]  ;;  %v5219_v63 = vld [vmem:[#allocation5 + $0x168] sm:$0xf]  ;;  %v5492_v0 = vor.u32 %v7335_v57, %v5491_v56  ;;  %v7345_v55 = vld [vmem:[#allocation5 + $0x3ec] sm:$0xf] }
  0x5e   : > { %1672 = vmatpush.bf16.msrb.mxu3 %v5440_v2  ;;  %v7267_v1 = vld [vmem:[#allocation5 + $0x174] sm:$0xf0]  ;;  %v5347_v2 = vld [vmem:[#allocation5 + $0x268] sm:$0xf]  ;;  %v5092_v6 = vor.u32 %v7235_v62, %v5091_v61  ;;  %v5541_v56 = vld [vmem:[#allocation5 + $0x3f8] sm:$0xf0] }
  0x5f   : > { %1634 = vmatpush.bf16.msrb.mxu0 %v5040_v9  ;;  %v7299_v3 = vld [vmem:[#allocation5 + $0x274] sm:$0xf0]  ;;  %v5475_v4 = vld [vmem:[#allocation5 + $0x368] sm:$0xf]  ;;  %v5220_v7 = vor.u32 %v7267_v1, %v5219_v63  ;;  %v7245_v61 = vld [vmem:[#allocation5 + $0xcc] sm:$0xf] }
  0x60   : > { %1647 = vmatpush.bf16.msrb.mxu1 %v5168_v13  ;;  %v7331_v5 = vld [vmem:[#allocation5 + $0x374] sm:$0xf0]  ;;  %v5348_v8 = vor.u32 %v7299_v3, %v5347_v2  ;;  %v5075_v9 = vld [vmem:[#allocation5 + $0x48] sm:$0xf]  ;;  %v5141_v62 = vld [vmem:[#allocation5 + $0xd8] sm:$0xf0] }
  0x61   : > { %1660 = vmatpush.bf16.msrb.mxu2 %v5296_v14  ;;  %v7231_v10 = vld [vmem:[#allocation5 + $0x54] sm:$0xf0]  ;;  %v5203_v11 = vld [vmem:[#allocation5 + $0x148] sm:$0xf]  ;;  %v5476_v12 = vor.u32 %v7331_v5, %v5475_v4  ;;  %v7277_v63 = vld [vmem:[#allocation5 + $0x1cc] sm:$0xf] }
  0x62   : > { %1673 = vmatpush.bf16.msrb.mxu3 %v5424_v17  ;;  %1635 = vmatmul.bf16.vlgmr.msrb.gmra.mxu0 %v7982_v19  ;;  %v7263_v13 = vld [vmem:[#allocation5 + $0x154] sm:$0xf0]  ;;  %v5331_v14 = vld [vmem:[#allocation5 + $0x248] sm:$0xf]  ;;  %v5269_v1 = vld [vmem:[#allocation5 + $0x1d8] sm:$0xf0] }
  0x63   : > { %1679 = vmatpush.bf16.msra.mxu0 %v5156_v21  ;;  %1648 = vmatmul.bf16.vlgmr.msrb.gmra.mxu1 %v7986_v22  ;;  %v7295_v15 = vld [vmem:[#allocation5 + $0x254] sm:$0xf0]  ;;  %v5459_v16 = vld [vmem:[#allocation5 + $0x348] sm:$0xf]  ;;  %v5076_v21 = vor.u32 %v7231_v10, %v5075_v9  ;;  %v7309_v2 = vld [vmem:[#allocation5 + $0x2cc] sm:$0xf] }
  0x64   : > { %1692 = vmatpush.bf16.msra.mxu1 %v5284_v23  ;;  %1661 = vmatmul.bf16.vlgmr.msrb.gmra.mxu2 %v7980_v18  ;;  %v7327_v17 = vld [vmem:[#allocation5 + $0x354] sm:$0xf0]  ;;  %v5204_v23 = vor.u32 %v7263_v13, %v5203_v11  ;;  %v5059_v25 = vld [vmem:[#allocation5 + $0x28] sm:$0xf]  ;;  %v5397_v3 = vld [vmem:[#allocation5 + $0x2d8] sm:$0xf0] }
  0x65   : > { %1705 = vmatpush.bf16.msra.mxu2 %v5412_v24  ;;  %1674 = vmatmul.bf16.vlgmr.msrb.gmra.mxu3 %v7984_v20  ;;  %v5332_v24 = vor.u32 %v7295_v15, %v5331_v14  ;;  %v7227_v26 = vld [vmem:[#allocation5 + $0x34] sm:$0xf0]  ;;  %v5187_v27 = vld [vmem:[#allocation5 + $0x128] sm:$0xf]  ;;  %v7341_v4 = vld [vmem:[#allocation5 + $0x3cc] sm:$0xf] }
  0x66   : > { %1718 = vmatpush.bf16.msra.mxu3 %v5540_v28  ;;  %v5460_v28 = vor.u32 %v7327_v17, %v5459_v16  ;;  %v7259_v29 = vld [vmem:[#allocation5 + $0x134] sm:$0xf0]  ;;  %v5315_v30 = vld [vmem:[#allocation5 + $0x228] sm:$0xf]  ;;  %v5525_v5 = vld [vmem:[#allocation5 + $0x3d8] sm:$0xf0] }
  0x67   : > { %1680 = vmatpush.bf16.msra.mxu0 %v5140_v34  ;;  %v7291_v31 = vld [vmem:[#allocation5 + $0x234] sm:$0xf0]  ;;  %v5443_v32 = vld [vmem:[#allocation5 + $0x328] sm:$0xf]  ;;  %v5060_v34 = vor.u32 %v7227_v26, %v5059_v25  ;;  %v5188_v37 = vor.u32 %v7259_v29, %v5187_v27  ;;  %v7241_v9 = vld [vmem:[#allocation5 + $0xac] sm:$0xf] }
  0x68   : > { %1693 = vmatpush.bf16.msra.mxu1 %v5268_v35  ;;  %v7323_v33 = vld [vmem:[#allocation5 + $0x334] sm:$0xf0]  ;;  %v5043_v35 = vld [vmem:[#allocation5 + $0x8] sm:$0xf]  ;;  %v5316_v38 = vor.u32 %v7291_v31, %v5315_v30  ;;  %v5125_v10 = vld [vmem:[#allocation5 + $0xb8] sm:$0xf0] }
  0x69   : > { %1706 = vmatpush.bf16.msra.mxu2 %v5396_v36  ;;  %v7223_v36 = vld [vmem:[#allocation5 + $0x14] sm:$0xf0]  ;;  %v5171_v39 = vld [vmem:[#allocation5 + $0x108] sm:$0xf]  ;;  %v5444_v42 = vor.u32 %v7323_v33, %v5443_v32  ;;  %v7273_v11 = vld [vmem:[#allocation5 + $0x1ac] sm:$0xf] }
  0x6a   : > { %1719 = vmatpush.bf16.msra.mxu3 %v5524_v40  ;;  %v7255_v40 = vld [vmem:[#allocation5 + $0x114] sm:$0xf0]  ;;  %v5299_v41 = vld [vmem:[#allocation5 + $0x208] sm:$0xf]  ;;  %v5044_v49 = vor.u32 %v7223_v36, %v5043_v35  ;;  %v5253_v13 = vld [vmem:[#allocation5 + $0x1b8] sm:$0xf0] }
  0x6b   : > { %1681 = vmatpush.bf16.msra.mxu0 %v5124_v46  ;;  %v7287_v43 = vld [vmem:[#allocation5 + $0x214] sm:$0xf0]  ;;  %v5427_v44 = vld [vmem:[#allocation5 + $0x308] sm:$0xf]  ;;  %v7249_v46 = vld [vmem:[#allocation5 + $0xec] sm:$0xf]  ;;  %v5172_v53 = vor.u32 %v7255_v40, %v5171_v39 }
  0x6c   : > { %1694 = vmatpush.bf16.msra.mxu1 %v5252_v47  ;;  %v7319_v45 = vld [vmem:[#allocation5 + $0x314] sm:$0xf0]  ;;  %v5157_v47 = vld [vmem:[#allocation5 + $0xf8] sm:$0xf0]  ;;  %v5300_v54 = vor.u32 %v7287_v43, %v5299_v41  ;;  %v7305_v14 = vld [vmem:[#allocation5 + $0x2ac] sm:$0xf] }
  0x6d   : > { %1707 = vmatpush.bf16.msra.mxu2 %v5380_v48  ;;  %v7281_v48 = vld [vmem:[#allocation5 + $0x1ec] sm:$0xf]  ;;  %v5428_v57 = vor.u32 %v7319_v45, %v5427_v44  ;;  %v5381_v15 = vld [vmem:[#allocation5 + $0x2b8] sm:$0xf0] }
  0x6e   : > { %1720 = vmatpush.bf16.msra.mxu3 %v5508_v52  ;;  %v5413_v52 = vld [vmem:[#allocation5 + $0x2f8] sm:$0xf0]  ;;  %v7337_v16 = vld [vmem:[#allocation5 + $0x3ac] sm:$0xf] }
  0x6f   : > { %1682 = vmatpush.bf16.msra.mxu0 %v5108_v58  ;;  %v5160_v58 = vor.u32 %v7249_v46, %v5157_v47  ;;  %v5509_v17 = vld [vmem:[#allocation5 + $0x3b8] sm:$0xf0]  ;;  %v7237_v25 = vld [vmem:[#allocation5 + $0x8c] sm:$0xf] }
  0x70   : > { %1695 = vmatpush.bf16.msra.mxu1 %v5236_v59  ;;  %v5288_v59 = vor.u32 %v7281_v48, %v5285_v50  ;;  %v5109_v26 = vld [vmem:[#allocation5 + $0x98] sm:$0xf0]  ;;  %v7269_v27 = vld [vmem:[#allocation5 + $0x18c] sm:$0xf] }
  0x71   : > { %1708 = vmatpush.bf16.msra.mxu2 %v5364_v60  ;;  %v5416_v60 = vor.u32 %v7313_v51, %v5413_v52  ;;  %v5237_v29 = vld [vmem:[#allocation5 + $0x198] sm:$0xf0]  ;;  %v7301_v30 = vld [vmem:[#allocation5 + $0x28c] sm:$0xf] }
  0x72   : > { %1721 = vmatpush.bf16.msra.mxu3 %v5492_v0  ;;  %v5544_v0 = vor.u32 %v7345_v55, %v5541_v56  ;;  %v5365_v31 = vld [vmem:[#allocation5 + $0x298] sm:$0xf0]  ;;  %v7333_v32 = vld [vmem:[#allocation5 + $0x38c] sm:$0xf]  ;;  %v5240_v35 = vor.u32 %v7269_v27, %v5237_v29  ;;  %v5915_v27 = vld [vmem:[#allocation3 + $0x2e0] sm:$0xf] }
  0x73   : > { %1683 = vmatpush.bf16.msra.mxu0 %v5092_v6  ;;  %v5144_v6 = vor.u32 %v7245_v61, %v5141_v62  ;;  %v5493_v33 = vld [vmem:[#allocation5 + $0x398] sm:$0xf0]  ;;  %v5368_v36 = vor.u32 %v7301_v30, %v5365_v31  ;;  %v7265_v39 = vld [vmem:[#allocation5 + $0x16c] sm:$0xf]  ;;  %v6043_v31 = vld [vmem:[#allocation3 + $0x3e0] sm:$0xf] }
  0x74   : > { %1696 = vmatpush.bf16.msra.mxu1 %v5220_v7  ;;  %v5272_v7 = vor.u32 %v7277_v63, %v5269_v1  ;;  %v5496_v40 = vor.u32 %v7333_v32, %v5493_v33  ;;  %v5221_v41 = vld [vmem:[#allocation5 + $0x178] sm:$0xf0]  ;;  %v7329_v44 = vld [vmem:[#allocation5 + $0x36c] sm:$0xf]  ;;  %v7218_v32 = vld [vmem:[#allocation3 + $0x3ec] sm:$0xf0] }
  0x75   : > { %1709 = vmatpush.bf16.msra.mxu2 %v5348_v8  ;;  %v5400_v8 = vor.u32 %v7309_v2, %v5397_v3  ;;  %v5349_v43 = vld [vmem:[#allocation5 + $0x278] sm:$0xf0]  ;;  %v5224_v47 = vor.u32 %v7265_v39, %v5221_v41  ;;  %v7261_v51 = vld [vmem:[#allocation5 + $0x14c] sm:$0xf]  ;;  %v5771_v39 = vld [vmem:[#allocation3 + $0x1c0] sm:$0xf] }
  0x76   : > { %1722 = vmatpush.bf16.msra.mxu3 %v5476_v12  ;;  %v5528_v12 = vor.u32 %v7341_v4, %v5525_v5  ;;  %v5477_v45 = vld [vmem:[#allocation5 + $0x378] sm:$0xf0]  ;;  %v7325_v56 = vld [vmem:[#allocation5 + $0x34c] sm:$0xf]  ;;  %v7150_v41 = vld [vmem:[#allocation3 + $0x1cc] sm:$0xf0] }
  0x77   : > { %1684 = vmatpush.bf16.msra.mxu0 %v5076_v21  ;;  %v5128_v21 = vor.u32 %v7241_v9, %v5125_v10  ;;  %v5077_v50 = vld [vmem:[#allocation5 + $0x58] sm:$0xf0]  ;;  %v5480_v52 = vor.u32 %v7329_v44, %v5477_v45  ;;  %v7225_v61 = vld [vmem:[#allocation5 + $0x2c] sm:$0xf]  ;;  %v6027_v44 = vld [vmem:[#allocation3 + $0x3c0] sm:$0xf] }
  0x78   : > { %1697 = vmatpush.bf16.msra.mxu1 %v5204_v23  ;;  %v5256_v23 = vor.u32 %v7273_v11, %v5253_v13  ;;  %v5333_v55 = vld [vmem:[#allocation5 + $0x258] sm:$0xf0]  ;;  %v7257_v63 = vld [vmem:[#allocation5 + $0x12c] sm:$0xf]  ;;  %v7214_v45 = vld [vmem:[#allocation3 + $0x3cc] sm:$0xf0] }
  0x79   : > { %1710 = vmatpush.bf16.msra.mxu2 %v5332_v24  ;;  %v5384_v24 = vor.u32 %v7305_v14, %v5381_v15  ;;  %v5061_v62 = vld [vmem:[#allocation5 + $0x38] sm:$0xf0]  ;;  %v7289_v2 = vld [vmem:[#allocation5 + $0x22c] sm:$0xf] }
  0x7a   : > { %1723 = vmatpush.bf16.msra.mxu3 %v5460_v28  ;;  %v5512_v28 = vor.u32 %v7337_v16, %v5509_v17  ;;  %v5189_v1 = vld [vmem:[#allocation5 + $0x138] sm:$0xf0]  ;;  %v7321_v4 = vld [vmem:[#allocation5 + $0x32c] sm:$0xf] }
  0x7b   : > { %1685 = vmatpush.bf16.msra.mxu0 %v5060_v34  ;;  %v5112_v34 = vor.u32 %v7237_v25, %v5109_v26  ;;  %v5317_v3 = vld [vmem:[#allocation5 + $0x238] sm:$0xf0]  ;;  %v5192_v9 = vor.u32 %v7257_v63, %v5189_v1  ;;  %v7253_v11 = vld [vmem:[#allocation5 + $0x10c] sm:$0xf]  ;;  %v7154_v26 = vld [vmem:[#allocation3 + $0x1ec] sm:$0xf0] }
  0x7c   : > { %1698 = vmatpush.bf16.msra.mxu1 %v5188_v37  ;;  %v7233_v37 = vld [vmem:[#allocation5 + $0x6c] sm:$0xf]  ;;  %v5445_v5 = vld [vmem:[#allocation5 + $0x338] sm:$0xf0]  ;;  %v5320_v10 = vor.u32 %v7289_v2, %v5317_v3  ;;  %v5739_v63 = vld [vmem:[#allocation3 + $0x180] sm:$0xf] }
  0x7d   : > { %1711 = vmatpush.bf16.msra.mxu2 %v5316_v38  ;;  %v5093_v38 = vld [vmem:[#allocation5 + $0x78] sm:$0xf0]  ;;  %v7285_v13 = vld [vmem:[#allocation5 + $0x20c] sm:$0xf]  ;;  %v5448_v14 = vor.u32 %v7321_v4, %v5445_v5  ;;  %v5867_v1 = vld [vmem:[#allocation3 + $0x280] sm:$0xf] }
  0x7e   : > { %1724 = vmatpush.bf16.msra.mxu3 %v5444_v42  ;;  %v7297_v42 = vld [vmem:[#allocation5 + $0x26c] sm:$0xf]  ;;  %v5096_v46 = vor.u32 %v7233_v37, %v5093_v38  ;;  %v5301_v15 = vld [vmem:[#allocation5 + $0x218] sm:$0xf0]  ;;  %v5643_v37 = vld [vmem:[#allocation3 + $0xc0] sm:$0xf] }
  0x7f   : > { %1686 = vmatpush.bf16.msra.mxu0 %v5044_v49  ;;  %v5352_v48 = vor.u32 %v7297_v42, %v5349_v43  ;;  %v7229_v49 = vld [vmem:[#allocation5 + $0x4c] sm:$0xf]  ;;  %v5429_v17 = vld [vmem:[#allocation5 + $0x318] sm:$0xf0]  ;;  %v5304_v30 = vor.u32 %v7285_v13, %v5301_v15  ;;  %v7118_v38 = vld [vmem:[#allocation3 + $0xcc] sm:$0xf0] }
  0x80   : > { %1699 = vmatpush.bf16.msra.mxu1 %v5172_v53  ;;  %v5205_v53 = vld [vmem:[#allocation5 + $0x158] sm:$0xf0]  ;;  %v7317_v16 = vld [vmem:[#allocation5 + $0x30c] sm:$0xf]  ;;  %v5899_v42 = vld [vmem:[#allocation3 + $0x2c0] sm:$0xf] }
  0x81   : > { %1712 = vmatpush.bf16.msra.mxu2 %v5300_v54  ;;  %v7293_v54 = vld [vmem:[#allocation5 + $0x24c] sm:$0xf]  ;;  %v5432_v33 = vor.u32 %v7317_v16, %v5429_v17  ;;  %v7182_v43 = vld [vmem:[#allocation3 + $0x2cc] sm:$0xf0]  ;;  %v5995_v3 = vld [vmem:[#allocation3 + $0x380] sm:$0xf] }
  0x82   : > { %1725 = vmatpush.bf16.msra.mxu3 %v5428_v57  ;;  %1687 = vmatmul.bf16.vlgmr.msra.gmra.mxu0 %v7982_v19  ;;  %v5461_v57 = vld [vmem:[#allocation5 + $0x358] sm:$0xf0]  ;;  %v7174_v2 = vld [vmem:[#allocation3 + $0x28c] sm:$0xf0]  ;;  %v5595_v5 = vld [vmem:[#allocation3 + $0x60] sm:$0xf] }
  0x83   : > { %1731 = vmatpush.bf16.msrb.mxu0 %v5160_v58  ;;  %1700 = vmatmul.bf16.vlgmr.msra.gmra.mxu1 %v7986_v22  ;;  %v5080_v58 = vor.u32 %v7229_v49, %v5077_v50  ;;  %v5627_v49 = vld [vmem:[#allocation3 + $0xa0] sm:$0xf]  ;;  %v7114_v50 = vld [vmem:[#allocation3 + $0xac] sm:$0xf0] }
  0x84   : > { %1744 = vmatpush.bf16.msrb.mxu1 %v5288_v59  ;;  %1713 = vmatmul.bf16.vlgmr.msra.gmra.mxu2 %v7980_v18  ;;  %v5208_v59 = vor.u32 %v7261_v51, %v5205_v53  ;;  %v5755_v51 = vld [vmem:[#allocation3 + $0x1a0] sm:$0xf]  ;;  %v7146_v53 = vld [vmem:[#allocation3 + $0x1ac] sm:$0xf0] }
  0x85   : > { %1757 = vmatpush.bf16.msrb.mxu2 %v5416_v60  ;;  %1726 = vmatmul.bf16.vlgmr.msra.gmra.mxu3 %v7984_v20  ;;  %v5336_v60 = vor.u32 %v7293_v54, %v5333_v55  ;;  %v5883_v54 = vld [vmem:[#allocation3 + $0x2a0] sm:$0xf]  ;;  %v7178_v55 = vld [vmem:[#allocation3 + $0x2ac] sm:$0xf0] }
  0x86   : > { %1770 = vmatpush.bf16.msrb.mxu3 %v5544_v0  ;;  %v5464_v0 = vor.u32 %v7325_v56, %v5461_v57  ;;  %v6011_v56 = vld [vmem:[#allocation3 + $0x3a0] sm:$0xf]  ;;  %v7210_v57 = vld [vmem:[#allocation3 + $0x3ac] sm:$0xf0] }
  0x87   : > { %1732 = vmatpush.bf16.msrb.mxu0 %v5144_v6  ;;  %v5064_v6 = vor.u32 %v7225_v61, %v5061_v62  ;;  %v5611_v61 = vld [vmem:[#allocation3 + $0x80] sm:$0xf]  ;;  %v7110_v62 = vld [vmem:[#allocation3 + $0x8c] sm:$0xf0] }
  0x88   : > { %1745 = vmatpush.bf16.msrb.mxu1 %v5272_v7  ;;  %v7221_v7 = vld [vmem:[#allocation5 + $0xc] sm:$0xf]  ;;  %v7202_v13 = vld [vmem:[#allocation3 + $0x36c] sm:$0xf0]  ;;  %v5579_v17 = vld [vmem:[#allocation3 + $0x40] sm:$0xf] }
  0x89   : > { %1758 = vmatpush.bf16.msrb.mxu2 %v5400_v8  ;;  %v5045_v8 = vld [vmem:[#allocation5 + $0x18] sm:$0xf0] }
  0x8a   : > { %1771 = vmatpush.bf16.msrb.mxu3 %v5528_v12  ;;  %v5173_v12 = vld [vmem:[#allocation5 + $0x118] sm:$0xf0]  ;;  %v5048_v25 = vor.u32 %v7221_v7, %v5045_v8  ;;  %v5723_v7 = vld [vmem:[#allocation3 + $0x160] sm:$0xf] }
  0x8b   : > { %1733 = vmatpush.bf16.msrb.mxu0 %v5128_v21  ;;  %v5659_v21 = vld [vmem:[#allocation3 + $0xe0] sm:$0xf]  ;;  %v5176_v29 = vor.u32 %v7253_v11, %v5173_v12  ;;  %v7170_v11 = vld [vmem:[#allocation3 + $0x26c] sm:$0xf0] }
  0x8c   : > { %1746 = vmatpush.bf16.msrb.mxu1 %v5256_v23  ;;  %v7122_v23 = vld [vmem:[#allocation3 + $0xec] sm:$0xf0]  ;;  %v5979_v12 = vld [vmem:[#allocation3 + $0x360] sm:$0xf] }
  0x8d   : > { %1759 = vmatpush.bf16.msrb.mxu2 %v5384_v24  ;;  %v5787_v24 = vld [vmem:[#allocation3 + $0x1e0] sm:$0xf] }
  0x8e   : > { %1772 = vmatpush.bf16.msrb.mxu3 %v5512_v28  ;;  %v7186_v28 = vld [vmem:[#allocation3 + $0x2ec] sm:$0xf0] }
  0x8f   : > { %1734 = vmatpush.bf16.msrb.mxu0 %v5112_v34  ;;  %v5660_v34 = vor.u32 %v7122_v23, %v5659_v21  ;;  %v7102_v21 = vld [vmem:[#allocation3 + $0x4c] sm:$0xf0]  ;;  %v5707_v23 = vld [vmem:[#allocation3 + $0x140] sm:$0xf] }
  0x90   : > { %1747 = vmatpush.bf16.msrb.mxu1 %v5240_v35  ;;  %v5788_v35 = vor.u32 %v7154_v26, %v5787_v24  ;;  %v5980_v24 = vor.u32 %v7202_v13, %v5979_v12  ;;  %v5835_v26 = vld [vmem:[#allocation3 + $0x240] sm:$0xf]  ;;  %v5901_v12 = vld [vmem:[#allocation3 + $0x2d0] sm:$0xf0] }
  0x91   : > { %1760 = vmatpush.bf16.msrb.mxu2 %v5368_v36  ;;  %v5916_v36 = vor.u32 %v7186_v28, %v5915_v27  ;;  %v7166_v27 = vld [vmem:[#allocation3 + $0x24c] sm:$0xf0]  ;;  %v5963_v28 = vld [vmem:[#allocation3 + $0x340] sm:$0xf] }
  0x92   : > { %1773 = vmatpush.bf16.msrb.mxu3 %v5496_v40  ;;  %v6044_v40 = vor.u32 %v7218_v32, %v6043_v31  ;;  %v5836_v32 = vor.u32 %v7166_v27, %v5835_v26  ;;  %v5629_v26 = vld [vmem:[#allocation3 + $0xb0] sm:$0xf0]  ;;  %v7144_v27 = vld [vmem:[#allocation3 + $0x1a4] sm:$0xf] }
  0x93   : > { %1735 = vmatpush.bf16.msrb.mxu0 %v5096_v46  ;;  %v5644_v46 = vor.u32 %v7118_v38, %v5643_v37  ;;  %v7130_v37 = vld [vmem:[#allocation3 + $0x12c] sm:$0xf0]  ;;  %v5819_v38 = vld [vmem:[#allocation3 + $0x220] sm:$0xf] }
  0x94   : > { %1748 = vmatpush.bf16.msrb.mxu1 %v5224_v47  ;;  %v5772_v47 = vor.u32 %v7150_v41, %v5771_v39  ;;  %v7162_v39 = vld [vmem:[#allocation3 + $0x22c] sm:$0xf0] }
  0x95   : > { %1761 = vmatpush.bf16.msrb.mxu2 %v5352_v48  ;;  %v5900_v48 = vor.u32 %v7182_v43, %v5899_v42  ;;  %v7194_v41 = vld [vmem:[#allocation3 + $0x32c] sm:$0xf0]  ;;  %v5547_v43 = vld [vmem:[#allocation3] sm:$0xf] }
  0x96   : > { %1774 = vmatpush.bf16.msrb.mxu3 %v5480_v52  ;;  %v6028_v52 = vor.u32 %v7214_v45, %v6027_v44  ;;  %v7094_v44 = vld [vmem:[#allocation3 + $0xc] sm:$0xf0] }
  0x97   : > { %1736 = vmatpush.bf16.msrb.mxu0 %v5080_v58  ;;  %v5628_v58 = vor.u32 %v7114_v50, %v5627_v49  ;;  %v5803_v49 = vld [vmem:[#allocation3 + $0x200] sm:$0xf] }
  0x98   : > { %1749 = vmatpush.bf16.msrb.mxu1 %v5208_v59  ;;  %v5756_v59 = vor.u32 %v7146_v53, %v5755_v51  ;;  %v7158_v51 = vld [vmem:[#allocation3 + $0x20c] sm:$0xf0] }
  0x99   : > { %1762 = vmatpush.bf16.msrb.mxu2 %v5336_v60  ;;  %v5884_v60 = vor.u32 %v7178_v55, %v5883_v54  ;;  %v7190_v53 = vld [vmem:[#allocation3 + $0x30c] sm:$0xf0]  ;;  %v7120_v54 = vld [vmem:[#allocation3 + $0xe4] sm:$0xf]  ;;  %v5661_v55 = vld [vmem:[#allocation3 + $0xf0] sm:$0xf0] }
  0x9a   : > { %1775 = vmatpush.bf16.msrb.mxu3 %v5464_v0  ;;  %v6012_v0 = vor.u32 %v7210_v57, %v6011_v56  ;;  %v7152_v56 = vld [vmem:[#allocation3 + $0x1e4] sm:$0xf]  ;;  %v5548_v57 = vor.u32 %v7094_v44, %v5547_v43  ;;  %v5869_v43 = vld [vmem:[#allocation3 + $0x290] sm:$0xf0] }
  0x9b   : > { %1737 = vmatpush.bf16.msrb.mxu0 %v5064_v6  ;;  %v7106_v6 = vld [vmem:[#allocation3 + $0x6c] sm:$0xf0]  ;;  %v7204_v44 = vld [vmem:[#allocation3 + $0x384] sm:$0xf] }
  0x9c   : > { %1750 = vmatpush.bf16.msrb.mxu1 %v5192_v9  ;;  %v7138_v9 = vld [vmem:[#allocation3 + $0x16c] sm:$0xf0] }
  0x9d   : > { %1763 = vmatpush.bf16.msrb.mxu2 %v5320_v10  ;;  %v5851_v10 = vld [vmem:[#allocation3 + $0x260] sm:$0xf]  ;;  %v5724_v15 = vor.u32 %v7138_v9, %v5723_v7  ;;  %v7148_v7 = vld [vmem:[#allocation3 + $0x1c4] sm:$0xf] }
  0x9e   : > { %1776 = vmatpush.bf16.msrb.mxu3 %v5448_v14  ;;  %v5596_v14 = vor.u32 %v7106_v6, %v5595_v5  ;;  %v5852_v16 = vor.u32 %v7170_v11, %v5851_v10  ;;  %v7116_v5 = vld [vmem:[#allocation3 + $0xc4] sm:$0xf]  ;;  %v5645_v6 = vld [vmem:[#allocation3 + $0xd0] sm:$0xf0] }
  0x9f   : > { %1738 = vmatpush.bf16.msrb.mxu0 %v5048_v25  ;;  %v7134_v25 = vld [vmem:[#allocation3 + $0x14c] sm:$0xf0]  ;;  %v5773_v10 = vld [vmem:[#allocation3 + $0x1d0] sm:$0xf0]  ;;  %v7180_v11 = vld [vmem:[#allocation3 + $0x2c4] sm:$0xf] }
  0xa0   : > { %1751 = vmatpush.bf16.msrb.mxu1 %v5176_v29  ;;  %v7198_v29 = vld [vmem:[#allocation3 + $0x34c] sm:$0xf0]  ;;  %v5708_v31 = vor.u32 %v7134_v25, %v5707_v23  ;;  %v5776_v23 = vor.u32 %v7148_v7, %v5773_v10  ;;  %v7112_v25 = vld [vmem:[#allocation3 + $0xa4] sm:$0xf]  ;;  %v5565_v7 = vld [vmem:[#allocation3 + $0x30] sm:$0xf0] }
  0xa1   : > { %1764 = vmatpush.bf16.msrb.mxu2 %v5304_v30  ;;  %v5580_v30 = vor.u32 %v7102_v21, %v5579_v17  ;;  %v5648_v21 = vor.u32 %v7116_v5, %v5645_v6  ;;  %v7096_v6 = vld [vmem:[#allocation3 + $0x24] sm:$0xf] }
  0xa2   : > { %1777 = vmatpush.bf16.msrb.mxu3 %v5432_v33  ;;  %1739 = vmatmul.bf16.vlgmr.msrb.gmra.mxu0 %v7982_v19  ;;  %v7142_v19 = vld [vmem:[#allocation3 + $0x18c] sm:$0xf0]  ;;  %v5563_v33 = vld [vmem:[#allocation3 + $0x20] sm:$0xf] }
  0xa3   : > { %2423 = vmatpush.bf16.msra.mxu0 %v5660_v34  ;;  %1752 = vmatmul.bf16.vlgmr.msrb.gmra.mxu1 %v7986_v22  ;;  %v5612_v22 = vor.u32 %v7110_v62, %v5611_v61  ;;  %v5740_v4 = vor.u32 %v7142_v19, %v5739_v63  ;;  %v7098_v34 = vld [vmem:[#allocation3 + $0x2c] sm:$0xf0]  ;;  %v5804_v62 = vor.u32 %v7158_v51, %v5803_v49  ;;  %v7216_v63 = vld [vmem:[#allocation3 + $0x3e4] sm:$0xf] }
  0xa4   : > { %2436 = vmatpush.bf16.msra.mxu1 %v5788_v35  ;;  %1765 = vmatmul.bf16.vlgmr.msrb.gmra.mxu2 %v7980_v18  ;;  %v7206_v18 = vld [vmem:[#allocation3 + $0x38c] sm:$0xf0]  ;;  %v5691_v35 = vld [vmem:[#allocation3 + $0x120] sm:$0xf]  ;;  %v5564_v42 = vor.u32 %v7098_v34, %v5563_v33  ;;  %v6013_v33 = vld [vmem:[#allocation3 + $0x3b0] sm:$0xf0]  ;;  %v5632_v34 = vor.u32 %v7112_v25, %v5629_v26  ;;  %v5568_v25 = vor.u32 %v7096_v6, %v5565_v7 }
  0xa5   : > { %2449 = vmatpush.bf16.msra.mxu2 %v5916_v36  ;;  %1778 = vmatmul.bf16.vlgmr.msrb.gmra.mxu3 %v7984_v20  ;;  %v5868_v20 = vor.u32 %v7174_v2, %v5867_v1  ;;  %v5996_v8 = vor.u32 %v7206_v18, %v5995_v3  ;;  %v5964_v36 = vor.u32 %v7198_v29, %v5963_v28  ;;  %v643_v19 = vld [vmem:[%s8011_s20] sm:$0xff]  ;;  %v645_v3 = vld [vmem:[%s8011_s20 + $0x10] sm:$0xff]  ;;  %v644_v18 = vld [vmem:[%s8011_s20 + $0x8] sm:$0xff] }
  0xa6   : > { %2462 = vmatpush.bf16.msra.mxu3 %v6044_v40  ;;  %v5947_v40 = vld [vmem:[#allocation3 + $0x320] sm:$0xf]  ;;  %v5692_v45 = vor.u32 %v7130_v37, %v5691_v35  ;;  %v5664_v2 = vor.u32 %v7120_v54, %v5661_v55  ;;  %v8017_v9 = vpack.c.bf16 %v643_v19, %v643_v19  ;;  %v8019_v13 = vpack.c.bf16 %v645_v3, %v645_v3  ;;  %v5757_v29 = vld [vmem:[#allocation3 + $0x1b0] sm:$0xf0]  ;;  %v7108_v37 = vld [vmem:[#allocation3 + $0x84] sm:$0xf] }
  0xa7   : > { %2424 = vmatpush.bf16.msra.mxu0 %v5644_v46  ;;  %v5820_v46 = vor.u32 %v7162_v39, %v5819_v38  ;;  %v5948_v50 = vor.u32 %v7194_v41, %v5947_v40  ;;  %v5760_v35 = vor.u32 %v7144_v27, %v5757_v29  ;;  %v5613_v38 = vld [vmem:[#allocation3 + $0x90] sm:$0xf0]  ;;  %v7140_v39 = vld [vmem:[#allocation3 + $0x184] sm:$0xf]  ;;  %v5763_v6 = vld [vmem:[#allocation3 + $0x1a8] sm:$0xf] }
  0xa8   : > { %2437 = vmatpush.bf16.msra.mxu1 %v5772_v47  ;;  %v5675_v47 = vld [vmem:[#allocation3 + $0x100] sm:$0xf]  ;;  %v5741_v41 = vld [vmem:[#allocation3 + $0x190] sm:$0xf0]  ;;  %v7104_v49 = vld [vmem:[#allocation3 + $0x64] sm:$0xf] }
  0xa9   : > { %2450 = vmatpush.bf16.msra.mxu2 %v5900_v48  ;;  %v7126_v48 = vld [vmem:[#allocation3 + $0x10c] sm:$0xf0]  ;;  %v7136_v51 = vld [vmem:[#allocation3 + $0x164] sm:$0xf]  ;;  %v5853_v55 = vld [vmem:[#allocation3 + $0x270] sm:$0xf0] }
  0xaa   : > { %2463 = vmatpush.bf16.msra.mxu3 %v6028_v52  ;;  %v5931_v52 = vld [vmem:[#allocation3 + $0x300] sm:$0xf]  ;;  %v5676_v61 = vor.u32 %v7126_v48, %v5675_v47  ;;  %v5744_v47 = vor.u32 %v7140_v39, %v5741_v41  ;;  %v7168_v54 = vld [vmem:[#allocation3 + $0x264] sm:$0xf]  ;;  %v5709_v19 = vld [vmem:[#allocation3 + $0x150] sm:$0xf0] }
  0xab   : > { %2425 = vmatpush.bf16.msra.mxu0 %v5628_v58  ;;  %v5789_v58 = vld [vmem:[#allocation3 + $0x1f0] sm:$0xf0]  ;;  %v5932_v1 = vor.u32 %v7190_v53, %v5931_v52  ;;  %v7196_v3 = vld [vmem:[#allocation3 + $0x344] sm:$0xf]  ;;  %v7123_v41 = vld [vmem:[#allocation3 + $0xf4] sm:$0xf0] }
  0xac   : > { %2438 = vmatpush.bf16.msra.mxu1 %v5756_v59  ;;  %v7184_v59 = vld [vmem:[#allocation3 + $0x2e4] sm:$0xf]  ;;  %v5725_v53 = vld [vmem:[#allocation3 + $0x170] sm:$0xf0] }
  0xad   : > { %2451 = vmatpush.bf16.msra.mxu2 %v5884_v60  ;;  %v5917_v60 = vld [vmem:[#allocation3 + $0x2f0] sm:$0xf0]  ;;  %v7092_v26 = vld [vmem:[#allocation3 + $0x4] sm:$0xf] }
  0xae   : > { %2464 = vmatpush.bf16.msra.mxu3 %v6012_v0  ;;  %v6045_v0 = vld [vmem:[#allocation3 + $0x3f0] sm:$0xf0] }
  0xaf   : > { %2426 = vmatpush.bf16.msra.mxu0 %v5612_v22  ;;  %v646_v22 = vld [vmem:[%s8011_s20 + $0x18] sm:$0xff]  ;;  %v5549_v27 = vld [vmem:[#allocation3 + $0x10] sm:$0xf0] }
  0xb0   : > { %2439 = vmatpush.bf16.msra.mxu1 %v5740_v4  ;;  %v5792_v4 = vor.u32 %v7152_v56, %v5789_v58  ;;  %v8023_v17 = vpack.c.bf16 %v646_v22, %v646_v22  ;;  %v7200_v56 = vld [vmem:[#allocation3 + $0x364] sm:$0xf] }
  0xb1   : > { %2452 = vmatpush.bf16.msra.mxu2 %v5868_v20  ;;  %v5920_v20 = vor.u32 %v7184_v59, %v5917_v60  ;;  %v5728_v59 = vor.u32 %v7136_v51, %v5725_v53  ;;  %v5856_v60 = vor.u32 %v7168_v54, %v5853_v55  ;;  %v6051_v51 = vld [vmem:[#allocation3 + $0x3e8] sm:$0xf] }
  0xb2   : > { %2465 = vmatpush.bf16.msra.mxu3 %v5996_v8  ;;  %v6048_v8 = vor.u32 %v7216_v63, %v6045_v0  ;;  %v7132_v63 = vld [vmem:[#allocation3 + $0x144] sm:$0xf] }
  0xb3   : > { %2427 = vmatpush.bf16.msra.mxu0 %v5596_v14  ;;  %v8021_v14 = vpack.c.bf16 %v644_v18, %v644_v18  ;;  %v5965_v18 = vld [vmem:[#allocation3 + $0x350] sm:$0xf0] }
  0xb4   : > { %2440 = vmatpush.bf16.msra.mxu1 %v5724_v15  ;;  %v7212_v15 = vld [vmem:[#allocation3 + $0x3c4] sm:$0xf] }
  0xb5   : > { %2453 = vmatpush.bf16.msra.mxu2 %v5852_v16  ;;  %v6029_v16 = vld [vmem:[#allocation3 + $0x3d0] sm:$0xf0] }
  0xb6   : > { %2466 = vmatpush.bf16.msra.mxu3 %v5980_v24  ;;  %v5904_v24 = vor.u32 %v7180_v11, %v5901_v12  ;;  %v6032_v28 = vor.u32 %v7212_v15, %v6029_v16  ;;  %v5968_v11 = vor.u32 %v7196_v3, %v5965_v18  ;;  %v5693_v12 = vld [vmem:[#allocation3 + $0x130] sm:$0xf0]  ;;  %v7160_v15 = vld [vmem:[#allocation3 + $0x224] sm:$0xf] }
  0xb7   : > { %2428 = vmatpush.bf16.msra.mxu0 %v5580_v30  ;;  %v7176_v30 = vld [vmem:[#allocation3 + $0x2a4] sm:$0xf]  ;;  %v5821_v16 = vld [vmem:[#allocation3 + $0x230] sm:$0xf0] }
  0xb8   : > { %2441 = vmatpush.bf16.msra.mxu1 %v5708_v31  ;;  %v5885_v31 = vld [vmem:[#allocation3 + $0x2b0] sm:$0xf0]  ;;  %v5824_v29 = vor.u32 %v7160_v15, %v5821_v16  ;;  %v7211_v15 = vld [vmem:[#allocation3 + $0x3b4] sm:$0xf0] }
  0xb9   : > { %2454 = vmatpush.bf16.msra.mxu2 %v5836_v32  ;;  %v7208_v32 = vld [vmem:[#allocation3 + $0x3a4] sm:$0xf] }
  0xba   : > { %2467 = vmatpush.bf16.msra.mxu3 %v5964_v36  ;;  %v5888_v36 = vor.u32 %v7176_v30, %v5885_v31  ;;  %v6016_v40 = vor.u32 %v7208_v32, %v6013_v33  ;;  %v7124_v30 = vld [vmem:[#allocation3 + $0x104] sm:$0xf]  ;;  %v5677_v31 = vld [vmem:[#allocation3 + $0x110] sm:$0xf0] }
  0xbb   : > { %2429 = vmatpush.bf16.msra.mxu0 %v5564_v42  ;;  %v7172_v42 = vld [vmem:[#allocation3 + $0x284] sm:$0xf] }
  0xbc   : > { %2442 = vmatpush.bf16.msra.mxu1 %v5692_v45  ;;  %v5997_v45 = vld [vmem:[#allocation3 + $0x390] sm:$0xf0]  ;;  %v5872_v48 = vor.u32 %v7172_v42, %v5869_v43  ;;  %v7156_v32 = vld [vmem:[#allocation3 + $0x204] sm:$0xf]  ;;  %v5795_v42 = vld [vmem:[#allocation3 + $0x1e8] sm:$0xf]  ;;  %v5552_v43 = vor.u32 %v7092_v26, %v5549_v27 }
  0xbd   : > { %2455 = vmatpush.bf16.msra.mxu2 %v5820_v46  ;;  %v5616_v46 = vor.u32 %v7108_v37, %v5613_v38  ;;  %v6000_v52 = vor.u32 %v7204_v44, %v5997_v45  ;;  %v5933_v37 = vld [vmem:[#allocation3 + $0x310] sm:$0xf0]  ;;  %v7155_v44 = vld [vmem:[#allocation3 + $0x1f4] sm:$0xf0]  ;;  %v5923_v45 = vld [vmem:[#allocation3 + $0x2e8] sm:$0xf] }
  0xbe   : > { %2468 = vmatpush.bf16.msra.mxu3 %v5948_v50  ;;  %v5597_v50 = vld [vmem:[#allocation3 + $0x70] sm:$0xf0]  ;;  %v5747_v26 = vld [vmem:[#allocation3 + $0x188] sm:$0xf] }
  0xbf   : > { %2430 = vmatpush.bf16.msra.mxu0 %v5548_v57  ;;  %v5981_v57 = vld [vmem:[#allocation3 + $0x370] sm:$0xf0]  ;;  %v5600_v58 = vor.u32 %v7104_v49, %v5597_v50  ;;  %v5680_v49 = vor.u32 %v7124_v30, %v5677_v31  ;;  %v7175_v30 = vld [vmem:[#allocation3 + $0x294] sm:$0xf0]  ;;  %v6003_v31 = vld [vmem:[#allocation3 + $0x388] sm:$0xf] }
  0xc0   : > { %2443 = vmatpush.bf16.msra.mxu1 %v5676_v61  ;;  %v7100_v61 = vld [vmem:[#allocation3 + $0x44] sm:$0xf]  ;;  %v5984_v0 = vor.u32 %v7200_v56, %v5981_v57  ;;  %v5796_v56 = vor.u32 %v7155_v44, %v5795_v42  ;;  %v7139_v42 = vld [vmem:[#allocation3 + $0x174] sm:$0xf0] }
  0xc1   : > { %2456 = vmatpush.bf16.msra.mxu2 %v5804_v62  ;;  %v5581_v62 = vld [vmem:[#allocation3 + $0x50] sm:$0xf0]  ;;  %v7171_v44 = vld [vmem:[#allocation3 + $0x274] sm:$0xf0] }
  0xc2   : > { %2469 = vmatpush.bf16.msra.mxu3 %v5932_v1  ;;  %2431 = vmatmul.bf16.vlgmr.msra.gmra.mxu0 %v8017_v9  ;;  %v7164_v1 = vld [vmem:[#allocation3 + $0x244] sm:$0xf]  ;;  %v5584_v22 = vor.u32 %v7100_v61, %v5581_v62  ;;  %v7151_v62 = vld [vmem:[#allocation3 + $0x1d4] sm:$0xf0] }
  0xc3   : > { %2475 = vmatpush.bf16.msrb.mxu0 %v5664_v2  ;;  %2444 = vmatmul.bf16.vlgmr.msra.gmra.mxu1 %v8021_v14  ;;  %v5837_v2 = vld [vmem:[#allocation3 + $0x250] sm:$0xf0] }
  0xc4   : > { %2488 = vmatpush.bf16.msrb.mxu1 %v5792_v4  ;;  %2457 = vmatmul.bf16.vlgmr.msra.gmra.mxu2 %v8019_v13  ;;  %v5840_v5 = vor.u32 %v7164_v1, %v5837_v2  ;;  %v1597_v10 = vpop.f32.mrf.mxu1  ;;  %v7215_v1 = vld [vmem:[#allocation3 + $0x3d4] sm:$0xf0] }
  0xc5   : > { %2501 = vmatpush.bf16.msrb.mxu2 %v5920_v20  ;;  %2470 = vmatmul.bf16.vlgmr.msra.gmra.mxu3 %v8023_v17  ;;  %v1584_v4 = vpop.f32.mrf.mxu0  ;;  %v5712_v20 = vor.u32 %v7132_v63, %v5709_v19  ;;  %v5907_v63 = vld [vmem:[#allocation3 + $0x2c8] sm:$0xf] }
  0xc6   : > { %2514 = vmatpush.bf16.msrb.mxu3 %v6048_v8  ;;  %v7128_v8 = vld [vmem:[#allocation3 + $0x124] sm:$0xf]  ;;  %v6035_v19 = vld [vmem:[#allocation3 + $0x3c8] sm:$0xf] }
  0xc7   : > { %2476 = vmatpush.bf16.msrb.mxu0 %v5648_v21  ;;  %v1598_v21 = vadd.f32 %v1597_v10, %v1584_v4  ;;  %v6036_v7 = vor.u32 %v7215_v1, %v6035_v19  ;;  %v5891_v10 = vld [vmem:[#allocation3 + $0x2a8] sm:$0xf] }
  0xc8   : > { %2489 = vmatpush.bf16.msrb.mxu1 %v5776_v23  ;;  %v7192_v23 = vld [vmem:[#allocation3 + $0x324] sm:$0xf]  ;;  %v1623_v39 = vpop.f32.mrf.mxu3 }
  0xc9   : > { %2502 = vmatpush.bf16.msrb.mxu2 %v5904_v24  ;;  %v5949_v24 = vld [vmem:[#allocation3 + $0x330] sm:$0xf0]  ;;  %v1610_v33 = vpop.f32.mrf.mxu2 }
  0xca   : > { %2515 = vmatpush.bf16.msrb.mxu3 %v6032_v28  ;;  %v5696_v28 = vor.u32 %v7128_v8, %v5693_v12  ;;  %v1611_v38 = vadd.f32 %v1610_v33, %v1598_v21  ;;  %v7147_v8 = vld [vmem:[#allocation3 + $0x1b4] sm:$0xf0]  ;;  %v6019_v12 = vld [vmem:[#allocation3 + $0x3a8] sm:$0xf] }
  0xcb   : > { %2477 = vmatpush.bf16.msrb.mxu0 %v5632_v34  ;;  %v5952_v34 = vor.u32 %v7192_v23, %v5949_v24  ;;  %v5764_v21 = vor.u32 %v7147_v8, %v5763_v6  ;;  %v5619_v24 = vld [vmem:[#allocation3 + $0x88] sm:$0xf]  ;;  %v6020_v27 = vor.u32 %v7211_v15, %v6019_v12  ;;  %v7131_v6 = vld [vmem:[#allocation3 + $0x134] sm:$0xf0] }
  0xcc   : > { %2490 = vmatpush.bf16.msrb.mxu1 %v5760_v35  ;;  %v5805_v35 = vld [vmem:[#allocation3 + $0x210] sm:$0xf0]  ;;  %v1599_v53 = vpop.f32.mrf.mxu1  ;;  %v7163_v8 = vld [vmem:[#allocation3 + $0x234] sm:$0xf0]  ;;  %v5555_v15 = vld [vmem:[#allocation3 + $0x8] sm:$0xf] }
  0xcd   : > { %2503 = vmatpush.bf16.msrb.mxu2 %v5888_v36  ;;  %v7188_v36 = vld [vmem:[#allocation3 + $0x304] sm:$0xf]  ;;  %v5808_v50 = vor.u32 %v7156_v32, %v5805_v35  ;;  %v7207_v32 = vld [vmem:[#allocation3 + $0x394] sm:$0xf0] }
  0xce   : > { %2516 = vmatpush.bf16.msrb.mxu3 %v6016_v40  ;;  %v5667_v40 = vld [vmem:[#allocation3 + $0xe8] sm:$0xf]  ;;  %v5936_v54 = vor.u32 %v7188_v36, %v5933_v37  ;;  %v7103_v53 = vld [vmem:[#allocation3 + $0x54] sm:$0xf0] }
  0xcf   : > { %2478 = vmatpush.bf16.msrb.mxu0 %v5616_v46  ;;  %v7187_v46 = vld [vmem:[#allocation3 + $0x2f4] sm:$0xf0]  ;;  %v5668_v55 = vor.u32 %v7123_v41, %v5667_v40  ;;  %v5603_v37 = vld [vmem:[#allocation3 + $0x68] sm:$0xf]  ;;  %v6004_v41 = vor.u32 %v7207_v32, %v6003_v31 }
  0xd0   : > { %2491 = vmatpush.bf16.msrb.mxu1 %v5744_v47  ;;  %v8029_v47 = vadd.f32 %v1623_v39, %v1611_v38  ;;  %v5924_v57 = vor.u32 %v7187_v46, %v5923_v45  ;;  %v1625_v18 = vpop.f32.mrf.mxu3  ;;  %v7107_v38 = vld [vmem:[#allocation3 + $0x74] sm:$0xf0]  ;;  %v5731_v39 = vld [vmem:[#allocation3 + $0x168] sm:$0xf] }
  0xd1   : > { %2504 = vmatpush.bf16.msrb.mxu2 %v5872_v48  ;;  %v1586_v48 = vpop.f32.mrf.mxu0  ;;  %v1612_v2 = vpop.f32.mrf.mxu2  ;;  %v5987_v46 = vld [vmem:[#allocation3 + $0x368] sm:$0xf]  ;;  %v7191_v31 = vld [vmem:[#allocation3 + $0x314] sm:$0xf0] }
  0xd2   : > { %2517 = vmatpush.bf16.msrb.mxu3 %v6000_v52  ;;  %v7219_v52 = vld [vmem:[#allocation3 + $0x3f4] sm:$0xf0]  ;;  %v5571_v18 = vld [vmem:[#allocation3 + $0x28] sm:$0xf] }
  0xd3   : > { %2479 = vmatpush.bf16.msrb.mxu0 %v5600_v58  ;;  %v5651_v58 = vld [vmem:[#allocation3 + $0xc8] sm:$0xf]  ;;  %v6052_v61 = vor.u32 %v7219_v52, %v6051_v51  ;;  %v7203_v48 = vld [vmem:[#allocation3 + $0x374] sm:$0xf0] }
  0xd4   : > { %2492 = vmatpush.bf16.msrb.mxu1 %v5728_v59  ;;  %v7119_v59 = vld [vmem:[#allocation3 + $0xd4] sm:$0xf0]  ;;  %v5587_v52 = vld [vmem:[#allocation3 + $0x48] sm:$0xf] }
  0xd5   : > { %2505 = vmatpush.bf16.msrb.mxu2 %v5856_v60  ;;  %v5779_v60 = vld [vmem:[#allocation3 + $0x1c8] sm:$0xf]  ;;  %v5652_v3 = vor.u32 %v7119_v59, %v5651_v58  ;;  %v7167_v59 = vld [vmem:[#allocation3 + $0x254] sm:$0xf0] }
  0xd6   : > { %2518 = vmatpush.bf16.msrb.mxu3 %v5984_v0  ;;  %v7183_v0 = vld [vmem:[#allocation3 + $0x2d4] sm:$0xf0]  ;;  %v5843_v58 = vld [vmem:[#allocation3 + $0x248] sm:$0xf] }
  0xd7   : > { %2480 = vmatpush.bf16.msrb.mxu0 %v5584_v22  ;;  %v5780_v22 = vor.u32 %v7151_v62, %v5779_v60  ;;  %v5908_v4 = vor.u32 %v7183_v0, %v5907_v63  ;;  %v5971_v62 = vld [vmem:[#allocation3 + $0x348] sm:$0xf]  ;;  %v7199_v63 = vld [vmem:[#allocation3 + $0x354] sm:$0xf0]  ;;  %v5588_v0 = vor.u32 %v7103_v53, %v5587_v52  ;;  %v5781_v53 = vld [vmem:[#allocation3 + $0x1d8] sm:$0xf0] }
  0xd8   : > { %2493 = vmatpush.bf16.msrb.mxu1 %v5712_v20  ;;  %v5635_v20 = vld [vmem:[#allocation3 + $0xa8] sm:$0xf] }
  0xd9   : > { %2506 = vmatpush.bf16.msrb.mxu2 %v5840_v5  ;;  %v7115_v5 = vld [vmem:[#allocation3 + $0xb4] sm:$0xf0] }
  0xda   : > { %2519 = vmatpush.bf16.msrb.mxu3 %v5968_v11  ;;  %v7179_v11 = vld [vmem:[#allocation3 + $0x2b4] sm:$0xf0]  ;;  %v5636_v16 = vor.u32 %v7115_v5, %v5635_v20  ;;  %v5972_v5 = vor.u32 %v7199_v63, %v5971_v62  ;;  %v5637_v62 = vld [vmem:[#allocation3 + $0xb8] sm:$0xf0]  ;;  %v7145_v63 = vld [vmem:[#allocation3 + $0x1ac] sm:$0xf] }
  0xdb   : > { %2481 = vmatpush.bf16.msrb.mxu0 %v5568_v25  ;;  %v5892_v23 = vor.u32 %v7179_v11, %v5891_v10  ;;  %v7111_v25 = vld [vmem:[#allocation3 + $0x94] sm:$0xf0]  ;;  %v5955_v10 = vld [vmem:[#allocation3 + $0x328] sm:$0xf] }
  0xdc   : > { %2494 = vmatpush.bf16.msrb.mxu1 %v5696_v28  ;;  %v7143_v28 = vld [vmem:[#allocation3 + $0x194] sm:$0xf0]  ;;  %v5620_v33 = vor.u32 %v7111_v25, %v5619_v24  ;;  %v5683_v24 = vld [vmem:[#allocation3 + $0x108] sm:$0xf] }
  0xdd   : > { %2507 = vmatpush.bf16.msrb.mxu2 %v5824_v29  ;;  %v5875_v29 = vld [vmem:[#allocation3 + $0x288] sm:$0xf]  ;;  %v5748_v35 = vor.u32 %v7143_v28, %v5747_v26  ;;  %v7195_v11 = vld [vmem:[#allocation3 + $0x334] sm:$0xf0] }
  0xde   : > { %2520 = vmatpush.bf16.msrb.mxu3 %v5952_v34  ;;  %v5876_v36 = vor.u32 %v7175_v30, %v5875_v29  ;;  %v7127_v25 = vld [vmem:[#allocation3 + $0x114] sm:$0xf0]  ;;  %v5811_v26 = vld [vmem:[#allocation3 + $0x208] sm:$0xf]  ;;  %v5956_v28 = vor.u32 %v7195_v11, %v5955_v10  ;;  %v5749_v11 = vld [vmem:[#allocation3 + $0x198] sm:$0xf0] }
  0xdf   : > { %2482 = vmatpush.bf16.msrb.mxu0 %v5552_v43  ;;  %v1636_v34 = vpop.f32.mrf.mxu0  ;;  %v5859_v43 = vld [vmem:[#allocation3 + $0x268] sm:$0xf]  ;;  %v7159_v29 = vld [vmem:[#allocation3 + $0x214] sm:$0xf0] }
  0xe0   : > { %2495 = vmatpush.bf16.msrb.mxu1 %v5680_v49  ;;  %v1649_v40 = vpop.f32.mrf.mxu1  ;;  %v5604_v49 = vor.u32 %v7107_v38, %v5603_v37  ;;  %v5860_v51 = vor.u32 %v7171_v44, %v5859_v43  ;;  %v5939_v30 = vld [vmem:[#allocation3 + $0x308] sm:$0xf]  ;;  %v5797_v37 = vld [vmem:[#allocation3 + $0x1f8] sm:$0xf0]  ;;  %v7185_v38 = vld [vmem:[#allocation3 + $0x2ec] sm:$0xf] }
  0xe1   : > { %2508 = vmatpush.bf16.msrb.mxu2 %v5808_v50  ;;  %v1650_v45 = vadd.f32 %v1649_v40, %v1636_v34  ;;  %v5732_v50 = vor.u32 %v7139_v42, %v5731_v39  ;;  %v5669_v34 = vld [vmem:[#allocation3 + $0xf8] sm:$0xf0]  ;;  %v5684_v40 = vor.u32 %v7127_v25, %v5683_v24  ;;  %v7217_v42 = vld [vmem:[#allocation3 + $0x3ec] sm:$0xf]  ;;  %v5940_v44 = vor.u32 %v7191_v31, %v5939_v30 }
  0xe2   : > { %2521 = vmatpush.bf16.msrb.mxu3 %v5936_v54  ;;  %2483 = vmatmul.bf16.vlgmr.msrb.gmra.mxu0 %v8017_v9  ;;  %v5715_v54 = vld [vmem:[#allocation3 + $0x148] sm:$0xf]  ;;  %v5925_v39 = vld [vmem:[#allocation3 + $0x2f8] sm:$0xf0] }
  0xe3   : > { %2527 = vmatpush.bf16.msra.mxu0 %v5668_v55  ;;  %2496 = vmatmul.bf16.vlgmr.msrb.gmra.mxu1 %v8021_v14  ;;  %v6053_v43 = vld [vmem:[#allocation3 + $0x3f8] sm:$0xf0] }
  0xe4   : > { %2540 = vmatpush.bf16.msra.mxu1 %v5796_v56  ;;  %2509 = vmatmul.bf16.vlgmr.msrb.gmra.mxu2 %v8019_v13  ;;  %v5988_v56 = vor.u32 %v7203_v48, %v5987_v46  ;;  %v5928_v48 = vor.u32 %v7185_v38, %v5925_v39  ;;  %v6056_v52 = vor.u32 %v7217_v42, %v6053_v43  ;;  %v5589_v42 = vld [vmem:[#allocation3 + $0x58] sm:$0xf0]  ;;  %v7133_v43 = vld [vmem:[#allocation3 + $0x14c] sm:$0xf] }
  0xe5   : > { %2553 = vmatpush.bf16.msra.mxu2 %v5924_v57  ;;  %2522 = vmatmul.bf16.vlgmr.msrb.gmra.mxu3 %v8023_v17  ;;  %v7135_v57 = vld [vmem:[#allocation3 + $0x154] sm:$0xf0] }
  0xe6   : > { %2566 = vmatpush.bf16.msra.mxu3 %v6052_v61  ;;  %v5716_v2 = vor.u32 %v7135_v57, %v5715_v54  ;;  %v7181_v54 = vld [vmem:[#allocation3 + $0x2cc] sm:$0xf]  ;;  %v6037_v57 = vld [vmem:[#allocation3 + $0x3d8] sm:$0xf0] }
  0xe7   : > { %2528 = vmatpush.bf16.msra.mxu0 %v5652_v3  ;;  %v1662_v55 = vpop.f32.mrf.mxu2  ;;  %v1638_v1 = vpop.f32.mrf.mxu0  ;;  %v5844_v3 = vor.u32 %v7167_v59, %v5843_v58 }
  0xe8   : > { %2541 = vmatpush.bf16.msra.mxu1 %v5780_v22  ;;  %v1663_v60 = vadd.f32 %v1662_v55, %v1650_v45  ;;  %v1675_v61 = vpop.f32.mrf.mxu3  ;;  %v7099_v22 = vld [vmem:[#allocation3 + $0x34] sm:$0xf0]  ;;  %v1651_v20 = vpop.f32.mrf.mxu1  ;;  %v5909_v55 = vld [vmem:[#allocation3 + $0x2d8] sm:$0xf0] }
  0xe9   : > { %2554 = vmatpush.bf16.msra.mxu2 %v5908_v4  ;;  %v5699_v4 = vld [vmem:[#allocation3 + $0x128] sm:$0xf]  ;;  %v5572_v12 = vor.u32 %v7099_v22, %v5571_v18  ;;  %v5765_v1 = vld [vmem:[#allocation3 + $0x1b8] sm:$0xf0]  ;;  %v7209_v18 = vld [vmem:[#allocation3 + $0x3ac] sm:$0xf] }
  0xea   : > { %2567 = vmatpush.bf16.msra.mxu3 %v6036_v7  ;;  %v8035_v19 = vadd.f32 %v1675_v61, %v1663_v60  ;;  %v5827_v7 = vld [vmem:[#allocation3 + $0x228] sm:$0xf]  ;;  %v5912_v60 = vor.u32 %v7181_v54, %v5909_v55  ;;  %v7113_v61 = vld [vmem:[#allocation3 + $0xac] sm:$0xf]  ;;  %v6021_v22 = vld [vmem:[#allocation3 + $0x3b8] sm:$0xf0]  ;;  %v5768_v20 = vor.u32 %v7145_v63, %v5765_v1 }
  0xeb   : > { %2529 = vmatpush.bf16.msra.mxu0 %v5636_v16  ;;  %v7095_v16 = vld [vmem:[#allocation3 + $0x14] sm:$0xf0]  ;;  %v6024_v10 = vor.u32 %v7209_v18, %v6021_v22  ;;  %v7161_v1 = vld [vmem:[#allocation3 + $0x22c] sm:$0xf]  ;;  %v5957_v18 = vld [vmem:[#allocation3 + $0x338] sm:$0xf0] }
  0xec   : > { %2542 = vmatpush.bf16.msra.mxu1 %v5764_v21  ;;  %v5700_v21 = vor.u32 %v7131_v6, %v5699_v4  ;;  %v5640_v4 = vor.u32 %v7113_v61, %v5637_v62  ;;  %v7109_v6 = vld [vmem:[#allocation3 + $0x8c] sm:$0xf] }
  0xed   : > { %2555 = vmatpush.bf16.msra.mxu2 %v5892_v23  ;;  %v5828_v23 = vor.u32 %v7163_v8, %v5827_v7  ;;  %v5621_v7 = vld [vmem:[#allocation3 + $0x98] sm:$0xf0]  ;;  %v7141_v8 = vld [vmem:[#allocation3 + $0x18c] sm:$0xf] }
  0xee   : > { %2568 = vmatpush.bf16.msra.mxu3 %v6020_v27  ;;  %v5752_v25 = vor.u32 %v7141_v8, %v5749_v11  ;;  %v7129_v61 = vld [vmem:[#allocation3 + $0x12c] sm:$0xf]  ;;  %v5685_v8 = vld [vmem:[#allocation3 + $0x118] sm:$0xf0] }
  0xef   : > { %2530 = vmatpush.bf16.msra.mxu0 %v5620_v33  ;;  %v1664_v27 = vpop.f32.mrf.mxu2  ;;  %v7121_v33 = vld [vmem:[#allocation3 + $0xec] sm:$0xf] }
  0xf0   : > { %2543 = vmatpush.bf16.msra.mxu1 %v5748_v35  ;;  %v1677_v32 = vpop.f32.mrf.mxu3  ;;  %v7153_v35 = vld [vmem:[#allocation3 + $0x1ec] sm:$0xf]  ;;  %v5672_v45 = vor.u32 %v7121_v33, %v5669_v34  ;;  %v5861_v34 = vld [vmem:[#allocation3 + $0x278] sm:$0xf0] }
  0xf1   : > { %2556 = vmatpush.bf16.msra.mxu2 %v5876_v36  ;;  %v5556_v36 = vor.u32 %v7095_v16, %v5555_v15  ;;  %v5800_v46 = vor.u32 %v7153_v35, %v5797_v37  ;;  %v5877_v15 = vld [vmem:[#allocation3 + $0x298] sm:$0xf0]  ;;  %v7205_v16 = vld [vmem:[#allocation3 + $0x38c] sm:$0xf] }
  0xf2   : > { %2569 = vmatpush.bf16.msra.mxu3 %v6004_v41  ;;  %v5812_v41 = vor.u32 %v7159_v29, %v5811_v26  ;;  %v7105_v27 = vld [vmem:[#allocation3 + $0x6c] sm:$0xf]  ;;  %v5733_v32 = vld [vmem:[#allocation3 + $0x178] sm:$0xf0] }
  0xf3   : > { %2531 = vmatpush.bf16.msra.mxu0 %v5604_v49  ;;  %v7117_v49 = vld [vmem:[#allocation3 + $0xcc] sm:$0xf]  ;;  %v5989_v37 = vld [vmem:[#allocation3 + $0x378] sm:$0xf0] }
  0xf4   : > { %2544 = vmatpush.bf16.msra.mxu1 %v5732_v50  ;;  %v5653_v50 = vld [vmem:[#allocation3 + $0xd8] sm:$0xf0]  ;;  %v7137_v29 = vld [vmem:[#allocation3 + $0x16c] sm:$0xf] }
  0xf5   : > { %2557 = vmatpush.bf16.msra.mxu2 %v5860_v51  ;;  %v7149_v51 = vld [vmem:[#allocation3 + $0x1cc] sm:$0xf]  ;;  %v5656_v58 = vor.u32 %v7117_v49, %v5653_v50  ;;  %v5736_v39 = vor.u32 %v7137_v29, %v5733_v32  ;;  %v5845_v49 = vld [vmem:[#allocation3 + $0x258] sm:$0xf0] }
  0xf6   : > { %2570 = vmatpush.bf16.msra.mxu3 %v5988_v56  ;;  %v7213_v56 = vld [vmem:[#allocation3 + $0x3cc] sm:$0xf]  ;;  %v5784_v59 = vor.u32 %v7149_v51, %v5781_v53  ;;  %v5973_v53 = vld [vmem:[#allocation3 + $0x358] sm:$0xf0] }
  0xf7   : > { %2532 = vmatpush.bf16.msra.mxu0 %v5588_v0  ;;  %v6040_v0 = vor.u32 %v7213_v56, %v6037_v57  ;;  %v7169_v33 = vld [vmem:[#allocation3 + $0x26c] sm:$0xf] }
  0xf8   : > { %2545 = vmatpush.bf16.msra.mxu1 %v5716_v2  ;;  %v7177_v2 = vld [vmem:[#allocation3 + $0x2ac] sm:$0xf] }
  0xf9   : > { %2558 = vmatpush.bf16.msra.mxu2 %v5844_v3  ;;  %v5893_v3 = vld [vmem:[#allocation3 + $0x2b8] sm:$0xf0] }
  0xfa   : > { %2571 = vmatpush.bf16.msra.mxu3 %v5972_v5  ;;  %v5896_v5 = vor.u32 %v7177_v2, %v5893_v3  ;;  %v5829_v2 = vld [vmem:[#allocation3 + $0x238] sm:$0xf0]  ;;  %v7193_v3 = vld [vmem:[#allocation3 + $0x32c] sm:$0xf] }
  0xfb   : > { %2533 = vmatpush.bf16.msra.mxu0 %v5572_v12  ;;  %v7173_v12 = vld [vmem:[#allocation3 + $0x28c] sm:$0xf]  ;;  %v5960_v11 = vor.u32 %v7193_v3, %v5957_v18 }
  0xfc   : > { %2546 = vmatpush.bf16.msra.mxu1 %v5700_v21  ;;  %v6005_v21 = vld [vmem:[#allocation3 + $0x398] sm:$0xf0]  ;;  %v5880_v26 = vor.u32 %v7173_v12, %v5877_v15  ;;  %v7157_v12 = vld [vmem:[#allocation3 + $0x20c] sm:$0xf] }
  0xfd   : > { %2559 = vmatpush.bf16.msra.mxu2 %v5828_v23  ;;  %v5624_v23 = vor.u32 %v7109_v6, %v5621_v7  ;;  %v6008_v31 = vor.u32 %v7205_v16, %v6005_v21  ;;  %v5557_v6 = vld [vmem:[#allocation3 + $0x18] sm:$0xf0]  ;;  %v7125_v7 = vld [vmem:[#allocation3 + $0x10c] sm:$0xf] }
  0xfe   : > { %2572 = vmatpush.bf16.msra.mxu3 %v5956_v28  ;;  %v5605_v28 = vld [vmem:[#allocation3 + $0x78] sm:$0xf0]  ;;  %v7189_v16 = vld [vmem:[#allocation3 + $0x30c] sm:$0xf]  ;;  %v5688_v29 = vor.u32 %v7125_v7, %v5685_v8  ;;  %v7386_v7 = vld [vmem:[#allocation7 + $0x12c] sm:$0xf0] }
  0xff   : > { %2534 = vmatpush.bf16.msra.mxu0 %v5556_v36  ;;  %v1688_v24 = vpop.f32.mrf.mxu0  ;;  %v7201_v36 = vld [vmem:[#allocation3 + $0x36c] sm:$0xf]  ;;  %v5608_v38 = vor.u32 %v7105_v27, %v5605_v28  ;;  %v5813_v15 = vld [vmem:[#allocation3 + $0x218] sm:$0xf0]  ;;  %v6299_v27 = vld [vmem:[#allocation7 + $0x1e0] sm:$0xf] }
 0x100   : > { %2547 = vmatpush.bf16.msra.mxu1 %v5684_v40  ;;  %v1701_v30 = vpop.f32.mrf.mxu1  ;;  %v5864_v40 = vor.u32 %v7169_v33, %v5861_v34  ;;  %v7410_v28 = vld [vmem:[#allocation7 + $0x1ec] sm:$0xf0]  ;;  %v6155_v33 = vld [vmem:[#allocation7 + $0xc0] sm:$0xf] }
 0x101   : > { %2560 = vmatpush.bf16.msra.mxu2 %v5812_v41  ;;  %v1702_v35 = vadd.f32 %v1701_v30, %v1688_v24  ;;  %v7101_v41 = vld [vmem:[#allocation3 + $0x4c] sm:$0xf]  ;;  %v6171_v24 = vld [vmem:[#allocation7 + $0xe0] sm:$0xf]  ;;  %v5816_v30 = vor.u32 %v7157_v12, %v5813_v15  ;;  %v7374_v34 = vld [vmem:[#allocation7 + $0xcc] sm:$0xf0] }
 0x102   : > { %2573 = vmatpush.bf16.msra.mxu3 %v5940_v44  ;;  %2535 = vmatmul.bf16.vlgmr.msra.gmra.mxu0 %v8017_v9  ;;  %v5592_v54 = vor.u32 %v7101_v41, %v5589_v42  ;;  %v6267_v42 = vld [vmem:[#allocation7 + $0x1a0] sm:$0xf]  ;;  %v7376_v12 = vld [vmem:[#allocation7 + $0xe4] sm:$0xf] }
 0x103   : > { %2579 = vmatpush.bf16.msrb.mxu0 %v5672_v45  ;;  %2548 = vmatmul.bf16.vlgmr.msra.gmra.mxu1 %v8021_v14  ;;  %v5992_v45 = vor.u32 %v7201_v36, %v5989_v37  ;;  %v6283_v36 = vld [vmem:[#allocation7 + $0x1c0] sm:$0xf]  ;;  %v7406_v37 = vld [vmem:[#allocation7 + $0x1cc] sm:$0xf0] }
 0x104   : > { %2592 = vmatpush.bf16.msrb.mxu1 %v5800_v46  ;;  %2561 = vmatmul.bf16.vlgmr.msra.gmra.mxu2 %v8019_v13  ;;  %v5717_v46 = vld [vmem:[#allocation3 + $0x158] sm:$0xf0]  ;;  %v6284_v41 = vor.u32 %v7406_v37, %v6283_v36  ;;  %v6411_v37 = vld [vmem:[#allocation7 + $0x2c0] sm:$0xf] }
 0x105   : > { %2605 = vmatpush.bf16.msrb.mxu2 %v5928_v48  ;;  %2574 = vmatmul.bf16.vlgmr.msra.gmra.mxu3 %v8023_v17  ;;  %v7165_v48 = vld [vmem:[#allocation3 + $0x24c] sm:$0xf]  ;;  %v5720_v57 = vor.u32 %v7133_v43, %v5717_v46  ;;  %v7402_v43 = vld [vmem:[#allocation7 + $0x1ac] sm:$0xf0] }
 0x106   : > { %2618 = vmatpush.bf16.msrb.mxu3 %v6056_v52  ;;  %v7197_v52 = vld [vmem:[#allocation3 + $0x34c] sm:$0xf]  ;;  %v7366_v46 = vld [vmem:[#allocation7 + $0x8c] sm:$0xf0] }
 0x107   : > { %2580 = vmatpush.bf16.msrb.mxu0 %v5656_v58  ;;  %v1714_v44 = vpop.f32.mrf.mxu2  ;;  %v1690_v56 = vpop.f32.mrf.mxu0  ;;  %v5848_v58 = vor.u32 %v7165_v48, %v5845_v49  ;;  %v5976_v63 = vor.u32 %v7197_v52, %v5973_v53  ;;  %v6268_v48 = vor.u32 %v7402_v43, %v6267_v42  ;;  %v6251_v49 = vld [vmem:[#allocation7 + $0x180] sm:$0xf]  ;;  %v7368_v43 = vld [vmem:[#allocation7 + $0xa4] sm:$0xf] }
 0x108   : > { %2593 = vmatpush.bf16.msrb.mxu1 %v5784_v59  ;;  %v1715_v50 = vadd.f32 %v1714_v44, %v1702_v35  ;;  %v1727_v51 = vpop.f32.mrf.mxu3  ;;  %v7097_v59 = vld [vmem:[#allocation3 + $0x2c] sm:$0xf]  ;;  %v1703_v62 = vpop.f32.mrf.mxu1  ;;  %v6300_v35 = vor.u32 %v7410_v28, %v6299_v27  ;;  %v6107_v53 = vld [vmem:[#allocation7 + $0x60] sm:$0xf]  ;;  %v7442_v27 = vld [vmem:[#allocation7 + $0x2ec] sm:$0xf0] }
 0x109   : > { %2606 = vmatpush.bf16.msrb.mxu2 %v5912_v60  ;;  %v5573_v60 = vld [vmem:[#allocation3 + $0x38] sm:$0xf0]  ;;  %v6235_v56 = vld [vmem:[#allocation7 + $0x160] sm:$0xf] }
 0x10a   : > { %2619 = vmatpush.bf16.msrb.mxu3 %v6040_v0  ;;  %v8041_v55 = vadd.f32 %v1727_v51, %v1715_v50  ;;  %v5701_v0 = vld [vmem:[#allocation3 + $0x138] sm:$0xf0]  ;;  %v5576_v22 = vor.u32 %v7097_v59, %v5573_v60  ;;  %v7358_v59 = vld [vmem:[#allocation7 + $0x4c] sm:$0xf0]  ;;  %v6219_v62 = vld [vmem:[#allocation7 + $0x140] sm:$0xf] }
 0x10b   : > { %2581 = vmatpush.bf16.msrb.mxu0 %v5640_v4  ;;  %v7093_v4 = vld [vmem:[#allocation3 + $0xc] sm:$0xf] }
 0x10c   : > { %2594 = vmatpush.bf16.msrb.mxu1 %v5768_v20  ;;  %v5704_v20 = vor.u32 %v7129_v61, %v5701_v0 }
 0x10d   : > { %2607 = vmatpush.bf16.msrb.mxu2 %v5896_v5  ;;  %v5832_v5 = vor.u32 %v7161_v1, %v5829_v2 }
 0x10e   : > { %2620 = vmatpush.bf16.msrb.mxu3 %v6024_v10 }
 0x10f   : > { %2582 = vmatpush.bf16.msrb.mxu0 %v5624_v23  ;;  %v1716_v10 = vpop.f32.mrf.mxu2  ;;  %v5941_v23 = vld [vmem:[#allocation3 + $0x318] sm:$0xf0] }
 0x110   : > { %2595 = vmatpush.bf16.msrb.mxu1 %v5752_v25  ;;  %v1729_v21 = vpop.f32.mrf.mxu3  ;;  %v7378_v25 = vld [vmem:[#allocation7 + $0xec] sm:$0xf0]  ;;  %v6059_v10 = vld [vmem:[#allocation7] sm:$0xf] }
 0x111   : > { %2608 = vmatpush.bf16.msrb.mxu2 %v5880_v26  ;;  %v5560_v26 = vor.u32 %v7093_v4, %v5557_v6  ;;  %v6172_v32 = vor.u32 %v7378_v25, %v6171_v24  ;;  %v7354_v4 = vld [vmem:[#allocation7 + $0x2c] sm:$0xf0]  ;;  %v6203_v6 = vld [vmem:[#allocation7 + $0x120] sm:$0xf] }
 0x112   : > { %2621 = vmatpush.bf16.msrb.mxu3 %v6008_v31  ;;  %v5944_v31 = vor.u32 %v7189_v16, %v5941_v23  ;;  %v6204_v15 = vor.u32 %v7386_v7, %v6203_v6  ;;  %v6173_v16 = vld [vmem:[#allocation7 + $0xf0] sm:$0xf0]  ;;  %v6187_v23 = vld [vmem:[#allocation7 + $0x100] sm:$0xf]  ;;  %v7382_v24 = vld [vmem:[#allocation7 + $0x10c] sm:$0xf0] }
 0x113   : > { %2583 = vmatpush.bf16.msrb.mxu0 %v5608_v38  ;;  %v6156_v38 = vor.u32 %v7374_v34, %v6155_v33  ;;  %v7372_v33 = vld [vmem:[#allocation7 + $0xc4] sm:$0xf]  ;;  %v6188_v34 = vor.u32 %v7382_v24, %v6187_v23  ;;  %v6093_v7 = vld [vmem:[#allocation7 + $0x50] sm:$0xf0] }
 0x114   : > { %2596 = vmatpush.bf16.msrb.mxu1 %v5736_v39  ;;  %v6139_v39 = vld [vmem:[#allocation7 + $0xa0] sm:$0xf]  ;;  %v7356_v6 = vld [vmem:[#allocation7 + $0x44] sm:$0xf] }
 0x115   : > { %2609 = vmatpush.bf16.msrb.mxu2 %v5864_v40  ;;  %v7370_v40 = vld [vmem:[#allocation7 + $0xac] sm:$0xf0] }
 0x116   : > { %2622 = vmatpush.bf16.msrb.mxu3 %v5992_v45  ;;  %v6140_v44 = vor.u32 %v7370_v40, %v6139_v39  ;;  %v6123_v45 = vld [vmem:[#allocation7 + $0x80] sm:$0xf]  ;;  %v7404_v40 = vld [vmem:[#allocation7 + $0x1c4] sm:$0xf] }
 0x117   : > { %2584 = vmatpush.bf16.msrb.mxu0 %v5592_v54  ;;  %v6124_v51 = vor.u32 %v7366_v46, %v6123_v45  ;;  %v6395_v46 = vld [vmem:[#allocation7 + $0x2a0] sm:$0xf] }
 0x118   : > { %2597 = vmatpush.bf16.msrb.mxu1 %v5720_v57  ;;  %v7394_v57 = vld [vmem:[#allocation7 + $0x16c] sm:$0xf0] }
 0x119   : > { %2610 = vmatpush.bf16.msrb.mxu2 %v5848_v58  ;;  %v6091_v58 = vld [vmem:[#allocation7 + $0x40] sm:$0xf]  ;;  %v6236_v60 = vor.u32 %v7394_v57, %v6235_v56  ;;  %v7396_v56 = vld [vmem:[#allocation7 + $0x184] sm:$0xf] }
 0x11a   : > { %2623 = vmatpush.bf16.msrb.mxu3 %v5976_v63  ;;  %v7390_v63 = vld [vmem:[#allocation7 + $0x14c] sm:$0xf0]  ;;  %v6092_v3 = vor.u32 %v7358_v59, %v6091_v58 }
 0x11b   : > { %2585 = vmatpush.bf16.msrb.mxu0 %v5576_v22  ;;  %v6075_v22 = vld [vmem:[#allocation7 + $0x20] sm:$0xf] }
 0x11c   : > { %2598 = vmatpush.bf16.msrb.mxu1 %v5704_v20  ;;  %v6076_v8 = vor.u32 %v7354_v4, %v6075_v22  ;;  %v6237_v22 = vld [vmem:[#allocation7 + $0x170] sm:$0xf0] }
 0x11d   : > { %2611 = vmatpush.bf16.msrb.mxu2 %v5832_v5  ;;  %v6220_v5 = vor.u32 %v7390_v63, %v6219_v62  ;;  %v6109_v62 = vld [vmem:[#allocation7 + $0x70] sm:$0xf0] }
 0x11e   : > { %2624 = vmatpush.bf16.msrb.mxu3 %v5960_v11  ;;  %v7350_v11 = vld [vmem:[#allocation7 + $0xc] sm:$0xf0] }
 0x11f   : > { %2586 = vmatpush.bf16.msrb.mxu0 %v5560_v26  ;;  %v1740_v50 = vpop.f32.mrf.mxu0  ;;  %v6427_v26 = vld [vmem:[#allocation7 + $0x2e0] sm:$0xf]  ;;  %v6060_v28 = vor.u32 %v7350_v11, %v6059_v10 }
 0x120   : > { %2599 = vmatpush.bf16.msrb.mxu1 %v5688_v29  ;;  %v1753_v52 = vpop.f32.mrf.mxu1  ;;  %v6428_v29 = vor.u32 %v7442_v27, %v6427_v26  ;;  %v6347_v11 = vld [vmem:[#allocation7 + $0x240] sm:$0xf]  ;;  %v6096_v26 = vor.u32 %v7356_v6, %v6093_v7 }
 0x121   : > { %2612 = vmatpush.bf16.msrb.mxu2 %v5816_v30  ;;  %v1754_v54 = vadd.f32 %v1753_v52, %v1740_v50  ;;  %v7408_v30 = vld [vmem:[#allocation7 + $0x1e4] sm:$0xf]  ;;  %v6269_v50 = vld [vmem:[#allocation7 + $0x1b0] sm:$0xf0]  ;;  %v6523_v7 = vld [vmem:[#allocation7 + $0x3a0] sm:$0xf] }
 0x122   : > { %2625 = vmatpush.bf16.msrb.mxu3 %v5944_v31  ;;  %2587 = vmatmul.bf16.vlgmr.msrb.gmra.mxu0 %v8017_v9  ;;  %v7398_v9 = vld [vmem:[#allocation7 + $0x18c] sm:$0xf0]  ;;  %v6301_v31 = vld [vmem:[#allocation7 + $0x1f0] sm:$0xf0]  ;;  %v7364_v52 = vld [vmem:[#allocation7 + $0x84] sm:$0xf] }
 0x123   : > { %3431 = vmatpush.bf16.msra.mxu0 %v6172_v32  ;;  %2600 = vmatmul.bf16.vlgmr.msrb.gmra.mxu1 %v8021_v14  ;;  %v7362_v14 = vld [vmem:[#allocation7 + $0x6c] sm:$0xf0]  ;;  %v6176_v32 = vor.u32 %v7376_v12, %v6173_v16  ;;  %v6304_v36 = vor.u32 %v7408_v30, %v6301_v31 }
 0x124   : > { %3444 = vmatpush.bf16.msra.mxu1 %v6300_v35  ;;  %2613 = vmatmul.bf16.vlgmr.msrb.gmra.mxu2 %v8019_v13  ;;  %v6252_v13 = vor.u32 %v7398_v9, %v6251_v49  ;;  %v6157_v35 = vld [vmem:[#allocation7 + $0xd0] sm:$0xf0]  ;;  %v7400_v9 = vld [vmem:[#allocation7 + $0x1a4] sm:$0xf]  ;;  %v7422_v12 = vld [vmem:[#allocation7 + $0x24c] sm:$0xf0] }
 0x125   : > { %2626 = vmatmul.bf16.vlgmr.msrb.gmra.mxu3 %v8023_v17  ;;  %v6108_v17 = vor.u32 %v7362_v14, %v6107_v53  ;;  %3457 = vmatpush.bf16.msra.mxu2 %v6428_v29  ;;  %v6160_v42 = vor.u32 %v7372_v33, %v6157_v35  ;;  %v6125_v53 = vld [vmem:[#allocation7 + $0x90] sm:$0xf0]  ;;  %v6272_v14 = vor.u32 %v7400_v9, %v6269_v50  ;;  %v6331_v33 = vld [vmem:[#allocation7 + $0x220] sm:$0xf]  ;;  %v7384_v35 = vld [vmem:[#allocation7 + $0x124] sm:$0xf] }
 0x126   : > { %v6128_v59 = vor.u32 %v7364_v52, %v6125_v53  ;;  %v6348_v16 = vor.u32 %v7422_v12, %v6347_v11  ;;  %v6077_v29 = vld [vmem:[#allocation7 + $0x30] sm:$0xf0]  ;;  %v7380_v50 = vld [vmem:[#allocation7 + $0x104] sm:$0xf]  ;;  %v6555_v52 = vld [vmem:[#allocation7 + $0x3e0] sm:$0xf] }
 0x127   : > { %3432 = vmatpush.bf16.msra.mxu0 %v6156_v38  ;;  %v1766_v61 = vpop.f32.mrf.mxu2  ;;  %v1742_v1 = vpop.f32.mrf.mxu0  ;;  %v7438_v38 = vld [vmem:[#allocation7 + $0x2cc] sm:$0xf0]  ;;  %v6397_v12 = vld [vmem:[#allocation7 + $0x2b0] sm:$0xf0] }
 0x128   : > { %3445 = vmatpush.bf16.msra.mxu1 %v6284_v41  ;;  %v1767_v0 = vadd.f32 %v1766_v61, %v1754_v54  ;;  %v1779_v2 = vpop.f32.mrf.mxu3  ;;  %v1755_v18 = vpop.f32.mrf.mxu1  ;;  %v6412_v39 = vor.u32 %v7438_v38, %v6411_v37  ;;  %v6285_v41 = vld [vmem:[#allocation7 + $0x1d0] sm:$0xf0]  ;;  %v6379_v54 = vld [vmem:[#allocation7 + $0x280] sm:$0xf]  ;;  %v7426_v1 = vld [vmem:[#allocation7 + $0x26c] sm:$0xf0] }
 0x129   : > { %v6288_v45 = vor.u32 %v7404_v40, %v6285_v41  ;;  %v7392_v18 = vld [vmem:[#allocation7 + $0x164] sm:$0xf]  ;;  %v6205_v37 = vld [vmem:[#allocation7 + $0x130] sm:$0xf0] }
 0x12a   : > { %v8047_v20 = vadd.f32 %v1779_v2, %v1767_v0  ;;  %3458 = vmatpush.bf16.msra.mxu2 %v6412_v39  ;;  %v6363_v0 = vld [vmem:[#allocation7 + $0x260] sm:$0xf]  ;;  %v7348_v40 = vld [vmem:[#allocation7 + $0x4] sm:$0xf]  ;;  %v6061_v41 = vld [vmem:[#allocation7 + $0x10] sm:$0xf0] }
 0x12b   : > { %3433 = vmatpush.bf16.msra.mxu0 %v6140_v44  ;;  %v6141_v44 = vld [vmem:[#allocation7 + $0xb0] sm:$0xf0] }
 0x12c   : > { %3446 = vmatpush.bf16.msra.mxu1 %v6268_v48  ;;  %v7434_v48 = vld [vmem:[#allocation7 + $0x2ac] sm:$0xf0] }
 0x12d   : > { %v6396_v49 = vor.u32 %v7434_v48, %v6395_v46  ;;  %v6315_v46 = vld [vmem:[#allocation7 + $0x200] sm:$0xf]  ;;  %v7414_v48 = vld [vmem:[#allocation7 + $0x20c] sm:$0xf0] }
 0x12e   : > { %v6316_v9 = vor.u32 %v7414_v48, %v6315_v46  ;;  %v7420_v46 = vld [vmem:[#allocation7 + $0x244] sm:$0xf] }
 0x12f   : > { %3434 = vmatpush.bf16.msra.mxu0 %v6124_v51  ;;  %v1768_v21 = vpop.f32.mrf.mxu2  ;;  %v6144_v51 = vor.u32 %v7368_v43, %v6141_v44  ;;  %3459 = vmatpush.bf16.msra.mxu2 %v6396_v49  ;;  %v7379_v43 = vld [vmem:[#allocation7 + $0xf4] sm:$0xf0]  ;;  %v6208_v44 = vor.u32 %v7384_v35, %v6205_v37  ;;  %v7458_v35 = vld [vmem:[#allocation7 + $0x36c] sm:$0xf0] }
 0x130   : > { %3447 = vmatpush.bf16.msra.mxu1 %v6252_v13  ;;  %v1781_v25 = vpop.f32.mrf.mxu3  ;;  %v7430_v13 = vld [vmem:[#allocation7 + $0x28c] sm:$0xf0]  ;;  %v6221_v21 = vld [vmem:[#allocation7 + $0x150] sm:$0xf0] }
 0x131   : > { %v6380_v57 = vor.u32 %v7430_v13, %v6379_v54 }
 0x133   : > { %3435 = vmatpush.bf16.msra.mxu0 %v6108_v17  ;;  %v6253_v17 = vld [vmem:[#allocation7 + $0x190] sm:$0xf0]  ;;  %3460 = vmatpush.bf16.msra.mxu2 %v6380_v57  ;;  %v7440_v57 = vld [vmem:[#allocation7 + $0x2e4] sm:$0xf] }
 0x134   : > { %3448 = vmatpush.bf16.msra.mxu1 %v6236_v60  ;;  %v7360_v60 = vld [vmem:[#allocation7 + $0x64] sm:$0xf]  ;;  %v6256_v63 = vor.u32 %v7396_v56, %v6253_v17  ;;  %v7474_v56 = vld [vmem:[#allocation7 + $0x3ec] sm:$0xf0]  ;;  %v6429_v17 = vld [vmem:[#allocation7 + $0x2f0] sm:$0xf0] }
 0x135   : > { %v6112_v4 = vor.u32 %v7360_v60, %v6109_v62  ;;  %v6432_v60 = vor.u32 %v7440_v57, %v6429_v17  ;;  %v7375_v62 = vld [vmem:[#allocation7 + $0xd4] sm:$0xf0] }
 0x137   : > { %3436 = vmatpush.bf16.msra.mxu0 %v6092_v3  ;;  %v6364_v3 = vor.u32 %v7426_v1, %v6363_v0  ;;  %v7470_v0 = vld [vmem:[#allocation7 + $0x3cc] sm:$0xf0]  ;;  %v7436_v1 = vld [vmem:[#allocation7 + $0x2c4] sm:$0xf] }
 0x138   : > { %3449 = vmatpush.bf16.msra.mxu1 %v6220_v5  ;;  %v8053_v5 = vld [vmem:[%s8251_s5] sm:$0xf] }
 0x139   : > { %3461 = vmatpush.bf16.msra.mxu2 %v6364_v3  ;;  %v2633_v25 = vperm.slane %v8053_v5, 0  ;;  %v6413_v3 = vld [vmem:[#allocation7 + $0x2d0] sm:$0xf0] }
 0x13a   : > { %v6416_v6 = vor.u32 %v7436_v1, %v6413_v3  ;;  %v6067_v1 = vld [vmem:[#allocation7 + $0x8] sm:$0xf] }
 0x13b   : > { %3437 = vmatpush.bf16.msra.mxu0 %v6076_v8  ;;  %v6240_v8 = vor.u32 %v7392_v18, %v6237_v22  ;;  %v6147_v22 = vld [vmem:[#allocation7 + $0xa8] sm:$0xf] }
 0x13c   : > { %3450 = vmatpush.bf16.msra.mxu1 %v6204_v15  ;;  %v7388_v15 = vld [vmem:[#allocation7 + $0x144] sm:$0xf]  ;;  %v6307_v3 = vld [vmem:[#allocation7 + $0x1e8] sm:$0xf] }
 0x13d   : > { %3462 = vmatpush.bf16.msra.mxu2 %v6348_v16  ;;  %v6224_v31 = vor.u32 %v7388_v15, %v6221_v21  ;;  %v6131_v16 = vld [vmem:[#allocation7 + $0x88] sm:$0xf]  ;;  %v7367_v21 = vld [vmem:[#allocation7 + $0x94] sm:$0xf0] }
 0x13f   : > { %3438 = vmatpush.bf16.msra.mxu0 %v6060_v28  ;;  %v2432_v58 = vpop.f32.mrf.mxu0  ;;  %v7352_v28 = vld [vmem:[#allocation7 + $0x24] sm:$0xf] }
 0x140   : > { %3451 = vmatpush.bf16.msra.mxu1 %v6188_v34  ;;  %v2445_v61 = vpop.f32.mrf.mxu1  ;;  %v2433_v2 = vadd.f32 %v2432_v58, %v8029_v47  ;;  %v7418_v34 = vld [vmem:[#allocation7 + $0x22c] sm:$0xf0]  ;;  %v6080_v39 = vor.u32 %v7352_v28, %v6077_v29  ;;  %v6132_v28 = vor.u32 %v7367_v21, %v6131_v16 }
 0x142   : > { %v2446_v10 = vadd.f32 %v2445_v61, %v2433_v2  ;;  %v6163_v61 = vld [vmem:[#allocation7 + $0xc8] sm:$0xf] }
 0x143   : > { %3483 = vmatpush.bf16.msrb.mxu0 %v6176_v32  ;;  %v6164_v18 = vor.u32 %v7375_v62, %v6163_v61 }
 0x144   : > { %3496 = vmatpush.bf16.msrb.mxu1 %v6304_v36  ;;  %v6332_v36 = vor.u32 %v7418_v34, %v6331_v33  ;;  %v6491_v34 = vld [vmem:[#allocation7 + $0x360] sm:$0xf] }
 0x146   : > { %3463 = vmatpush.bf16.msra.mxu2 %v6332_v36  ;;  %v7424_v36 = vld [vmem:[#allocation7 + $0x264] sm:$0xf] }
 0x147   : > { %3484 = vmatpush.bf16.msrb.mxu0 %v6160_v42  ;;  %v2458_v47 = vpop.f32.mrf.mxu2  ;;  %v2434_v27 = vpop.f32.mrf.mxu0  ;;  %v6179_v42 = vld [vmem:[#allocation7 + $0xe8] sm:$0xf] }
 0x148   : > { %3497 = vmatpush.bf16.msrb.mxu1 %v6288_v45  ;;  %v2459_v23 = vadd.f32 %v2458_v47, %v2446_v10  ;;  %v2471_v24 = vpop.f32.mrf.mxu3  ;;  %v2447_v30 = vpop.f32.mrf.mxu1  ;;  %v6180_v54 = vor.u32 %v7379_v43, %v6179_v42  ;;  %v7432_v10 = vld [vmem:[#allocation7 + $0x2a4] sm:$0xf]  ;;  %v6381_v27 = vld [vmem:[#allocation7 + $0x290] sm:$0xf0]  ;;  %v6099_v42 = vld [vmem:[#allocation7 + $0x48] sm:$0xf] }
 0x149   : > { %v6400_v15 = vor.u32 %v7432_v10, %v6397_v12  ;;  %v7359_v43 = vld [vmem:[#allocation7 + $0x54] sm:$0xf0]  ;;  %v7446_v10 = vld [vmem:[#allocation7 + $0x30c] sm:$0xf0] }
 0x14a   : > { %v2472_v32 = vadd.f32 %v2471_v24, %v2459_v23  ;;  %3464 = vmatpush.bf16.msra.mxu2 %v6316_v9  ;;  %v6507_v23 = vld [vmem:[#allocation7 + $0x380] sm:$0xf]  ;;  %v7462_v24 = vld [vmem:[#allocation7 + $0x38c] sm:$0xf0]  ;;  %v6349_v9 = vld [vmem:[#allocation7 + $0x250] sm:$0xf0] }
 0x14b   : > { %3485 = vmatpush.bf16.msrb.mxu0 %v6144_v51  ;;  %v6189_v51 = vld [vmem:[#allocation7 + $0x110] sm:$0xf0] }
 0x14c   : > { %3498 = vmatpush.bf16.msrb.mxu1 %v6272_v14  ;;  %v2641_v38 = vadd.f32 %v2633_v25, %v2472_v32  ;;  %v6064_v14 = vor.u32 %v7348_v40, %v6061_v41  ;;  %v6192_v58 = vor.u32 %v7380_v50, %v6189_v51  ;;  %v7428_v25 = vld [vmem:[#allocation7 + $0x284] sm:$0xf]  ;;  %v7363_v32 = vld [vmem:[#allocation7 + $0x74] sm:$0xf0]  ;;  %v6352_v51 = vor.u32 %v7420_v46, %v6349_v9  ;;  %v6259_v9 = vld [vmem:[#allocation7 + $0x188] sm:$0xf] }
 0x14d   : > { %v6384_v29 = vor.u32 %v7428_v25, %v6381_v27  ;;  %v7472_v25 = vld [vmem:[#allocation7 + $0x3e4] sm:$0xf] }
 0x14e   : > { %v2645_v45 = vmax.f32 %v2641_v38, 0.0  ;;  %3509 = vmatpush.bf16.msrb.mxu2 %v6432_v60  ;;  %v6492_v38 = vor.u32 %v7458_v35, %v6491_v34  ;;  %v7416_v60 = vld [vmem:[#allocation7 + $0x224] sm:$0xf]  ;;  %v6165_v34 = vld [vmem:[#allocation7 + $0xd8] sm:$0xf0] }
 0x14f   : > { %3486 = vmatpush.bf16.msrb.mxu0 %v6128_v59  ;;  %v2460_v49 = vpop.f32.mrf.mxu2  ;;  %v6556_v59 = vor.u32 %v7474_v56, %v6555_v52  ;;  %v7355_v56 = vld [vmem:[#allocation7 + $0x34] sm:$0xf0]  ;;  %v7468_v35 = vld [vmem:[#allocation7 + $0x3c4] sm:$0xf] }
 0x150   : > { %3499 = vmatpush.bf16.msrb.mxu1 %v6256_v63  ;;  %v8056_v53 = vpack.c.bf16 %v2645_v45, %v2645_v45  ;;  %v2473_v13 = vpop.f32.mrf.mxu3  ;;  %v6539_v63 = vld [vmem:[#allocation7 + $0x3c0] sm:$0xf]  ;;  %v7454_v45 = vld [vmem:[#allocation7 + $0x34c] sm:$0xf0] }
 0x151   : > { %3470 = vmatpush.bf16.msra.mxu3 %v6556_v59  ;;  %v6540_v2 = vor.u32 %v7470_v0, %v6539_v63  ;;  %v6083_v13 = vld [vmem:[#allocation7 + $0x28] sm:$0xf]  ;;  %v7450_v59 = vld [vmem:[#allocation7 + $0x32c] sm:$0xf0]  ;;  %v6333_v63 = vld [vmem:[#allocation7 + $0x230] sm:$0xf0] }
 0x152   : > { %3439 = vmatmul.bf16.vlgmr.msra.gmra.mxu0 %v8056_v53  ;;  %3510 = vmatpush.bf16.msrb.mxu2 %v6416_v6  ;;  %v6084_v0 = vor.u32 %v7355_v56, %v6083_v13  ;;  %v7377_v6 = vld [vmem:[#allocation7 + $0xec] sm:$0xf] }
 0x153   : > { %3487 = vmatpush.bf16.msrb.mxu0 %v6112_v4  ;;  %v7371_v4 = vld [vmem:[#allocation7 + $0xb4] sm:$0xf0] }
 0x154   : > { %3500 = vmatpush.bf16.msrb.mxu1 %v6240_v8  ;;  %v7466_v8 = vld [vmem:[#allocation7 + $0x3ac] sm:$0xf0]  ;;  %v6148_v47 = vor.u32 %v7371_v4, %v6147_v22  ;;  %v7411_v4 = vld [vmem:[#allocation7 + $0x1f4] sm:$0xf0] }
 0x155   : > { %3471 = vmatpush.bf16.msra.mxu3 %v6540_v2  ;;  %v6524_v11 = vor.u32 %v7466_v8, %v6523_v7  ;;  %v7351_v2 = vld [vmem:[#allocation7 + $0x14] sm:$0xf0]  ;;  %v6181_v7 = vld [vmem:[#allocation7 + $0xf8] sm:$0xf0]  ;;  %v6443_v8 = vld [vmem:[#allocation7 + $0x300] sm:$0xf]  ;;  %v6308_v21 = vor.u32 %v7411_v4, %v6307_v3 }
 0x156   : > { %3511 = vmatpush.bf16.msrb.mxu2 %v6400_v15  ;;  %v6444_v15 = vor.u32 %v7446_v10, %v6443_v8  ;;  %v6068_v16 = vor.u32 %v7351_v2, %v6067_v1  ;;  %v7357_v4 = vld [vmem:[#allocation7 + $0x4c] sm:$0xf]  ;;  %v6477_v8 = vld [vmem:[#allocation7 + $0x350] sm:$0xf0] }
 0x157   : > { %3488 = vmatpush.bf16.msrb.mxu0 %v6096_v26  ;;  %v6508_v26 = vor.u32 %v7462_v24, %v6507_v23 }
 0x158   : > { %3501 = vmatpush.bf16.msrb.mxu1 %v6224_v31  ;;  %v6115_v31 = vld [vmem:[#allocation7 + $0x68] sm:$0xf] }
 0x159   : > { %3472 = vmatpush.bf16.msra.mxu3 %v6524_v11  ;;  %v6116_v40 = vor.u32 %v7363_v32, %v6115_v31  ;;  %v7412_v11 = vld [vmem:[#allocation7 + $0x204] sm:$0xf] }
 0x15a   : > { %3512 = vmatpush.bf16.msrb.mxu2 %v6384_v29  ;;  %v6291_v29 = vld [vmem:[#allocation7 + $0x1c8] sm:$0xf] }
 0x15b   : > { %3489 = vmatpush.bf16.msrb.mxu0 %v6080_v39  ;;  %v6365_v39 = vld [vmem:[#allocation7 + $0x270] sm:$0xf0] }
 0x15c   : > { %3502 = vmatpush.bf16.msrb.mxu1 %v6208_v44  ;;  %v6368_v41 = vor.u32 %v7424_v36, %v6365_v39  ;;  %v6475_v44 = vld [vmem:[#allocation7 + $0x340] sm:$0xf]  ;;  %v6541_v36 = vld [vmem:[#allocation7 + $0x3d0] sm:$0xf0] }
 0x15d   : > { %3473 = vmatpush.bf16.msra.mxu3 %v6508_v26  ;;  %v6476_v49 = vor.u32 %v7454_v45, %v6475_v44  ;;  %v6557_v26 = vld [vmem:[#allocation7 + $0x3f0] sm:$0xf0]  ;;  %v7464_v44 = vld [vmem:[#allocation7 + $0x3a4] sm:$0xf] }
 0x15e   : > { %3513 = vmatpush.bf16.msrb.mxu2 %v6368_v41  ;;  %v6560_v32 = vor.u32 %v7472_v25, %v6557_v26  ;;  %v7403_v41 = vld [vmem:[#allocation7 + $0x1b4] sm:$0xf0]  ;;  %v6525_v45 = vld [vmem:[#allocation7 + $0x3b0] sm:$0xf0]  ;;  %v2635_v26 = vperm.slane %v8053_v5, 2 }
 0x15f   : > { %3490 = vmatpush.bf16.msrb.mxu0 %v6064_v14  ;;  %v2484_v30 = vpop.f32.mrf.mxu0  ;;  %v6528_v46 = vor.u32 %v7464_v44, %v6525_v45  ;;  %v6309_v44 = vld [vmem:[#allocation7 + $0x1f8] sm:$0xf0]  ;;  %v7444_v45 = vld [vmem:[#allocation7 + $0x304] sm:$0xf] }
 0x160   : > { %3503 = vmatpush.bf16.msrb.mxu1 %v6192_v58  ;;  %v2497_v33 = vpop.f32.mrf.mxu1  ;;  %v2485_v37 = vadd.f32 %v2484_v30, %v8035_v19  ;;  %v6100_v19 = vor.u32 %v7359_v43, %v6099_v42  ;;  %v6459_v58 = vld [vmem:[#allocation7 + $0x320] sm:$0xf]  ;;  %v7407_v30 = vld [vmem:[#allocation7 + $0x1d4] sm:$0xf0]  ;;  %v7369_v42 = vld [vmem:[#allocation7 + $0xac] sm:$0xf] }
 0x161   : > { %3474 = vmatpush.bf16.msra.mxu3 %v6492_v38  ;;  %v6460_v62 = vor.u32 %v7450_v59, %v6459_v58  ;;  %v6544_v38 = vor.u32 %v7468_v35, %v6541_v36  ;;  %v6149_v43 = vld [vmem:[#allocation7 + $0xb8] sm:$0xf0]  ;;  %v7361_v58 = vld [vmem:[#allocation7 + $0x6c] sm:$0xf] }
 0x162   : > { %3491 = vmatmul.bf16.vlgmr.msrb.gmra.mxu0 %v8056_v53  ;;  %v2498_v48 = vadd.f32 %v2497_v33, %v2485_v37  ;;  %3514 = vmatpush.bf16.msrb.mxu2 %v6352_v51  ;;  %v7373_v33 = vld [vmem:[#allocation7 + $0xcc] sm:$0xf]  ;;  %v6292_v37 = vor.u32 %v7407_v30, %v6291_v29  ;;  %v6133_v51 = vld [vmem:[#allocation7 + $0x98] sm:$0xf0]  ;;  %v7448_v29 = vld [vmem:[#allocation7 + $0x324] sm:$0xf] }
 0x163   : > { %3535 = vmatpush.bf16.msra.mxu0 %v6180_v54  ;;  %v2634_v54 = vperm.slane %v8053_v5, 1  ;;  %v6168_v39 = vor.u32 %v7373_v33, %v6165_v34  ;;  %v6117_v59 = vld [vmem:[#allocation7 + $0x78] sm:$0xf0]  ;;  %v6461_v30 = vld [vmem:[#allocation7 + $0x330] sm:$0xf0] }
 0x164   : > { %v6120_v3 = vor.u32 %v7361_v58, %v6117_v59  ;;  %v6464_v34 = vor.u32 %v7448_v29, %v6461_v30  ;;  %v6339_v29 = vld [vmem:[#allocation7 + $0x228] sm:$0xf] }
 0x165   : > { %3475 = vmatpush.bf16.msra.mxu3 %v6476_v49  ;;  %v6152_v49 = vor.u32 %v7369_v42, %v6149_v43  ;;  %v7409_v42 = vld [vmem:[#allocation7 + $0x1ec] sm:$0xf] }
 0x167   : > { %3536 = vmatpush.bf16.msra.mxu0 %v6164_v18  ;;  %v2510_v50 = vpop.f32.mrf.mxu2  ;;  %v2486_v57 = vpop.f32.mrf.mxu0  ;;  %v6336_v18 = vor.u32 %v7416_v60, %v6333_v63 }
 0x168   : > { %v2511_v52 = vadd.f32 %v2510_v50, %v2498_v48  ;;  %v2523_v14 = vpop.f32.mrf.mxu3  ;;  %v2499_v17 = vpop.f32.mrf.mxu1  ;;  %v7399_v50 = vld [vmem:[#allocation7 + $0x194] sm:$0xf0]  ;;  %v6243_v57 = vld [vmem:[#allocation7 + $0x168] sm:$0xf] }
 0x169   : > { %3476 = vmatpush.bf16.msra.mxu3 %v6460_v62  ;;  %3515 = vmatpush.bf16.msrb.mxu2 %v6336_v18  ;;  %v7395_v17 = vld [vmem:[#allocation7 + $0x174] sm:$0xf0]  ;;  %v6493_v62 = vld [vmem:[#allocation7 + $0x370] sm:$0xf0]  ;;  %v6227_v18 = vld [vmem:[#allocation7 + $0x148] sm:$0xf] }
 0x16a   : > { %v2524_v61 = vadd.f32 %v2523_v14, %v2511_v52  ;;  %v7460_v52 = vld [vmem:[#allocation7 + $0x384] sm:$0xf]  ;;  %v6509_v14 = vld [vmem:[#allocation7 + $0x390] sm:$0xf0] }
 0x16b   : > { %3537 = vmatpush.bf16.msra.mxu0 %v6148_v47  ;;  %v6317_v47 = vld [vmem:[#allocation7 + $0x210] sm:$0xf0]  ;;  %v6512_v13 = vor.u32 %v7460_v52, %v6509_v14  ;;  %v6419_v14 = vld [vmem:[#allocation7 + $0x2c8] sm:$0xf] }
 0x16c   : > { %v2642_v22 = vadd.f32 %v2634_v54, %v2524_v61  ;;  %v6320_v24 = vor.u32 %v7412_v11, %v6317_v47  ;;  %v6260_v54 = vor.u32 %v7399_v50, %v6259_v9  ;;  %v7456_v61 = vld [vmem:[#allocation7 + $0x364] sm:$0xf]  ;;  %v6211_v47 = vld [vmem:[#allocation7 + $0x128] sm:$0xf] }
 0x16d   : > { %3477 = vmatpush.bf16.msra.mxu3 %v6444_v15  ;;  %v6496_v1 = vor.u32 %v7456_v61, %v6493_v62  ;;  %v7435_v61 = vld [vmem:[#allocation7 + $0x2b4] sm:$0xf0]  ;;  %v7401_v62 = vld [vmem:[#allocation7 + $0x1ac] sm:$0xf] }
 0x16e   : > { %v2646_v12 = vmax.f32 %v2642_v22, 0.0  ;;  %3516 = vmatpush.bf16.msrb.mxu2 %v6320_v24  ;;  %v7391_v22 = vld [vmem:[#allocation7 + $0x154] sm:$0xf0] }
 0x16f   : > { %3538 = vmatpush.bf16.msra.mxu0 %v6132_v28  ;;  %v2512_v23 = vpop.f32.mrf.mxu2  ;;  %v6184_v28 = vor.u32 %v7377_v6, %v6181_v7  ;;  %v6101_v6 = vld [vmem:[#allocation7 + $0x58] sm:$0xf0]  ;;  %v7452_v7 = vld [vmem:[#allocation7 + $0x344] sm:$0xf]  ;;  %v6228_v10 = vor.u32 %v7391_v22, %v6227_v18  ;;  %v7397_v18 = vld [vmem:[#allocation7 + $0x18c] sm:$0xf] }
 0x170   : > { %v8062_v27 = vpack.c.bf16 %v2646_v12, %v2646_v12  ;;  %v2525_v31 = vpop.f32.mrf.mxu3  ;;  %v6480_v11 = vor.u32 %v7452_v7, %v6477_v8  ;;  %v6104_v15 = vor.u32 %v7357_v4, %v6101_v6  ;;  %v6085_v23 = vld [vmem:[#allocation7 + $0x38] sm:$0xf0]  ;;  %v6371_v7 = vld [vmem:[#allocation7 + $0x268] sm:$0xf]  ;;  %v7427_v8 = vld [vmem:[#allocation7 + $0x274] sm:$0xf0] }
 0x171   : > { %3522 = vmatpush.bf16.msrb.mxu3 %v6560_v32  ;;  %v6195_v32 = vld [vmem:[#allocation7 + $0x108] sm:$0xf]  ;;  %v6261_v22 = vld [vmem:[#allocation7 + $0x198] sm:$0xf0] }
 0x172   : > { %3452 = vmatmul.bf16.vlgmr.msra.gmra.mxu1 %v8062_v27  ;;  %v6264_v6 = vor.u32 %v7397_v18, %v6261_v22  ;;  %v7429_v18 = vld [vmem:[#allocation7 + $0x28c] sm:$0xf]  ;;  %v6389_v22 = vld [vmem:[#allocation7 + $0x298] sm:$0xf0] }
 0x173   : > { %3539 = vmatpush.bf16.msra.mxu0 %v6116_v40  ;;  %3548 = vmatpush.bf16.msra.mxu1 %v6308_v21  ;;  %v6275_v40 = vld [vmem:[#allocation7 + $0x1a8] sm:$0xf]  ;;  %v7353_v21 = vld [vmem:[#allocation7 + $0x2c] sm:$0xf] }
 0x174   : > { %v6276_v48 = vor.u32 %v7403_v41, %v6275_v40  ;;  %v6088_v36 = vor.u32 %v7353_v21, %v6085_v23  ;;  %v7349_v40 = vld [vmem:[#allocation7 + $0xc] sm:$0xf]  ;;  %v6069_v41 = vld [vmem:[#allocation7 + $0x18] sm:$0xf0]  ;;  %v7423_v21 = vld [vmem:[#allocation7 + $0x254] sm:$0xf0] }
 0x175   : > { %3523 = vmatpush.bf16.msrb.mxu3 %v6544_v38  ;;  %v6435_v38 = vld [vmem:[#allocation7 + $0x2e8] sm:$0xf]  ;;  %v6072_v50 = vor.u32 %v7349_v40, %v6069_v41  ;;  %v7389_v23 = vld [vmem:[#allocation7 + $0x14c] sm:$0xf] }
 0x176   : > { %v6323_v41 = vld [vmem:[#allocation7 + $0x208] sm:$0xf] }
 0x177   : > { %3540 = vmatpush.bf16.msra.mxu0 %v6100_v19  ;;  %3549 = vmatpush.bf16.msra.mxu1 %v6292_v37  ;;  %v7365_v19 = vld [vmem:[#allocation7 + $0x8c] sm:$0xf]  ;;  %v7383_v37 = vld [vmem:[#allocation7 + $0x114] sm:$0xf0] }
 0x178   : > { %v6136_v56 = vor.u32 %v7365_v19, %v6133_v51  ;;  %v6312_v51 = vor.u32 %v7409_v42, %v6309_v44  ;;  %v7415_v42 = vld [vmem:[#allocation7 + $0x214] sm:$0xf0]  ;;  %v6197_v44 = vld [vmem:[#allocation7 + $0x118] sm:$0xf0] }
 0x179   : > { %3524 = vmatpush.bf16.msrb.mxu3 %v6528_v46  ;;  %v6445_v46 = vld [vmem:[#allocation7 + $0x310] sm:$0xf0] }
 0x17b   : > { %3541 = vmatpush.bf16.msra.mxu0 %v6084_v0  ;;  %3550 = vmatpush.bf16.msra.mxu1 %v6276_v48  ;;  %v6244_v0 = vor.u32 %v7395_v17, %v6243_v57  ;;  %v6196_v48 = vor.u32 %v7383_v37, %v6195_v32  ;;  %v7405_v57 = vld [vmem:[#allocation7 + $0x1cc] sm:$0xf]  ;;  %v6293_v17 = vld [vmem:[#allocation7 + $0x1d8] sm:$0xf0] }
 0x17c   : > { %v6296_v59 = vor.u32 %v7405_v57, %v6293_v17  ;;  %v7385_v32 = vld [vmem:[#allocation7 + $0x12c] sm:$0xf]  ;;  %v6421_v17 = vld [vmem:[#allocation7 + $0x2d8] sm:$0xf0] }
 0x17d   : > { %3525 = vmatpush.bf16.msrb.mxu3 %v6512_v13  ;;  %v7437_v57 = vld [vmem:[#allocation7 + $0x2cc] sm:$0xf] }
 0x17f   : > { %3542 = vmatpush.bf16.msra.mxu0 %v6068_v16  ;;  %v2536_v60 = vpop.f32.mrf.mxu0  ;;  %3551 = vmatpush.bf16.msra.mxu1 %v6260_v54  ;;  %v7387_v16 = vld [vmem:[#allocation7 + $0x134] sm:$0xf0] }
 0x180   : > { %v2549_v63 = vpop.f32.mrf.mxu1  ;;  %v2537_v2 = vadd.f32 %v2536_v60, %v8041_v55  ;;  %v6212_v31 = vor.u32 %v7387_v16, %v6211_v47  ;;  %v6403_v60 = vld [vmem:[#allocation7 + $0x2a8] sm:$0xf]  ;;  %v6372_v47 = vor.u32 %v7427_v8, %v6371_v7  ;;  %v6392_v7 = vor.u32 %v7429_v18, %v6389_v22 }
 0x181   : > { %3526 = vmatpush.bf16.msrb.mxu3 %v6496_v1 }
 0x182   : > { %3543 = vmatmul.bf16.vlgmr.msra.gmra.mxu0 %v8056_v53  ;;  %3504 = vmatmul.bf16.vlgmr.msrb.gmra.mxu1 %v8062_v27  ;;  %v2550_v12 = vadd.f32 %v2549_v63, %v2537_v2  ;;  %v6277_v63 = vld [vmem:[#allocation7 + $0x1b8] sm:$0xf0]  ;;  %v6387_v2 = vld [vmem:[#allocation7 + $0x288] sm:$0xf] }
 0x183   : > { %3587 = vmatpush.bf16.msrb.mxu0 %v6184_v28  ;;  %3552 = vmatpush.bf16.msra.mxu1 %v6244_v0  ;;  %v6404_v0 = vor.u32 %v7435_v61, %v6403_v60  ;;  %v6280_v1 = vor.u32 %v7401_v62, %v6277_v63  ;;  %v6424_v60 = vor.u32 %v7437_v57, %v6421_v17  ;;  %v7433_v62 = vld [vmem:[#allocation7 + $0x2ac] sm:$0xf]  ;;  %v6405_v63 = vld [vmem:[#allocation7 + $0x2b8] sm:$0xf0] }
 0x184   : > { %v6469_v57 = vld [vmem:[#allocation7 + $0x338] sm:$0xf0] }
 0x185   : > { %3527 = vmatpush.bf16.msrb.mxu3 %v6480_v11  ;;  %v6245_v11 = vld [vmem:[#allocation7 + $0x178] sm:$0xf0] }
 0x187   : > { %3588 = vmatpush.bf16.msrb.mxu0 %v6168_v39  ;;  %v2562_v55 = vpop.f32.mrf.mxu2  ;;  %v2538_v28 = vpop.f32.mrf.mxu0  ;;  %3553 = vmatpush.bf16.msra.mxu1 %v6228_v10  ;;  %v7443_v39 = vld [vmem:[#allocation7 + $0x2f4] sm:$0xf0]  ;;  %v7393_v10 = vld [vmem:[#allocation7 + $0x16c] sm:$0xf] }
 0x188   : > { %v2563_v24 = vadd.f32 %v2562_v55, %v2550_v12  ;;  %v2575_v25 = vpop.f32.mrf.mxu3  ;;  %v2551_v33 = vpop.f32.mrf.mxu1  ;;  %v6436_v19 = vor.u32 %v7443_v39, %v6435_v38  ;;  %v6248_v16 = vor.u32 %v7393_v10, %v6245_v11  ;;  %v6355_v55 = vld [vmem:[#allocation7 + $0x248] sm:$0xf]  ;;  %v7425_v10 = vld [vmem:[#allocation7 + $0x26c] sm:$0xf]  ;;  %v6373_v11 = vld [vmem:[#allocation7 + $0x278] sm:$0xf0] }
 0x189   : > { %3528 = vmatpush.bf16.msrb.mxu3 %v6464_v34 }
 0x18a   : > { %v2576_v35 = vadd.f32 %v2575_v25, %v2563_v24  ;;  %v6229_v24 = vld [vmem:[#allocation7 + $0x158] sm:$0xf0] }
 0x18b   : > { %3589 = vmatpush.bf16.msrb.mxu0 %v6152_v49  ;;  %3554 = vmatpush.bf16.msra.mxu1 %v6212_v31  ;;  %v6448_v49 = vor.u32 %v7444_v45, %v6445_v46  ;;  %v6232_v28 = vor.u32 %v7389_v23, %v6229_v24  ;;  %v7419_v31 = vld [vmem:[#allocation7 + $0x234] sm:$0xf0]  ;;  %v7441_v46 = vld [vmem:[#allocation7 + $0x2ec] sm:$0xf] }
 0x18c   : > { %v2643_v43 = vadd.f32 %v2635_v26, %v2576_v35  ;;  %v6356_v26 = vor.u32 %v7423_v21, %v6355_v55  ;;  %v2636_v35 = vperm.slane %v8053_v5, 3  ;;  %v6340_v39 = vor.u32 %v7419_v31, %v6339_v29  ;;  %v6483_v55 = vld [vmem:[#allocation7 + $0x348] sm:$0xf]  ;;  %v7455_v21 = vld [vmem:[#allocation7 + $0x354] sm:$0xf0] }
 0x18d   : > { %3529 = vmatpush.bf16.msrb.mxu3 %v6448_v49  ;;  %v6563_v49 = vld [vmem:[#allocation7 + $0x3e8] sm:$0xf]  ;;  %v6324_v5 = vor.u32 %v7415_v42, %v6323_v41  ;;  %v6484_v24 = vor.u32 %v7455_v21, %v6483_v55  ;;  %v7451_v29 = vld [vmem:[#allocation7 + $0x334] sm:$0xf0]  ;;  %v6549_v41 = vld [vmem:[#allocation7 + $0x3d8] sm:$0xf0] }
 0x18e   : > { %v2647_v9 = vmax.f32 %v2643_v43, 0.0  ;;  %v7381_v43 = vld [vmem:[#allocation7 + $0x10c] sm:$0xf]  ;;  %v7538_v55 = vld [vmem:[#allocation8 + $0x1ec] sm:$0xf0] }
 0x18f   : > { %3590 = vmatpush.bf16.msrb.mxu0 %v6136_v56  ;;  %v2564_v52 = vpop.f32.mrf.mxu2  ;;  %v7439_v56 = vld [vmem:[#allocation7 + $0x2d4] sm:$0xf0]  ;;  %3555 = vmatpush.bf16.msra.mxu1 %v6196_v48  ;;  %v6437_v48 = vld [vmem:[#allocation7 + $0x2f8] sm:$0xf0] }
 0x190   : > { %v8069_v54 = vpack.c.bf16 %v2647_v9, %v2647_v9  ;;  %v2577_v13 = vpop.f32.mrf.mxu3  ;;  %v6420_v58 = vor.u32 %v7439_v56, %v6419_v14  ;;  %v7475_v9 = vld [vmem:[#allocation7 + $0x3f4] sm:$0xf0]  ;;  %v6440_v52 = vor.u32 %v7441_v46, %v6437_v48  ;;  %v7461_v48 = vld [vmem:[#allocation7 + $0x38c] sm:$0xf] }
 0x191   : > { %v6564_v56 = vor.u32 %v7475_v9, %v6563_v49  ;;  %v6517_v49 = vld [vmem:[#allocation7 + $0x398] sm:$0xf0] }
 0x192   : > { %3465 = vmatmul.bf16.vlgmr.msra.gmra.mxu2 %v8069_v54  ;;  %3556 = vmatmul.bf16.vlgmr.msra.gmra.mxu1 %v8062_v27  ;;  %v6520_v9 = vor.u32 %v7461_v48, %v6517_v49  ;;  %v6689_v48 = vld [vmem:[#allocation8 + $0xf0] sm:$0xf0] }
 0x193   : > { %3591 = vmatpush.bf16.msrb.mxu0 %v6120_v3  ;;  %3561 = vmatpush.bf16.msra.mxu2 %v6436_v19  ;;  %v7431_v3 = vld [vmem:[#allocation7 + $0x294] sm:$0xf0]  ;;  %v6200_v19 = vor.u32 %v7381_v43, %v6197_v44  ;;  %v7465_v43 = vld [vmem:[#allocation7 + $0x3ac] sm:$0xf]  ;;  %v6533_v44 = vld [vmem:[#allocation7 + $0x3b8] sm:$0xf0] }
 0x194   : > { %3600 = vmatpush.bf16.msrb.mxu1 %v6312_v51  ;;  %v6388_v4 = vor.u32 %v7431_v3, %v6387_v2  ;;  %v6408_v2 = vor.u32 %v7433_v62, %v6405_v63 }
 0x197   : > { %3592 = vmatpush.bf16.msrb.mxu0 %v6104_v15  ;;  %3562 = vmatpush.bf16.msra.mxu2 %v6420_v58  ;;  %v6547_v58 = vld [vmem:[#allocation7 + $0x3c8] sm:$0xf] }
 0x198   : > { %3601 = vmatpush.bf16.msrb.mxu1 %v6296_v59  ;;  %v7471_v59 = vld [vmem:[#allocation7 + $0x3d4] sm:$0xf0] }
 0x199   : > { %v6548_v61 = vor.u32 %v7471_v59, %v6547_v58  ;;  %v7445_v59 = vld [vmem:[#allocation7 + $0x30c] sm:$0xf] }
 0x19b   : > { %3593 = vmatpush.bf16.msrb.mxu0 %v6088_v36  ;;  %3563 = vmatpush.bf16.msra.mxu2 %v6404_v0  ;;  %v6531_v0 = vld [vmem:[#allocation7 + $0x3a8] sm:$0xf] }
 0x19c   : > { %3602 = vmatpush.bf16.msrb.mxu1 %v6280_v1  ;;  %v7467_v1 = vld [vmem:[#allocation7 + $0x3b4] sm:$0xf0] }
 0x19d   : > { %v6532_v3 = vor.u32 %v7467_v1, %v6531_v0 }
 0x19f   : > { %3594 = vmatpush.bf16.msrb.mxu0 %v6072_v50  ;;  %v2588_v12 = vpop.f32.mrf.mxu0  ;;  %3564 = vmatpush.bf16.msra.mxu2 %v6388_v4  ;;  %v6515_v4 = vld [vmem:[#allocation7 + $0x388] sm:$0xf] }
 0x1a0   : > { %v2601_v15 = vpop.f32.mrf.mxu1  ;;  %3603 = vmatpush.bf16.msrb.mxu1 %v6264_v6  ;;  %v7463_v6 = vld [vmem:[#allocation7 + $0x394] sm:$0xf0] }
 0x1a1   : > { %v6516_v8 = vor.u32 %v7463_v6, %v6515_v4  ;;  %v6671_v4 = vld [vmem:[#allocation8 + $0xc0] sm:$0xf]  ;;  %v7502_v6 = vld [vmem:[#allocation8 + $0xcc] sm:$0xf0] }
 0x1a2   : > { %3595 = vmatmul.bf16.vlgmr.msrb.gmra.mxu0 %v8056_v53  ;;  %v2589_v53 = vadd.f32 %v2588_v12, %v8047_v20  ;;  %3517 = vmatmul.bf16.vlgmr.msrb.gmra.mxu2 %v8069_v54  ;;  %v6213_v20 = vld [vmem:[#allocation7 + $0x138] sm:$0xf0]  ;;  %v6499_v12 = vld [vmem:[#allocation7 + $0x368] sm:$0xf] }
 0x1a3   : > { %3565 = vmatpush.bf16.msra.mxu2 %v6372_v47  ;;  %v6216_v40 = vor.u32 %v7385_v32, %v6213_v20  ;;  %v7421_v47 = vld [vmem:[#allocation7 + $0x24c] sm:$0xf]  ;;  %v6325_v20 = vld [vmem:[#allocation7 + $0x218] sm:$0xf0] }
 0x1a4   : > { %v2602_v25 = vadd.f32 %v2601_v15, %v2589_v53  ;;  %3604 = vmatpush.bf16.msrb.mxu1 %v6248_v16  ;;  %v6376_v15 = vor.u32 %v7425_v10, %v6373_v11  ;;  %v6357_v16 = vld [vmem:[#allocation7 + $0x258] sm:$0xf0]  ;;  %v7413_v32 = vld [vmem:[#allocation7 + $0x20c] sm:$0xf]  ;;  %v7498_v10 = vld [vmem:[#allocation8 + $0xac] sm:$0xf0] }
 0x1a5   : > { %v6360_v23 = vor.u32 %v7421_v47, %v6357_v16  ;;  %v7490_v47 = vld [vmem:[#allocation8 + $0x6c] sm:$0xf0]  ;;  %v6815_v16 = vld [vmem:[#allocation8 + $0x1e0] sm:$0xf] }
 0x1a6   : > { %v6816_v21 = vor.u32 %v7538_v55, %v6815_v16  ;;  %v8105_v16 = vld [vmem:[%s8253_s7] sm:$0xf] }
 0x1a7   : > { %v2614_v30 = vpop.f32.mrf.mxu2  ;;  %v2590_v36 = vpop.f32.mrf.mxu0  ;;  %3566 = vmatpush.bf16.msra.mxu2 %v6356_v26  ;;  %v6341_v26 = vld [vmem:[#allocation7 + $0x238] sm:$0xf0] }
 0x1a8   : > { %v2615_v33 = vadd.f32 %v2614_v30, %v2602_v25  ;;  %v2627_v34 = vpop.f32.mrf.mxu3  ;;  %v2603_v37 = vpop.f32.mrf.mxu1  ;;  %3605 = vmatpush.bf16.msrb.mxu1 %v6232_v28  ;;  %v7417_v25 = vld [vmem:[#allocation7 + $0x22c] sm:$0xf]  ;;  %v6467_v28 = vld [vmem:[#allocation7 + $0x328] sm:$0xf]  ;;  %v6565_v36 = vld [vmem:[#allocation7 + $0x3f8] sm:$0xf0] }
 0x1a9   : > { %v6344_v30 = vor.u32 %v7417_v25, %v6341_v26  ;;  %v6468_v31 = vor.u32 %v7451_v29, %v6467_v28  ;;  %v6328_v37 = vor.u32 %v7413_v32, %v6325_v20  ;;  %v6607_v25 = vld [vmem:[#allocation8 + $0x40] sm:$0xf]  ;;  %v7486_v26 = vld [vmem:[#allocation8 + $0x4c] sm:$0xf0] }
 0x1aa   : > { %v2628_v38 = vadd.f32 %v2627_v34, %v2615_v33  ;;  %v6451_v33 = vld [vmem:[#allocation7 + $0x308] sm:$0xf]  ;;  %v7447_v34 = vld [vmem:[#allocation7 + $0x314] sm:$0xf0]  ;;  %v6799_v28 = vld [vmem:[#allocation8 + $0x1c0] sm:$0xf]  ;;  %v6608_v29 = vor.u32 %v7486_v26, %v6607_v25 }
 0x1ab   : > { %3567 = vmatpush.bf16.msra.mxu2 %v6340_v39  ;;  %v7558_v26 = vld [vmem:[#allocation8 + $0x28c] sm:$0xf0] }
 0x1ac   : > { %v2644_v45 = vadd.f32 %v2636_v35, %v2628_v38  ;;  %3606 = vmatpush.bf16.msrb.mxu1 %v6216_v40  ;;  %v7473_v35 = vld [vmem:[#allocation7 + $0x3ec] sm:$0xf]  ;;  %v6452_v38 = vor.u32 %v7447_v34, %v6451_v33  ;;  %v6591_v33 = vld [vmem:[#allocation8 + $0x20] sm:$0xf]  ;;  %v7482_v34 = vld [vmem:[#allocation8 + $0x2c] sm:$0xf0] }
 0x1ad   : > { %v6568_v39 = vor.u32 %v7473_v35, %v6565_v36  ;;  %v7469_v40 = vld [vmem:[#allocation7 + $0x3cc] sm:$0xf]  ;;  %v6783_v35 = vld [vmem:[#allocation8 + $0x1a0] sm:$0xf]  ;;  %v6592_v36 = vor.u32 %v7482_v34, %v6591_v33  ;;  %v7536_v33 = vld [vmem:[#allocation8 + $0x1e4] sm:$0xf] }
 0x1ae   : > { %v2648_v50 = vmax.f32 %v2644_v45, 0.0  ;;  %v6552_v42 = vor.u32 %v7469_v40, %v6549_v41  ;;  %v6536_v45 = vor.u32 %v7465_v43, %v6533_v44  ;;  %v6575_v40 = vld [vmem:[#allocation8] sm:$0xf]  ;;  %v7478_v41 = vld [vmem:[#allocation8 + $0xc] sm:$0xf0] }
 0x1af   : > { %v2616_v51 = vpop.f32.mrf.mxu2  ;;  %3568 = vmatpush.bf16.msra.mxu2 %v6324_v5  ;;  %v6501_v5 = vld [vmem:[#allocation7 + $0x378] sm:$0xf0]  ;;  %v6576_v43 = vor.u32 %v7478_v41, %v6575_v40  ;;  %v7526_v44 = vld [vmem:[#allocation8 + $0x18c] sm:$0xf0]  ;;  %v6817_v34 = vld [vmem:[#allocation8 + $0x1f0] sm:$0xf0] }
 0x1b0   : > { %v8077_v14 = vpack.c.bf16 %v2648_v50, %v2648_v50  ;;  %v2629_v13 = vpop.f32.mrf.mxu3  ;;  %3607 = vmatpush.bf16.msrb.mxu1 %v6200_v19  ;;  %v7457_v50 = vld [vmem:[#allocation7 + $0x36c] sm:$0xf]  ;;  %v7484_v41 = vld [vmem:[#allocation8 + $0x44] sm:$0xf] }
 0x1b1   : > { %v6504_v19 = vor.u32 %v7457_v50, %v6501_v5  ;;  %v6485_v13 = vld [vmem:[#allocation7 + $0x358] sm:$0xf0] }
 0x1b2   : > { %3478 = vmatmul.bf16.vlgmr.msra.gmra.mxu3 %v8077_v14  ;;  %3569 = vmatmul.bf16.vlgmr.msra.gmra.mxu2 %v8069_v54 }
 0x1b3   : > { %3613 = vmatpush.bf16.msrb.mxu2 %v6440_v52  ;;  %3574 = vmatpush.bf16.msra.mxu3 %v6564_v56  ;;  %v7453_v52 = vld [vmem:[#allocation7 + $0x34c] sm:$0xf] }
 0x1b4   : > { %3608 = vmatmul.bf16.vlgmr.msrb.gmra.mxu1 %v8062_v27  ;;  %v7459_v27 = vld [vmem:[#allocation7 + $0x374] sm:$0xf0]  ;;  %v7449_v56 = vld [vmem:[#allocation7 + $0x32c] sm:$0xf] }
 0x1b5   : > { %v6500_v53 = vor.u32 %v7459_v27, %v6499_v12  ;;  %v6472_v17 = vor.u32 %v7449_v56, %v6469_v57  ;;  %v7494_v27 = vld [vmem:[#allocation8 + $0x8c] sm:$0xf0]  ;;  %4514 = vmatpush.bf16.msra.mxu1 %v6816_v21  ;;  %v7500_v56 = vld [vmem:[#allocation8 + $0xc4] sm:$0xf]  ;;  %v6673_v57 = vld [vmem:[#allocation8 + $0xd0] sm:$0xf0] }
 0x1b6   : > { %v6703_v21 = vld [vmem:[#allocation8 + $0x100] sm:$0xf] }
 0x1b7   : > { %3614 = vmatpush.bf16.msrb.mxu2 %v6424_v60  ;;  %3575 = vmatpush.bf16.msra.mxu3 %v6548_v61  ;;  %v6453_v60 = vld [vmem:[#allocation7 + $0x318] sm:$0xf0] }
 0x1b8   : > { %v6456_v61 = vor.u32 %v7445_v59, %v6453_v60  ;;  %v6676_v59 = vor.u32 %v7500_v56, %v6673_v57 }
 0x1bb   : > { %3615 = vmatpush.bf16.msrb.mxu2 %v6408_v2  ;;  %3576 = vmatpush.bf16.msra.mxu3 %v6532_v3  ;;  %v6687_v2 = vld [vmem:[#allocation8 + $0xe0] sm:$0xf]  ;;  %v7506_v3 = vld [vmem:[#allocation8 + $0xec] sm:$0xf0] }
 0x1bc   : > { %v6688_v18 = vor.u32 %v7506_v3, %v6687_v2  ;;  %v7566_v3 = vld [vmem:[#allocation8 + $0x2cc] sm:$0xf0] }
 0x1be   : > { %4501 = vmatpush.bf16.msra.mxu0 %v6688_v18  ;;  %v7496_v18 = vld [vmem:[#allocation8 + $0xa4] sm:$0xf] }
 0x1bf   : > { %3616 = vmatpush.bf16.msrb.mxu2 %v6392_v7  ;;  %3577 = vmatpush.bf16.msra.mxu3 %v6516_v8  ;;  %v6672_v7 = vor.u32 %v7502_v6, %v6671_v4  ;;  %v6655_v8 = vld [vmem:[#allocation8 + $0xa0] sm:$0xf] }
 0x1c0   : > { %v6656_v12 = vor.u32 %v7498_v10, %v6655_v8  ;;  %v7514_v8 = vld [vmem:[#allocation8 + $0x12c] sm:$0xf0]  ;;  %v6911_v10 = vld [vmem:[#allocation8 + $0x2a0] sm:$0xf] }
 0x1c2   : > { %3530 = vmatmul.bf16.vlgmr.msrb.gmra.mxu3 %v8077_v14  ;;  %4502 = vmatpush.bf16.msra.mxu0 %v6672_v7  ;;  %v6719_v7 = vld [vmem:[#allocation8 + $0x120] sm:$0xf] }
 0x1c3   : > { %3617 = vmatpush.bf16.msrb.mxu2 %v6376_v15  ;;  %3578 = vmatpush.bf16.msra.mxu3 %v6500_v53  ;;  %v6623_v15 = vld [vmem:[#allocation8 + $0x60] sm:$0xf] }
 0x1c6   : > { %4503 = vmatpush.bf16.msra.mxu0 %v6656_v12  ;;  %v6720_v12 = vor.u32 %v7514_v8, %v6719_v7 }
 0x1c7   : > { %3618 = vmatpush.bf16.msrb.mxu2 %v6360_v23  ;;  %3579 = vmatpush.bf16.msra.mxu3 %v6484_v24  ;;  %v6624_v24 = vor.u32 %v7490_v47, %v6623_v15  ;;  %v6641_v15 = vld [vmem:[#allocation8 + $0x90] sm:$0xf0] }
 0x1cb   : > { %3619 = vmatpush.bf16.msrb.mxu2 %v6344_v30  ;;  %3580 = vmatpush.bf16.msra.mxu3 %v6468_v31  ;;  %v7534_v30 = vld [vmem:[#allocation8 + $0x1cc] sm:$0xf0] }
 0x1cc   : > { %v6800_v31 = vor.u32 %v7534_v30, %v6799_v28  ;;  %v7488_v28 = vld [vmem:[#allocation8 + $0x64] sm:$0xf] }
 0x1ce   : > { %4515 = vmatpush.bf16.msra.mxu1 %v6800_v31 }
 0x1cf   : > { %3620 = vmatpush.bf16.msrb.mxu2 %v6328_v37  ;;  %3581 = vmatpush.bf16.msra.mxu3 %v6452_v38  ;;  %v8085_v46 = vpop.f32.mrf.mxu0  ;;  %v7530_v37 = vld [vmem:[#allocation8 + $0x1ac] sm:$0xf0] }
 0x1d0   : > { %v6784_v38 = vor.u32 %v7530_v37, %v6783_v35  ;;  %v6820_v35 = vor.u32 %v7536_v33, %v6817_v34  ;;  %v6879_v37 = vld [vmem:[#allocation8 + $0x260] sm:$0xf]  ;;  %v7516_v34 = vld [vmem:[#allocation8 + $0x144] sm:$0xf] }
 0x1d2   : > { %3621 = vmatmul.bf16.vlgmr.msrb.gmra.mxu2 %v8069_v54  ;;  %3582 = vmatmul.bf16.vlgmr.msra.gmra.mxu3 %v8077_v14  ;;  %v6488_v54 = vor.u32 %v7453_v52, %v6485_v13  ;;  %v6943_v52 = vld [vmem:[#allocation8 + $0x2e0] sm:$0xf] }
 0x1d3   : > { %3626 = vmatpush.bf16.msrb.mxu3 %v6568_v39  ;;  %4516 = vmatpush.bf16.msra.mxu1 %v6784_v38  ;;  %v7554_v38 = vld [vmem:[#allocation8 + $0x26c] sm:$0xf0] }
 0x1d4   : > { %v6880_v40 = vor.u32 %v7554_v38, %v6879_v37 }
 0x1d7   : > { %3627 = vmatpush.bf16.msrb.mxu3 %v6552_v42  ;;  %v3442_v51 = vpop.f32.mrf.mxu0  ;;  %v6767_v42 = vld [vmem:[#allocation8 + $0x180] sm:$0xf] }
 0x1d8   : > { %v6768_v49 = vor.u32 %v7526_v44, %v6767_v42  ;;  %v7522_v51 = vld [vmem:[#allocation8 + $0x16c] sm:$0xf0]  ;;  %v6609_v42 = vld [vmem:[#allocation8 + $0x50] sm:$0xf0] }
 0x1d9   : > { %v6612_v44 = vor.u32 %v7484_v41, %v6609_v42 }
 0x1da   : > { %4517 = vmatpush.bf16.msra.mxu1 %v6768_v49 }
 0x1db   : > { %3628 = vmatpush.bf16.msrb.mxu3 %v6536_v45  ;;  %v7504_v45 = vld [vmem:[#allocation8 + $0xe4] sm:$0xf] }
 0x1df   : > { %3629 = vmatpush.bf16.msrb.mxu3 %v6520_v9  ;;  %v8087_v58 = vpop.f32.mrf.mxu0  ;;  %v6692_v9 = vor.u32 %v7504_v45, %v6689_v48  ;;  %v6801_v45 = vld [vmem:[#allocation8 + $0x1d0] sm:$0xf0] }
 0x1e3   : > { %3630 = vmatpush.bf16.msrb.mxu3 %v6504_v19  ;;  %v6751_v19 = vld [vmem:[#allocation8 + $0x160] sm:$0xf] }
 0x1e4   : > { %v6752_v13 = vor.u32 %v7522_v51, %v6751_v19 }
 0x1e6   : > { %4518 = vmatpush.bf16.msra.mxu1 %v6752_v13  ;;  %v6593_v13 = vld [vmem:[#allocation8 + $0x30] sm:$0xf0] }
 0x1e7   : > { %3631 = vmatpush.bf16.msrb.mxu3 %v6488_v54  ;;  %v3494_v62 = vpop.f32.mrf.mxu0  ;;  %v7570_v54 = vld [vmem:[#allocation8 + $0x2ec] sm:$0xf0] }
 0x1e8   : > { %v7518_v62 = vld [vmem:[#allocation8 + $0x14c] sm:$0xf0] }
 0x1eb   : > { %3632 = vmatpush.bf16.msrb.mxu3 %v6472_v17  ;;  %v6944_v17 = vor.u32 %v7570_v54, %v6943_v52  ;;  %v7480_v52 = vld [vmem:[#allocation8 + $0x24] sm:$0xf] }
 0x1ec   : > { %v7528_v54 = vld [vmem:[#allocation8 + $0x1a4] sm:$0xf]  ;;  %v6596_v57 = vor.u32 %v7480_v52, %v6593_v13  ;;  %v6913_v52 = vld [vmem:[#allocation8 + $0x2b0] sm:$0xf0] }
 0x1ed   : > { %4527 = vmatpush.bf16.msra.mxu2 %v6944_v17  ;;  %v6785_v17 = vld [vmem:[#allocation8 + $0x1b0] sm:$0xf0] }
 0x1ef   : > { %3633 = vmatpush.bf16.msrb.mxu3 %v6456_v61  ;;  %v8090_v63 = vpop.f32.mrf.mxu1  ;;  %v6735_v61 = vld [vmem:[#allocation8 + $0x140] sm:$0xf] }
 0x1f0   : > { %v6736_v2 = vor.u32 %v7518_v62, %v6735_v61  ;;  %v7546_v61 = vld [vmem:[#allocation8 + $0x22c] sm:$0xf0] }
 0x1f2   : > { %3634 = vmatmul.bf16.vlgmr.msrb.gmra.mxu3 %v8077_v14  ;;  %v6639_v14 = vld [vmem:[#allocation8 + $0x80] sm:$0xf]  ;;  %4519 = vmatpush.bf16.msra.mxu1 %v6736_v2  ;;  %v7476_v2 = vld [vmem:[#allocation8 + $0x4] sm:$0xf] }
 0x1f3   : > { %v6640_v53 = vor.u32 %v7494_v27, %v6639_v14  ;;  %v7562_v14 = vld [vmem:[#allocation8 + $0x2ac] sm:$0xf0]  ;;  %v7492_v27 = vld [vmem:[#allocation8 + $0x84] sm:$0xf] }
 0x1f4   : > { %v6644_v47 = vor.u32 %v7492_v27, %v6641_v15  ;;  %v7602_v15 = vld [vmem:[#allocation8 + $0x3ec] sm:$0xf0] }
 0x1f5   : > { %4504 = vmatpush.bf16.msra.mxu0 %v6640_v53  ;;  %v6912_v53 = vor.u32 %v7562_v14, %v6911_v10  ;;  %v7071_v14 = vld [vmem:[#allocation8 + $0x3e0] sm:$0xf] }
 0x1f6   : > { %4520 = vmatpush.bf16.msra.mxu1 %v6720_v12  ;;  %v7542_v12 = vld [vmem:[#allocation8 + $0x20c] sm:$0xf0] }
 0x1f7   : > { %v3455_v1 = vpop.f32.mrf.mxu1 }
 0x1f8   : > { %v6927_v1 = vld [vmem:[#allocation8 + $0x2c0] sm:$0xf] }
 0x1f9   : > { %4505 = vmatpush.bf16.msra.mxu0 %v6624_v24  ;;  %v6928_v4 = vor.u32 %v7566_v3, %v6927_v1  ;;  %v6895_v24 = vld [vmem:[#allocation8 + $0x280] sm:$0xf]  ;;  %v6577_v3 = vld [vmem:[#allocation8 + $0x10] sm:$0xf0] }
 0x1fa   : > { %v6896_v30 = vor.u32 %v7558_v26, %v6895_v24  ;;  %v7568_v24 = vld [vmem:[#allocation8 + $0x2e4] sm:$0xf]  ;;  %v2784_v26 = vperm.slane %v8105_v16, 1 }
 0x1fb   : > { %4528 = vmatpush.bf16.msra.mxu2 %v6928_v4  ;;  %v6580_v4 = vor.u32 %v7476_v2, %v6577_v3 }
 0x1fc   : > { %v3493_v42 = vadd.f32 %v8087_v58, %v2784_v26 }
 0x1fd   : > { %4506 = vmatpush.bf16.msra.mxu0 %v6608_v29  ;;  %v6625_v29 = vld [vmem:[#allocation8 + $0x70] sm:$0xf0] }
 0x1fe   : > { %v6628_v31 = vor.u32 %v7488_v28, %v6625_v29 }
 0x1ff   : > { %v8092_v0 = vpop.f32.mrf.mxu0  ;;  %v8094_v11 = vpop.f32.mrf.mxu1  ;;  %4529 = vmatpush.bf16.msra.mxu2 %v6912_v53  ;;  %v7520_v53 = vld [vmem:[#allocation8 + $0x164] sm:$0xf] }
 0x201   : > { %4507 = vmatpush.bf16.msra.mxu0 %v6592_v36  ;;  %v2783_v36 = vperm.slane %v8105_v16, 0 }
 0x203   : > { %4530 = vmatpush.bf16.msra.mxu2 %v6896_v30  ;;  %v7055_v30 = vld [vmem:[#allocation8 + $0x3c0] sm:$0xf] }
 0x205   : > { %4508 = vmatpush.bf16.msra.mxu0 %v6576_v43  ;;  %v7532_v43 = vld [vmem:[#allocation8 + $0x1c4] sm:$0xf] }
 0x206   : > { %v6804_v49 = vor.u32 %v7532_v43, %v6801_v45  ;;  %v7039_v45 = vld [vmem:[#allocation8 + $0x3a0] sm:$0xf] }
 0x207   : > { %v3546_v22 = vpop.f32.mrf.mxu0  ;;  %v3507_v23 = vpop.f32.mrf.mxu1  ;;  %4531 = vmatpush.bf16.msra.mxu2 %v6880_v40  ;;  %v6929_v40 = vld [vmem:[#allocation8 + $0x2d0] sm:$0xf0] }
 0x208   : > { %v6657_v22 = vld [vmem:[#allocation8 + $0xb0] sm:$0xf0]  ;;  %v7510_v23 = vld [vmem:[#allocation8 + $0x10c] sm:$0xf0] }
 0x209   : > { %4553 = vmatpush.bf16.msrb.mxu0 %v6692_v9  ;;  %v6660_v6 = vor.u32 %v7496_v18, %v6657_v22  ;;  %v6704_v25 = vor.u32 %v7510_v23, %v6703_v21  ;;  %v3441_v9 = vadd.f32 %v8085_v46, %v2783_v36  ;;  %v6847_v46 = vld [vmem:[#allocation8 + $0x220] sm:$0xf]  ;;  %v7524_v18 = vld [vmem:[#allocation8 + $0x184] sm:$0xf]  ;;  %v7072_v21 = vor.u32 %v7602_v15, %v7071_v14  ;;  %v7582_v15 = vld [vmem:[#allocation8 + $0x34c] sm:$0xf0] }
 0x20a   : > { %v6848_v1 = vor.u32 %v7546_v61, %v6847_v46  ;;  %v7564_v36 = vld [vmem:[#allocation8 + $0x2c4] sm:$0xf]  ;;  %v6705_v46 = vld [vmem:[#allocation8 + $0x110] sm:$0xf0] }
 0x20b   : > { %4521 = vmatpush.bf16.msra.mxu1 %v6704_v25  ;;  %v3454_v56 = vadd.f32 %v8090_v63, %v3441_v9  ;;  %v6945_v25 = vld [vmem:[#allocation8 + $0x2f0] sm:$0xf0]  ;;  %4540 = vmatpush.bf16.msra.mxu3 %v7072_v21  ;;  %v6932_v43 = vor.u32 %v7564_v36, %v6929_v40  ;;  %v7556_v61 = vld [vmem:[#allocation8 + $0x284] sm:$0xf] }
 0x20c   : > { %v6948_v28 = vor.u32 %v7568_v24, %v6945_v25  ;;  %v6865_v24 = vld [vmem:[#allocation8 + $0x250] sm:$0xf0]  ;;  %v7544_v40 = vld [vmem:[#allocation8 + $0x224] sm:$0xf] }
 0x20d   : > { %4554 = vmatpush.bf16.msrb.mxu0 %v6676_v59  ;;  %v6788_v59 = vor.u32 %v7528_v54, %v6785_v17  ;;  %v7590_v17 = vld [vmem:[#allocation8 + $0x38c] sm:$0xf0] }
 0x20f   : > { %v8096_v32 = vpop.f32.mrf.mxu1  ;;  %4566 = vmatpush.bf16.msrb.mxu1 %v6820_v35  ;;  %v6737_v35 = vld [vmem:[#allocation8 + $0x150] sm:$0xf0] }
 0x210   : > { %v6740_v38 = vor.u32 %v7516_v34, %v6737_v35  ;;  %v6975_v34 = vld [vmem:[#allocation8 + $0x320] sm:$0xf]  ;;  %v7578_v35 = vld [vmem:[#allocation8 + $0x32c] sm:$0xf0] }
 0x211   : > { %4555 = vmatpush.bf16.msrb.mxu0 %v6660_v6  ;;  %v6769_v6 = vld [vmem:[#allocation8 + $0x190] sm:$0xf0] }
 0x212   : > { %v6772_v63 = vor.u32 %v7524_v18, %v6769_v6 }
 0x213   : > { %4567 = vmatpush.bf16.msrb.mxu1 %v6804_v49  ;;  %v3506_v49 = vadd.f32 %v8094_v11, %v3493_v42  ;;  %v6695_v42 = vld [vmem:[#allocation8 + $0xe8] sm:$0xf] }
 0x215   : > { %v8100_v39 = vpop.f32.mrf.mxu2  ;;  %4556 = vmatpush.bf16.msrb.mxu0 %v6644_v47  ;;  %v6753_v47 = vld [vmem:[#allocation8 + $0x170] sm:$0xf0] }
 0x216   : > { %v6756_v23 = vor.u32 %v7520_v53, %v6753_v47 }
 0x217   : > { %v3559_v50 = vpop.f32.mrf.mxu1  ;;  %4568 = vmatpush.bf16.msrb.mxu1 %v6788_v59 }
 0x218   : > { %v6863_v50 = vld [vmem:[#allocation8 + $0x240] sm:$0xf] }
 0x219   : > { %4557 = vmatpush.bf16.msrb.mxu0 %v6628_v31  ;;  %v7598_v31 = vld [vmem:[#allocation8 + $0x3cc] sm:$0xf0] }
 0x21a   : > { %v7056_v33 = vor.u32 %v7598_v31, %v7055_v30 }
 0x21b   : > { %4569 = vmatpush.bf16.msrb.mxu1 %v6772_v63  ;;  %v7552_v63 = vld [vmem:[#allocation8 + $0x264] sm:$0xf] }
 0x21c   : > { %4541 = vmatpush.bf16.msra.mxu3 %v7056_v33 }
 0x21d   : > { %v3468_v60 = vpop.f32.mrf.mxu2  ;;  %4558 = vmatpush.bf16.msrb.mxu0 %v6612_v44 }
 0x21e   : > { %v3467_v60 = vadd.f32 %v8100_v39, %v3454_v56  ;;  %v6831_v39 = vld [vmem:[#allocation8 + $0x200] sm:$0xf] }
 0x21f   : > { %v8098_v20 = vpop.f32.mrf.mxu0  ;;  %v6832_v27 = vor.u32 %v7542_v12, %v6831_v39  ;;  %4570 = vmatpush.bf16.msrb.mxu1 %v6756_v23  ;;  %v2785_v39 = vperm.slane %v8105_v16, 2  ;;  %v7548_v23 = vld [vmem:[#allocation8 + $0x244] sm:$0xf] }
 0x220   : > { %v6868_v26 = vor.u32 %v7548_v23, %v6865_v24 }
 0x221   : > { %4559 = vmatpush.bf16.msrb.mxu0 %v6596_v57  ;;  %v7023_v57 = vld [vmem:[#allocation8 + $0x380] sm:$0xf] }
 0x222   : > { %v7024_v11 = vor.u32 %v7590_v17, %v7023_v57  ;;  %v6833_v17 = vld [vmem:[#allocation8 + $0x210] sm:$0xf0] }
 0x223   : > { %4571 = vmatpush.bf16.msrb.mxu1 %v6740_v38 }
 0x225   : > { %v8107_v55 = vpop.f32.mrf.mxu2  ;;  %4560 = vmatpush.bf16.msrb.mxu0 %v6580_v4 }
 0x226   : > { %v3519_v13 = vadd.f32 %v8107_v55, %v3506_v49  ;;  %v7007_v55 = vld [vmem:[#allocation8 + $0x360] sm:$0xf] }
 0x227   : > { %v3598_v5 = vpop.f32.mrf.mxu0 }
 0x228   : > { %v7550_v5 = vld [vmem:[#allocation8 + $0x24c] sm:$0xf0] }
 0x229   : > { %v6864_v51 = vor.u32 %v7550_v5, %v6863_v50  ;;  %v7512_v50 = vld [vmem:[#allocation8 + $0x124] sm:$0xf]  ;;  %v6721_v5 = vld [vmem:[#allocation8 + $0x130] sm:$0xf0] }
 0x22a   : > { %v6724_v58 = vor.u32 %v7512_v50, %v6721_v5  ;;  %v6679_v5 = vld [vmem:[#allocation8 + $0xc8] sm:$0xf] }
 0x22b   : > { %4532 = vmatpush.bf16.msra.mxu2 %v6864_v51  ;;  %v7560_v51 = vld [vmem:[#allocation8 + $0x2a4] sm:$0xf] }
 0x22c   : > { %v6916_v54 = vor.u32 %v7560_v51, %v6913_v52  ;;  %4572 = vmatpush.bf16.msrb.mxu1 %v6724_v58  ;;  %v7503_v51 = vld [vmem:[#allocation8 + $0xd4] sm:$0xf0]  ;;  %v6959_v58 = vld [vmem:[#allocation8 + $0x300] sm:$0xf] }
 0x22d   : > { %v3520_v48 = vpop.f32.mrf.mxu2 }
 0x22e   : > { %v7594_v48 = vld [vmem:[#allocation8 + $0x3ac] sm:$0xf0] }
 0x22f   : > { %4533 = vmatpush.bf16.msra.mxu2 %v6848_v1  ;;  %v7040_v9 = vor.u32 %v7594_v48, %v7039_v45  ;;  %v6897_v1 = vld [vmem:[#allocation8 + $0x290] sm:$0xf0] }
 0x230   : > { %v6900_v3 = vor.u32 %v7556_v61, %v6897_v1 }
 0x231   : > { %v8111_v19 = vpop.f32.mrf.mxu1  ;;  %4542 = vmatpush.bf16.msra.mxu3 %v7040_v9  ;;  %v8144_v9 = vld [vmem:[%s8011_s20] sm:$0xff] }
 0x233   : > { %4534 = vmatpush.bf16.msra.mxu2 %v6832_v27  ;;  %v6991_v27 = vld [vmem:[#allocation8 + $0x340] sm:$0xf] }
 0x234   : > { %v6992_v21 = vor.u32 %v7582_v15, %v6991_v27  ;;  %v7041_v27 = vld [vmem:[#allocation8 + $0x3b0] sm:$0xf0] }
 0x235   : > { %v3479_v62 = vpop.f32.mrf.mxu3  ;;  %v8115_v7 = vpop.f32.mrf.mxu2  ;;  %4543 = vmatpush.bf16.msra.mxu3 %v7024_v11  ;;  %v7073_v11 = vld [vmem:[#allocation8 + $0x3f0] sm:$0xf0] }
 0x236   : > { %v3480_v22 = vadd.f32 %v3479_v62, %v3467_v60  ;;  %v7508_v60 = vld [vmem:[#allocation8 + $0x104] sm:$0xf] }
 0x237   : > { %4579 = vmatpush.bf16.msrb.mxu2 %v6948_v28  ;;  %v6708_v62 = vor.u32 %v7508_v60, %v6705_v46 }
 0x238   : > { %v6569_v8 = vmul.f32 -1.442695, %v3480_v22  ;;  %v7586_v22 = vld [vmem:[#allocation8 + $0x36c] sm:$0xf0] }
 0x239   : > { %v3611_v10 = vpop.f32.mrf.mxu1  ;;  %4573 = vmatpush.bf16.msrb.mxu1 %v6708_v62  ;;  %v7008_v6 = vor.u32 %v7586_v22, %v7007_v55  ;;  %v6663_v55 = vld [vmem:[#allocation8 + $0xa8] sm:$0xf]  ;;  %v7499_v22 = vld [vmem:[#allocation8 + $0xb4] sm:$0xf0] }
 0x23a   : > { %7655 = vpow2.f32 %v6569_v8  ;;  %v6881_v8 = vld [vmem:[#allocation8 + $0x270] sm:$0xf0] }
 0x23b   : > { %4580 = vmatpush.bf16.msrb.mxu2 %v6932_v43  ;;  %v6884_v10 = vor.u32 %v7552_v63, %v6881_v8  ;;  %4544 = vmatpush.bf16.msra.mxu3 %v7008_v6  ;;  %v7507_v43 = vld [vmem:[#allocation8 + $0xf4] sm:$0xf0] }
 0x23d   : > { %v3481_v29 = vpop.f32.mrf.mxu3  ;;  %v3572_v37 = vpop.f32.mrf.mxu2 }
 0x23e   : > { %v3545_v29 = vadd.f32 %v8092_v0, %v2785_v39  ;;  %v6976_v0 = vor.u32 %v7578_v35, %v6975_v34  ;;  %v7588_v35 = vld [vmem:[#allocation8 + $0x384] sm:$0xf] }
 0x23f   : > { %4581 = vmatpush.bf16.msrb.mxu2 %v6916_v54  ;;  %4545 = vmatpush.bf16.msra.mxu3 %v6992_v21  ;;  %v7574_v54 = vld [vmem:[#allocation8 + $0x30c] sm:$0xf0] }
 0x240   : > { %v7656_v41 = vpop.eup %7655  ;;  %v3558_v36 = vadd.f32 %v8096_v32, %v3545_v29  ;;  %v7491_v29 = vld [vmem:[#allocation8 + $0x74] sm:$0xf0] }
 0x241   : > { %v8119_v44 = vadd.f32 1.0, %v7656_v41  ;;  %v6849_v41 = vld [vmem:[#allocation8 + $0x230] sm:$0xf0] }
 0x242   : > { %v6852_v32 = vor.u32 %v7544_v40, %v6849_v41  ;;  %v8164_v40 = vld [vmem:[%s8011_s20 + $0x8] sm:$0xff] }
 0x243   : > { %7657 = vrcp.f32 %v8119_v44  ;;  %4582 = vmatpush.bf16.msrb.mxu2 %v6900_v3  ;;  %v3666_v47 = vand.u32 2147483648, %v8119_v44  ;;  %v3664_v25 = vand.u32 2147483647, %v8119_v44  ;;  %vm3660_vm1 = vweird.f32 %v8119_v44  ;;  %4546 = vmatpush.bf16.msra.mxu3 %v6976_v0  ;;  %v7596_v3 = vld [vmem:[#allocation8 + $0x3c4] sm:$0xf] }
 0x245   : > { %v3531_v56 = vpop.f32.mrf.mxu3  ;;  %v3667_v37 = vor.u32 1.1754944e-38, %v3666_v47  ;;  %vm3665_vm3 = vcmp.eq.f32.partialorder %v3664_v25, 8.507059e+37  ;;  %v7495_v47 = vld [vmem:[#allocation8 + $0x94] sm:$0xf0] }
 0x246   : > { %v3532_v59 = vadd.f32 %v3531_v56, %v3519_v13  ;;  %v6696_v13 = vor.u32 %v7507_v43, %v6695_v42  ;;  %v7540_v56 = vld [vmem:[#allocation8 + $0x204] sm:$0xf] }
 0x247   : > { %4583 = vmatpush.bf16.msrb.mxu2 %v6884_v10  ;;  %v6836_v46 = vor.u32 %v7540_v56, %v6833_v17 }
 0x248   : > { %v6570_v2 = vmul.f32 -1.442695, %v3532_v59  ;;  %v7600_v59 = vld [vmem:[#allocation8 + $0x3e4] sm:$0xf] }
 0x249   : > { %v7658_v18 = vpop.eup %7657  ;;  %v7076_v61 = vor.u32 %v7600_v59, %v7073_v11  ;;  %v7483_v59 = vld [vmem:[#allocation8 + $0x34] sm:$0xf0]  ;;  %v7580_v11 = vld [vmem:[#allocation8 + $0x344] sm:$0xf] }
 0x24a   : > { %v3656_v4 = vmul.f32 %v7658_v18, %v8119_v44  ;;  %7659 = vpow2.f32 %v6570_v2  ;;  %vm3661_vm0 = vweird.f32 %v7658_v18  ;;  %v3571_v44 = vadd.f32 %v8115_v7, %v3558_v36  ;;  %v7025_v36 = vld [vmem:[#allocation8 + $0x390] sm:$0xf0] }
 0x24b   : > { %vm8130_vm2 = vmor %vm3660_vm1, %vm3661_vm0  ;;  %4584 = vmatpush.bf16.msrb.mxu2 %v6868_v26  ;;  %v6960_v7 = vor.u32 %v7574_v54, %v6959_v58  ;;  %v6680_v2 = vor.u32 %v7503_v51, %v6679_v5  ;;  %v7028_v0 = vor.u32 %v7588_v35, %v7025_v36  ;;  %v7535_v5 = vld [vmem:[#allocation8 + $0x1d4] sm:$0xf0]  ;;  %v7009_v51 = vld [vmem:[#allocation8 + $0x370] sm:$0xf0]  ;;  %v2786_v58 = vperm.slane %v8105_v16, 3 }
 0x24c   : > { %v3657_v12 = vsub.f32 1.0, %v3656_v4  ;;  %v6599_v54 = vld [vmem:[#allocation8 + $0x28] sm:$0xf] }
 0x24d   : > { %v3533_v14 = vpop.f32.mrf.mxu3  ;;  %4547 = vmatpush.bf16.msra.mxu3 %v6960_v7  ;;  %v3597_v16 = vadd.f32 %v8098_v20, %v2786_v58  ;;  %v6951_v35 = vld [vmem:[#allocation8 + $0x2e8] sm:$0xf] }
 0x24e   : > { %v3658_v53 = vmul.f32 %v7658_v18, %v3657_v12  ;;  %v6664_v12 = vor.u32 %v7499_v22, %v6663_v55  ;;  %v7592_v14 = vld [vmem:[#allocation8 + $0x3a4] sm:$0xf] }
 0x24f   : > { %4585 = vmatpush.bf16.msrb.mxu2 %v6852_v32  ;;  %v7044_v21 = vor.u32 %v7592_v14, %v7041_v27  ;;  %v7584_v32 = vld [vmem:[#allocation8 + $0x364] sm:$0xf]  ;;  %v7505_v14 = vld [vmem:[#allocation8 + $0xec] sm:$0xf]  ;;  %v6697_v27 = vld [vmem:[#allocation8 + $0xf8] sm:$0xf0] }
 0x250   : > { %v7660_v28 = vpop.eup %7659  ;;  %v3659_v30 = vadd.f32 %v7658_v18, %v3658_v53  ;;  %v6647_v53 = vld [vmem:[#allocation8 + $0x88] sm:$0xf] }
 0x251   : > { %v8134_v33 = vadd.f32 1.0, %v7660_v28  ;;  %4592 = vmatpush.bf16.msrb.mxu3 %v7076_v61  ;;  %v6631_v28 = vld [vmem:[#allocation8 + $0x68] sm:$0xf]  ;;  %v6648_v31 = vor.u32 %v7495_v47, %v6647_v53  ;;  %v7531_v61 = vld [vmem:[#allocation8 + $0x1b4] sm:$0xf0] }
 0x252   : > { %v3663_v38 = vsel %vm8130_vm2, %v7658_v18, %v3659_v30  ;;  %v7057_v18 = vld [vmem:[#allocation8 + $0x3d0] sm:$0xf0]  ;;  %v6632_v42 = vor.u32 %v7491_v29, %v6631_v28  ;;  %v7572_v28 = vld [vmem:[#allocation8 + $0x304] sm:$0xf] }
 0x253   : > { %7661 = vrcp.f32 %v8134_v33  ;;  %v3668_v48 = vsel %vm3665_vm3, %v3667_v37, %v3663_v38  ;;  %4586 = vmatpush.bf16.msrb.mxu2 %v6836_v46  ;;  %v7060_v4 = vor.u32 %v7596_v3, %v7057_v18  ;;  %v3681_v39 = vand.u32 2147483648, %v8134_v33  ;;  %v7539_v37 = vld [vmem:[#allocation8 + $0x1f4] sm:$0xf0]  ;;  %v6791_v46 = vld [vmem:[#allocation8 + $0x1a8] sm:$0xf] }
 0x254   : > { %v3715_v50 = vmul.f32 %v8144_v9, %v3668_v48  ;;  %v3679_v15 = vand.u32 2147483647, %v8134_v33  ;;  %vm3675_vm5 = vweird.f32 %v8134_v33  ;;  %v7487_v48 = vld [vmem:[#allocation8 + $0x54] sm:$0xf0]  ;;  %v6600_v3 = vor.u32 %v7483_v59, %v6599_v54  ;;  %v6583_v18 = vld [vmem:[#allocation8 + $0x8] sm:$0xf] }
 0x255   : > { %v8141_v45 = vpop.f32.mrf.mxu2  ;;  %v3583_v49 = vpop.f32.mrf.mxu3  ;;  %4593 = vmatpush.bf16.msrb.mxu3 %v7060_v4  ;;  %v3682_v30 = vor.u32 1.1754944e-38, %v3681_v39  ;;  %v6792_v4 = vor.u32 %v7531_v61, %v6791_v46  ;;  %v6775_v39 = vld [vmem:[#allocation8 + $0x188] sm:$0xf]  ;;  %v6961_v29 = vld [vmem:[#allocation8 + $0x310] sm:$0xf0] }
 0x256   : > { %v3584_v52 = vadd.f32 %v3583_v49, %v3571_v44  ;;  %v8147_v57 = vpack.c.bf16 %v3715_v50, %v3715_v50  ;;  %vm3680_vm7 = vcmp.eq.f32.partialorder %v3679_v15, 8.507059e+37  ;;  %v6615_v44 = vld [vmem:[#allocation8 + $0x48] sm:$0xf]  ;;  %v6964_v36 = vor.u32 %v7572_v28, %v6961_v29  ;;  %v7515_v59 = vld [vmem:[#allocation8 + $0x134] sm:$0xf0] }
 0x257   : > { %v6807_v50 = vld [vmem:[#allocation8 + $0x1c8] sm:$0xf]  ;;  %v6616_v7 = vor.u32 %v7487_v48, %v6615_v44  ;;  %v7493_v46 = vld [vmem:[#allocation8 + $0x8c] sm:$0xf]  ;;  %v6649_v61 = vld [vmem:[#allocation8 + $0x98] sm:$0xf0] }
 0x258   : > { %v6571_v60 = vmul.f32 -1.442695, %v3584_v52  ;;  %4509 = vmatmul.bf16.vlgmr.msra.gmra.mxu0 %v8147_v57  ;;  %v7012_v52 = vor.u32 %v7584_v32, %v7009_v51  ;;  %v6808_v17 = vor.u32 %v7535_v5, %v6807_v50  ;;  %v6743_v48 = vld [vmem:[#allocation8 + $0x148] sm:$0xf]  ;;  %v7519_v50 = vld [vmem:[#allocation8 + $0x154] sm:$0xf0] }
 0x259   : > { %v7662_v62 = vpop.eup %7661  ;;  %4605 = vmatpush.bf16.msra.mxu0 %v6696_v13  ;;  %4594 = vmatpush.bf16.msrb.mxu3 %v7044_v21  ;;  %v6759_v21 = vld [vmem:[#allocation8 + $0x168] sm:$0xf]  ;;  %v7567_v51 = vld [vmem:[#allocation8 + $0x2d4] sm:$0xf0]  ;;  %v6744_v54 = vor.u32 %v7519_v50, %v6743_v48  ;;  %v7477_v50 = vld [vmem:[#allocation8 + $0xc] sm:$0xf] }
 0x25a   : > { %v3671_v1 = vmul.f32 %v7662_v62, %v8134_v33  ;;  %7663 = vpow2.f32 %v6571_v60  ;;  %vm3676_vm4 = vweird.f32 %v7662_v62  ;;  %v6823_v33 = vld [vmem:[#allocation8 + $0x1e8] sm:$0xf]  ;;  %v6993_v60 = vld [vmem:[#allocation8 + $0x350] sm:$0xf0] }
 0x25b   : > { %vm8154_vm6 = vmor %vm3675_vm5, %vm3676_vm4  ;;  %v6824_v43 = vor.u32 %v7539_v37, %v6823_v33  ;;  %v8181_v33 = vld [vmem:[%s8011_s20 + $0x10] sm:$0xff]  ;;  %v6935_v5 = vld [vmem:[#allocation8 + $0x2c8] sm:$0xf] }
 0x25c   : > { %v3672_v6 = vsub.f32 1.0, %v3671_v1 }
 0x25d   : > { %v3624_v63 = vpop.f32.mrf.mxu2  ;;  %v3585_v8 = vpop.f32.mrf.mxu3  ;;  %4606 = vmatpush.bf16.msra.mxu0 %v6680_v2  ;;  %4595 = vmatpush.bf16.msrb.mxu3 %v7028_v0  ;;  %v6681_v0 = vld [vmem:[#allocation8 + $0xd8] sm:$0xf0] }
 0x25e   : > { %v3673_v10 = vmul.f32 %v7662_v62, %v3672_v6  ;;  %v7576_v6 = vld [vmem:[#allocation8 + $0x324] sm:$0xf]  ;;  %v6977_v63 = vld [vmem:[#allocation8 + $0x330] sm:$0xf0]  ;;  %v3610_v8 = vadd.f32 %v8111_v19, %v3597_v16 }
 0x25f   : > { %v6980_v20 = vor.u32 %v7576_v6, %v6977_v63  ;;  %v7489_v6 = vld [vmem:[#allocation8 + $0x6c] sm:$0xf]  ;;  %v6633_v63 = vld [vmem:[#allocation8 + $0x78] sm:$0xf0] }
 0x260   : > { %v7664_v23 = vpop.eup %7663  ;;  %v3674_v24 = vadd.f32 %v7662_v62, %v3673_v10  ;;  %v7479_v10 = vld [vmem:[#allocation8 + $0x14] sm:$0xf0]  ;;  %v3623_v53 = vadd.f32 %v8141_v45, %v3610_v8  ;;  %v7537_v8 = vld [vmem:[#allocation8 + $0x1ec] sm:$0xf] }
 0x261   : > { %v8158_v26 = vadd.f32 1.0, %v7664_v23  ;;  %4607 = vmatpush.bf16.msra.mxu0 %v6664_v12  ;;  %4596 = vmatpush.bf16.msrb.mxu3 %v7012_v52  ;;  %v7527_v12 = vld [vmem:[#allocation8 + $0x194] sm:$0xf0]  ;;  %v6584_v23 = vor.u32 %v7479_v10, %v6583_v18  ;;  %v7497_v52 = vld [vmem:[#allocation8 + $0xac] sm:$0xf] }
 0x262   : > { %v3678_v34 = vsel %vm8154_vm6, %v7662_v62, %v3674_v24  ;;  %v6996_v62 = vor.u32 %v7580_v11, %v6993_v60  ;;  %v6776_v24 = vor.u32 %v7527_v12, %v6775_v39  ;;  %v7571_v45 = vld [vmem:[#allocation8 + $0x2f4] sm:$0xf0]  ;;  %v6919_v11 = vld [vmem:[#allocation8 + $0x2a8] sm:$0xf]  ;;  %v6825_v10 = vld [vmem:[#allocation8 + $0x1f8] sm:$0xf0] }
 0x263   : > { %7665 = vrcp.f32 %v8158_v26  ;;  %v3683_v38 = vsel %vm3680_vm7, %v3682_v30, %v3678_v34  ;;  %v3696_v2 = vand.u32 2147483648, %v8158_v26  ;;  %v3694_v22 = vand.u32 2147483647, %v8158_v26  ;;  %v7523_v34 = vld [vmem:[#allocation8 + $0x174] sm:$0xf0] }
 0x264   : > { %v3716_v41 = vmul.f32 %v8164_v40, %v3683_v38  ;;  %vm3690_vm9 = vweird.f32 %v8158_v26  ;;  %v6700_v30 = vor.u32 %v7505_v14, %v6697_v27  ;;  %v7501_v38 = vld [vmem:[#allocation8 + $0xcc] sm:$0xf]  ;;  %v6952_v44 = vor.u32 %v7571_v45, %v6951_v35  ;;  %v7563_v60 = vld [vmem:[#allocation8 + $0x2b4] sm:$0xf0]  ;;  %v6887_v27 = vld [vmem:[#allocation8 + $0x268] sm:$0xf] }
 0x265   : > { %4608 = vmatpush.bf16.msra.mxu0 %v6648_v31  ;;  %4597 = vmatpush.bf16.msrb.mxu3 %v6996_v62  ;;  %v3697_v47 = vor.u32 1.1754944e-38, %v3696_v2  ;;  %vm3695_vm11 = vcmp.eq.f32.partialorder %v3694_v22, 8.507059e+37  ;;  %v6684_v32 = vor.u32 %v7501_v38, %v6681_v0  ;;  %v6920_v2 = vor.u32 %v7563_v60, %v6919_v11  ;;  %v7511_v18 = vld [vmem:[#allocation8 + $0x114] sm:$0xf0]  ;;  %v6903_v22 = vld [vmem:[#allocation8 + $0x288] sm:$0xf] }
 0x266   : > { %v8167_v49 = vpack.c.bf16 %v3716_v41, %v3716_v41  ;;  %v6828_v14 = vor.u32 %v7537_v8, %v6825_v10  ;;  %v7529_v35 = vld [vmem:[#allocation8 + $0x1ac] sm:$0xf]  ;;  %v6793_v45 = vld [vmem:[#allocation8 + $0x1b8] sm:$0xf0]  ;;  %v7079_v60 = vld [vmem:[#allocation8 + $0x3e8] sm:$0xf] }
 0x267   : > { %v6796_v48 = vor.u32 %v7529_v35, %v6793_v45  ;;  %v7599_v8 = vld [vmem:[#allocation8 + $0x3d4] sm:$0xf0]  ;;  %v7557_v35 = vld [vmem:[#allocation8 + $0x28c] sm:$0xf]  ;;  %v6905_v45 = vld [vmem:[#allocation8 + $0x298] sm:$0xf0] }
 0x268   : > { %4522 = vmatmul.bf16.vlgmr.msra.gmra.mxu1 %v8167_v49  ;;  %4561 = vmatmul.bf16.vlgmr.msrb.gmra.mxu0 %v8147_v57 }
 0x269   : > { %v7666_v13 = vpop.eup %7665  ;;  %4609 = vmatpush.bf16.msra.mxu0 %v6632_v42  ;;  %4618 = vmatpush.bf16.msra.mxu1 %v6824_v43  ;;  %v6760_v43 = vor.u32 %v7523_v34, %v6759_v21  ;;  %v7533_v21 = vld [vmem:[#allocation8 + $0x1cc] sm:$0xf]  ;;  %v6601_v34 = vld [vmem:[#allocation8 + $0x38] sm:$0xf0] }
 0x26a   : > { %v3686_v56 = vmul.f32 %v7666_v13, %v8158_v26  ;;  %vm3691_vm8 = vweird.f32 %v7666_v13  ;;  %4598 = vmatpush.bf16.msrb.mxu3 %v6980_v20  ;;  %v6636_v20 = vor.u32 %v7489_v6, %v6633_v63  ;;  %v7063_v63 = vld [vmem:[#allocation8 + $0x3c8] sm:$0xf] }
 0x26b   : > { %vm3692_vm10 = vmor %vm3690_vm9, %vm3691_vm8 }
 0x26c   : > { %v3687_v1 = vsub.f32 1.0, %v3686_v56  ;;  %v6936_v56 = vor.u32 %v7567_v51, %v6935_v5  ;;  %v6585_v5 = vld [vmem:[#allocation8 + $0x18] sm:$0xf0]  ;;  %v7525_v51 = vld [vmem:[#allocation8 + $0x18c] sm:$0xf] }
 0x26d   : > { %4610 = vmatpush.bf16.msra.mxu0 %v6616_v7  ;;  %4619 = vmatpush.bf16.msra.mxu1 %v6808_v17  ;;  %v6727_v7 = vld [vmem:[#allocation8 + $0x128] sm:$0xf] }
 0x26e   : > { %v3688_v55 = vmul.f32 %v7666_v13, %v3687_v1  ;;  %4599 = vmatpush.bf16.msrb.mxu3 %v6964_v36  ;;  %v6728_v16 = vor.u32 %v7515_v59, %v6727_v7  ;;  %v7543_v7 = vld [vmem:[#allocation8 + $0x214] sm:$0xf0] }
 0x270   : > { %v3689_v15 = vadd.f32 %v7666_v13, %v3688_v55  ;;  %v6652_v55 = vor.u32 %v7493_v46, %v6649_v61  ;;  %v7603_v46 = vld [vmem:[#allocation8 + $0x3f4] sm:$0xf0] }
 0x271   : > { %4611 = vmatpush.bf16.msra.mxu0 %v6600_v3  ;;  %4620 = vmatpush.bf16.msra.mxu1 %v6792_v4  ;;  %v6711_v3 = vld [vmem:[#allocation8 + $0x108] sm:$0xf]  ;;  %v7559_v4 = vld [vmem:[#allocation8 + $0x294] sm:$0xf0] }
 0x272   : > { %v3693_v25 = vsel %vm3692_vm10, %v7666_v13, %v3689_v15  ;;  %v6665_v13 = vld [vmem:[#allocation8 + $0xb8] sm:$0xf0]  ;;  %v6712_v39 = vor.u32 %v7511_v18, %v6711_v3  ;;  %v6904_v12 = vor.u32 %v7559_v4, %v6903_v22  ;;  %v7555_v15 = vld [vmem:[#allocation8 + $0x274] sm:$0xf0]  ;;  %v7569_v3 = vld [vmem:[#allocation8 + $0x2ec] sm:$0xf]  ;;  %v7080_v22 = vor.u32 %v7603_v46, %v7079_v60 }
 0x273   : > { %v3698_v31 = vsel %vm3695_vm11, %v3697_v47, %v3693_v25  ;;  %v6668_v17 = vor.u32 %v7497_v52, %v6665_v13  ;;  %v6617_v47 = vld [vmem:[#allocation8 + $0x58] sm:$0xf0]  ;;  %v6871_v25 = vld [vmem:[#allocation8 + $0x248] sm:$0xf]  ;;  %v7575_v60 = vld [vmem:[#allocation8 + $0x314] sm:$0xf0] }
 0x274   : > { %v3717_v37 = vmul.f32 %v8181_v33, %v3698_v31  ;;  %v7481_v31 = vld [vmem:[#allocation8 + $0x2c] sm:$0xf]  ;;  %v6777_v52 = vld [vmem:[#allocation8 + $0x198] sm:$0xf0] }
 0x275   : > { %v3635_v19 = vpop.f32.mrf.mxu3  ;;  %4612 = vmatpush.bf16.msra.mxu0 %v6584_v23  ;;  %4621 = vmatpush.bf16.msra.mxu1 %v6776_v24  ;;  %v6888_v24 = vor.u32 %v7555_v15, %v6887_v27  ;;  %v6604_v0 = vor.u32 %v7481_v31, %v6601_v34  ;;  %v6780_v59 = vor.u32 %v7525_v51, %v6777_v52  ;;  %v6953_v18 = vld [vmem:[#allocation8 + $0x2f8] sm:$0xf0]  ;;  %v7509_v31 = vld [vmem:[#allocation8 + $0x10c] sm:$0xf] }
 0x276   : > { %v3636_v26 = vadd.f32 %v3635_v19, %v3623_v53  ;;  %v8184_v42 = vpack.c.bf16 %v3717_v37, %v3717_v37  ;;  %v7485_v53 = vld [vmem:[#allocation8 + $0x4c] sm:$0xf]  ;;  %v6809_v19 = vld [vmem:[#allocation8 + $0x1d8] sm:$0xf0]  ;;  %v6956_v10 = vor.u32 %v7569_v3, %v6953_v18  ;;  %v7064_v27 = vor.u32 %v7599_v8, %v7063_v63 }
 0x277   : > { %v6620_v29 = vor.u32 %v7485_v53, %v6617_v47  ;;  %v7047_v53 = vld [vmem:[#allocation8 + $0x3a8] sm:$0xf]  ;;  %v7595_v47 = vld [vmem:[#allocation8 + $0x3b4] sm:$0xf0]  ;;  %v6713_v34 = vld [vmem:[#allocation8 + $0x118] sm:$0xf0] }
 0x278   : > { %v6572_v41 = vmul.f32 -1.442695, %v3636_v26  ;;  %4535 = vmatmul.bf16.vlgmr.msra.gmra.mxu2 %v8184_v42  ;;  %4574 = vmatmul.bf16.vlgmr.msrb.gmra.mxu1 %v8167_v49  ;;  %v6812_v26 = vor.u32 %v7533_v21, %v6809_v19  ;;  %v7513_v19 = vld [vmem:[#allocation8 + $0x12c] sm:$0xf]  ;;  %v6873_v52 = vld [vmem:[#allocation8 + $0x258] sm:$0xf0] }
 0x279   : > { %4657 = vmatpush.bf16.msrb.mxu0 %v6700_v30  ;;  %4622 = vmatpush.bf16.msra.mxu1 %v6760_v43  ;;  %v7551_v30 = vld [vmem:[#allocation8 + $0x254] sm:$0xf0]  ;;  %v7549_v51 = vld [vmem:[#allocation8 + $0x24c] sm:$0xf]  ;;  %v7049_v8 = vld [vmem:[#allocation8 + $0x3b8] sm:$0xf0] }
 0x27a   : > { %7667 = vpow2.f32 %v6572_v41  ;;  %4613 = vmatmul.bf16.vlgmr.msra.gmra.mxu0 %v8147_v57  ;;  %4631 = vmatpush.bf16.msra.mxu2 %v6952_v44  ;;  %v6872_v38 = vor.u32 %v7551_v30, %v6871_v25  ;;  %v6855_v41 = vld [vmem:[#allocation8 + $0x228] sm:$0xf]  ;;  %v6921_v25 = vld [vmem:[#allocation8 + $0x2b8] sm:$0xf0]  ;;  %v7591_v30 = vld [vmem:[#allocation8 + $0x394] sm:$0xf0] }
 0x27b   : > { %v7593_v63 = vld [vmem:[#allocation8 + $0x3ac] sm:$0xf] }
 0x27d   : > { %v3637_v58 = vpop.f32.mrf.mxu3  ;;  %4658 = vmatpush.bf16.msrb.mxu0 %v6684_v32  ;;  %4623 = vmatpush.bf16.msra.mxu1 %v6744_v54  ;;  %v7547_v32 = vld [vmem:[#allocation8 + $0x234] sm:$0xf0] }
 0x27e   : > { %4632 = vmatpush.bf16.msra.mxu2 %v6936_v56  ;;  %v6856_v54 = vor.u32 %v7547_v32, %v6855_v41  ;;  %v6839_v56 = vld [vmem:[#allocation8 + $0x208] sm:$0xf]  ;;  %v6908_v41 = vor.u32 %v7557_v35, %v6905_v45 }
 0x27f   : > { %v6999_v32 = vld [vmem:[#allocation8 + $0x348] sm:$0xf] }
 0x280   : > { %v7668_v62 = vpop.eup %7667 }
 0x281   : > { %v8189_v1 = vadd.f32 1.0, %v7668_v62  ;;  %4659 = vmatpush.bf16.msrb.mxu0 %v6668_v17  ;;  %4624 = vmatpush.bf16.msra.mxu1 %v6728_v16  ;;  %v6588_v17 = vor.u32 %v7477_v50, %v6585_v5  ;;  %v7521_v62 = vld [vmem:[#allocation8 + $0x16c] sm:$0xf]  ;;  %v6761_v16 = vld [vmem:[#allocation8 + $0x178] sm:$0xf0] }
 0x282   : > { %4633 = vmatpush.bf16.msra.mxu2 %v6920_v2  ;;  %v6764_v6 = vor.u32 %v7521_v62, %v6761_v16  ;;  %v7583_v50 = vld [vmem:[#allocation8 + $0x354] sm:$0xf0]  ;;  %v7081_v62 = vld [vmem:[#allocation8 + $0x3f8] sm:$0xf0]  ;;  %v7541_v16 = vld [vmem:[#allocation8 + $0x20c] sm:$0xf] }
 0x283   : > { %7669 = vrcp.f32 %v8189_v1  ;;  %v3711_v37 = vand.u32 2147483648, %v8189_v1  ;;  %v3709_v44 = vand.u32 2147483647, %v8189_v1  ;;  %vm3705_vm13 = vweird.f32 %v8189_v1 }
 0x285   : > { %4660 = vmatpush.bf16.msrb.mxu0 %v6652_v55  ;;  %4625 = vmatpush.bf16.msra.mxu1 %v6712_v39  ;;  %v3712_v58 = vor.u32 1.1754944e-38, %v3711_v37  ;;  %vm3710_vm15 = vcmp.eq.f32.partialorder %v3709_v44, 8.507059e+37  ;;  %v6840_v55 = vor.u32 %v7543_v7, %v6839_v56  ;;  %v7517_v39 = vld [vmem:[#allocation8 + $0x14c] sm:$0xf]  ;;  %v6716_v37 = vor.u32 %v7509_v31, %v6713_v34  ;;  %v6889_v44 = vld [vmem:[#allocation8 + $0x278] sm:$0xf0] }
 0x286   : > { %4634 = vmatpush.bf16.msra.mxu2 %v6904_v12  ;;  %v6745_v12 = vld [vmem:[#allocation8 + $0x158] sm:$0xf0]  ;;  %v6876_v56 = vor.u32 %v7549_v51, %v6873_v52  ;;  %v7545_v7 = vld [vmem:[#allocation8 + $0x22c] sm:$0xf] }
 0x287   : > { %v6748_v15 = vor.u32 %v7517_v39, %v6745_v12  ;;  %v7589_v39 = vld [vmem:[#allocation8 + $0x38c] sm:$0xf]  ;;  %v7033_v12 = vld [vmem:[#allocation8 + $0x398] sm:$0xf0] }
 0x288   : > { %4587 = vmatmul.bf16.vlgmr.msrb.gmra.mxu2 %v8184_v42  ;;  %4626 = vmatmul.bf16.vlgmr.msra.gmra.mxu1 %v8167_v49 }
 0x289   : > { %v7670_v23 = vpop.eup %7669  ;;  %4661 = vmatpush.bf16.msrb.mxu0 %v6636_v20  ;;  %4670 = vmatpush.bf16.msrb.mxu1 %v6828_v14  ;;  %v7565_v20 = vld [vmem:[#allocation8 + $0x2cc] sm:$0xf]  ;;  %v6937_v14 = vld [vmem:[#allocation8 + $0x2d8] sm:$0xf0] }
 0x28a   : > { %v3701_v28 = vmul.f32 %v7670_v23, %v8189_v1  ;;  %4635 = vmatpush.bf16.msra.mxu2 %v6888_v24  ;;  %vm3706_vm12 = vweird.f32 %v7670_v23  ;;  %v8199_v1 = vld [vmem:[%s8011_s20 + $0x18] sm:$0xff]  ;;  %v6940_v21 = vor.u32 %v7565_v20, %v6937_v14  ;;  %v7561_v24 = vld [vmem:[#allocation8 + $0x2ac] sm:$0xf]  ;;  %v7036_v20 = vor.u32 %v7589_v39, %v7033_v12 }
 0x28b   : > { %vm3707_vm14 = vmor %vm3705_vm13, %vm3706_vm12  ;;  %v7585_v14 = vld [vmem:[#allocation8 + $0x36c] sm:$0xf] }
 0x28c   : > { %v3702_v36 = vsub.f32 1.0, %v3701_v28  ;;  %v7048_v28 = vor.u32 %v7595_v47, %v7047_v53  ;;  %v7581_v53 = vld [vmem:[#allocation8 + $0x34c] sm:$0xf]  ;;  %v7001_v47 = vld [vmem:[#allocation8 + $0x358] sm:$0xf0] }
 0x28d   : > { %4662 = vmatpush.bf16.msrb.mxu0 %v6620_v29  ;;  %4671 = vmatpush.bf16.msrb.mxu1 %v6812_v26  ;;  %v7031_v26 = vld [vmem:[#allocation8 + $0x388] sm:$0xf] }
 0x28e   : > { %v3703_v43 = vmul.f32 %v7670_v23, %v3702_v36  ;;  %4636 = vmatpush.bf16.msra.mxu2 %v6872_v38  ;;  %v7032_v36 = vor.u32 %v7591_v30, %v7031_v26  ;;  %v7015_v38 = vld [vmem:[#allocation8 + $0x368] sm:$0xf]  ;;  %v3851_v26 = vld [vmem:[%s8255_s9] sm:$0xf] }
 0x290   : > { %v3704_v13 = vadd.f32 %v7670_v23, %v3703_v43  ;;  %v7553_v43 = vld [vmem:[#allocation8 + $0x26c] sm:$0xf] }
 0x291   : > { %4663 = vmatpush.bf16.msrb.mxu0 %v6604_v0  ;;  %4672 = vmatpush.bf16.msrb.mxu1 %v6796_v48  ;;  %v7587_v0 = vld [vmem:[#allocation8 + $0x374] sm:$0xf0]  ;;  %v6892_v5 = vor.u32 %v7553_v43, %v6889_v44 }
 0x292   : > { %v3708_v11 = vsel %vm3707_vm14, %v7670_v23, %v3704_v13  ;;  %4637 = vmatpush.bf16.msra.mxu2 %v6856_v54  ;;  %v6729_v23 = vld [vmem:[#allocation8 + $0x138] sm:$0xf0]  ;;  %v7016_v48 = vor.u32 %v7587_v0, %v7015_v38  ;;  %v7000_v13 = vor.u32 %v7583_v50, %v6999_v32  ;;  %v7579_v54 = vld [vmem:[#allocation8 + $0x334] sm:$0xf0]  ;;  %v3854_v38 = vperm.slane %v3851_v26, 1 }
 0x293   : > { %v3713_v61 = vsel %vm3710_vm15, %v3712_v58, %v3708_v11  ;;  %v6732_v29 = vor.u32 %v7513_v19, %v6729_v23  ;;  %v6983_v58 = vld [vmem:[#allocation8 + $0x328] sm:$0xf]  ;;  %v7577_v19 = vld [vmem:[#allocation8 + $0x32c] sm:$0xf]  ;;  %v6985_v23 = vld [vmem:[#allocation8 + $0x338] sm:$0xf0] }
 0x294   : > { %v3718_v2 = vmul.f32 %v8199_v1, %v3713_v61  ;;  %v6967_v11 = vld [vmem:[#allocation8 + $0x308] sm:$0xf]  ;;  %v7601_v61 = vld [vmem:[#allocation8 + $0x3ec] sm:$0xf] }
 0x295   : > { %4664 = vmatpush.bf16.msrb.mxu0 %v6588_v17  ;;  %4673 = vmatpush.bf16.msrb.mxu1 %v6780_v59  ;;  %v6857_v17 = vld [vmem:[#allocation8 + $0x238] sm:$0xf0]  ;;  %v6984_v59 = vor.u32 %v7579_v54, %v6983_v58  ;;  %v6968_v3 = vor.u32 %v7575_v60, %v6967_v11 }
 0x296   : > { %v8202_v4 = vpack.c.bf16 %v3718_v2, %v3718_v2  ;;  %4638 = vmatpush.bf16.msra.mxu2 %v6840_v55  ;;  %v6860_v46 = vor.u32 %v7545_v7, %v6857_v17  ;;  %v6841_v2 = vld [vmem:[#allocation8 + $0x218] sm:$0xf0]  ;;  %v7597_v55 = vld [vmem:[#allocation8 + $0x3cc] sm:$0xf] }
 0x297   : > { %v6844_v18 = vor.u32 %v7541_v16, %v6841_v2 }
 0x298   : > { %4548 = vmatmul.bf16.vlgmr.msra.gmra.mxu3 %v8202_v4  ;;  %4665 = vmatmul.bf16.vlgmr.msrb.gmra.mxu0 %v8147_v57  ;;  %v6924_v57 = vor.u32 %v7561_v24, %v6921_v25  ;;  %v6988_v24 = vor.u32 %v7577_v19, %v6985_v23  ;;  %v7573_v25 = vld [vmem:[#allocation8 + $0x30c] sm:$0xf] }
 0x299   : > { %4644 = vmatpush.bf16.msra.mxu3 %v7080_v22  ;;  %4674 = vmatpush.bf16.msrb.mxu1 %v6764_v6  ;;  %v7065_v22 = vld [vmem:[#allocation8 + $0x3d8] sm:$0xf0] }
 0x29a   : > { %4683 = vmatpush.bf16.msrb.mxu2 %v6956_v10  ;;  %v7068_v6 = vor.u32 %v7597_v55, %v7065_v22  ;;  %v7052_v10 = vor.u32 %v7593_v63, %v7049_v8  ;;  %v3856_v63 = vperm.slane %v3851_v26, 3 }
 0x29b   : > { %4639 = vmatmul.bf16.vlgmr.msra.gmra.mxu2 %v8184_v42 }
 0x29d   : > { %4645 = vmatpush.bf16.msra.mxu3 %v7064_v27  ;;  %4675 = vmatpush.bf16.msrb.mxu1 %v6748_v15  ;;  %v7017_v27 = vld [vmem:[#allocation8 + $0x378] sm:$0xf0] }
 0x29e   : > { %4684 = vmatpush.bf16.msrb.mxu2 %v6940_v21  ;;  %v7020_v15 = vor.u32 %v7585_v14, %v7017_v27  ;;  %v7004_v21 = vor.u32 %v7581_v53, %v7001_v47 }
 0x2a1   : > { %4646 = vmatpush.bf16.msra.mxu3 %v7048_v28  ;;  %4676 = vmatpush.bf16.msrb.mxu1 %v6732_v29 }
 0x2a2   : > { %4685 = vmatpush.bf16.msrb.mxu2 %v6924_v57  ;;  %v3853_v57 = vperm.slane %v3851_v26, 0 }
 0x2a5   : > { %4647 = vmatpush.bf16.msra.mxu3 %v7032_v36  ;;  %4677 = vmatpush.bf16.msrb.mxu1 %v6716_v37 }
 0x2a6   : > { %4686 = vmatpush.bf16.msrb.mxu2 %v6908_v41 }
 0x2a8   : > { %4600 = vmatmul.bf16.vlgmr.msrb.gmra.mxu3 %v8202_v4  ;;  %4678 = vmatmul.bf16.vlgmr.msrb.gmra.mxu1 %v8167_v49  ;;  %v7084_v49 = vor.u32 %v7601_v61, %v7081_v62 }
 0x2a9   : > { %4648 = vmatpush.bf16.msra.mxu3 %v7016_v48 }
 0x2aa   : > { %4687 = vmatpush.bf16.msrb.mxu2 %v6892_v5  ;;  %v3855_v5 = vperm.slane %v3851_v26, 2 }
 0x2ad   : > { %4649 = vmatpush.bf16.msra.mxu3 %v7000_v13 }
 0x2ae   : > { %4688 = vmatpush.bf16.msrb.mxu2 %v6876_v56 }
 0x2b1   : > { %4650 = vmatpush.bf16.msra.mxu3 %v6984_v59 }
 0x2b2   : > { %4689 = vmatpush.bf16.msrb.mxu2 %v6860_v46 }
 0x2b5   : > { %4651 = vmatpush.bf16.msra.mxu3 %v6968_v3 }
 0x2b6   : > { %4690 = vmatpush.bf16.msrb.mxu2 %v6844_v18 }
 0x2b8   : > { %4652 = vmatmul.bf16.vlgmr.msra.gmra.mxu3 %v8202_v4 }
 0x2b9   : > { %4696 = vmatpush.bf16.msrb.mxu3 %v7084_v49  ;;  %4691 = vmatmul.bf16.vlgmr.msrb.gmra.mxu2 %v8184_v42  ;;  %v6969_v42 = vld [vmem:[#allocation8 + $0x318] sm:$0xf0] }
 0x2ba   : > { %v6972_v28 = vor.u32 %v7573_v25, %v6969_v42 }
 0x2bd   : > { %4697 = vmatpush.bf16.msrb.mxu3 %v7068_v6 }
 0x2c1   : > { %4698 = vmatpush.bf16.msrb.mxu3 %v7052_v10 }
 0x2c5   : > { %4699 = vmatpush.bf16.msrb.mxu3 %v7036_v20  ;;  %v4714_v20 = vstv %s4709_s0  ;;  %s637_s0 = scalar_lea.vmem %s8261_s15, %s8005_s27 }
 0x2c9   : > { %4700 = vmatpush.bf16.msrb.mxu3 %v7020_v15 }
 0x2cd   : > { %4701 = vmatpush.bf16.msrb.mxu3 %v7004_v21 }
 0x2d1   : > { %4702 = vmatpush.bf16.msrb.mxu3 %v6988_v24 }
 0x2d5   : > { %4703 = vmatpush.bf16.msrb.mxu3 %v6972_v28  ;;  %v4510_v29 = vpop.f32.mrf.mxu0 }
 0x2d6   : > { %v4511_v31 = vadd.f32 %v4510_v29, %v3853_v57 }
 0x2d8   : > { %4704 = vmatmul.bf16.vlgmr.msrb.gmra.mxu3 %v8202_v4 }
 0x2dd   : > { %v4512_v30 = vpop.f32.mrf.mxu0 }
 0x2e5   : > { %v4523_v34 = vpop.f32.mrf.mxu1  ;;  %v4562_v35 = vpop.f32.mrf.mxu0 }
 0x2e6   : > { %v4524_v45 = vadd.f32 %v4523_v34, %v4511_v31  ;;  %v4563_v0 = vadd.f32 %v4562_v35, %v3854_v38 }
 0x2ed   : > { %v4525_v36 = vpop.f32.mrf.mxu1  ;;  %v4564_v37 = vpop.f32.mrf.mxu0 }
 0x2f5   : > { %v4575_v41 = vpop.f32.mrf.mxu1 }
 0x2f6   : > { %v4576_v44 = vadd.f32 %v4575_v41, %v4563_v0 }
 0x2f7   : > { %v4614_v43 = vpop.f32.mrf.mxu0 }
 0x2f8   : > { %v4615_v52 = vadd.f32 %v4614_v43, %v3855_v5  ;;  %v649_v5 = vld [vmem:[%s632_s3 + $0x10] sm:$0xff] }
 0x2fb   : > { %v4536_v48 = vpop.f32.mrf.mxu2 }
 0x2fc   : > { %v4537_v4 = vadd.f32 %v4536_v48, %v4524_v45 }
 0x2fd   : > { %v4577_v32 = vpop.f32.mrf.mxu1 }
 0x2ff   : > { %v4616_v50 = vpop.f32.mrf.mxu0 }
 0x300   : > { %v648_v50 = vld [vmem:[%s632_s3 + $0x8] sm:$0xff] }
 0x303   : > { %v4538_v51 = vpop.f32.mrf.mxu2 }
 0x304   : > { %v647_v51 = vld [vmem:[%s632_s3] sm:$0xff] }
 0x305   : > { %v4627_v13 = vpop.f32.mrf.mxu1 }
 0x306   : > { %v4628_v58 = vadd.f32 %v4627_v13, %v4615_v52  ;;  %v650_v52 = vld [vmem:[%s632_s3 + $0x18] sm:$0xff]  ;;  %v652_v13 = vadd.f32 %v8164_v40, %v648_v50  ;;  %v4723_v40 = vld [vmem:[%s8257_s11] sm:$0xf] }
 0x308   : > { %656 = vst [vmem:[%s642_s26 + $0x8] sm:$0xff] %v652_v13 }
 0x30b   : > { %v4588_v54 = vpop.f32.mrf.mxu2 }
 0x30c   : > { %v4589_v56 = vadd.f32 %v4588_v54, %v4576_v44  ;;  %v654_v54 = vadd.f32 %v8199_v1, %v650_v52  ;;  %v4761_v1 = vperm.slane %v4723_v40, 0  ;;  %v4790_v52 = vld [vmem:[%s8259_s13] sm:$0xf] }
 0x30d   : > { %v4629_v7 = vpop.f32.mrf.mxu1 }
 0x30e   : > { %658 = vst [vmem:[%s642_s26 + $0x18] sm:$0xff] %v654_v54 }
 0x313   : > { %v4590_v17 = vpop.f32.mrf.mxu2 }
 0x315   : > { %v4666_v59 = vpop.f32.mrf.mxu0 }
 0x316   : > { %v4667_v14 = vadd.f32 %v4666_v59, %v3856_v63 }
 0x31b   : > { %v4549_v11 = vpop.f32.mrf.mxu3 }
 0x31c   : > { %v4550_v39 = vadd.f32 %v4549_v11, %v4537_v4 }
 0x31d   : > { %v4668_v60 = vpop.f32.mrf.mxu0 }
 0x31e   : > { %v4640_v46 = vpop.f32.mrf.mxu2  ;;  %v4715_v15 = vmul.f32 %v4714_v20, %v4550_v39  ;;  %vm4710_vm1 = vcmp.ge.f32.partialorder %v4550_v39, 0.0 }
 0x31f   : > { %v4641_v8 = vadd.f32 %v4640_v46, %v4628_v58  ;;  %v653_v58 = vadd.f32 %v8181_v33, %v649_v5 }
 0x320   : > { %v4719_v25 = vsel %vm4710_vm1, %v4550_v39, %v4715_v15 }
 0x321   : > { %657 = vst [vmem:[%s642_s26 + $0x10] sm:$0xff] %v653_v58 }
 0x323   : > { %v4551_v61 = vpop.f32.mrf.mxu3 }
 0x325   : > { %v4679_v62 = vpop.f32.mrf.mxu1 }
 0x326   : > { %v4642_v16 = vpop.f32.mrf.mxu2  ;;  %v4680_v53 = vadd.f32 %v4679_v62, %v4667_v14 }
 0x327   : > { %v4762_v16 = vperm.slane %v4723_v40, 1 }
 0x32b   : > { %v4601_v2 = vpop.f32.mrf.mxu3 }
 0x32c   : > { %v4602_v10 = vadd.f32 %v4601_v2, %v4589_v56  ;;  %v651_v56 = vadd.f32 %v8144_v9, %v647_v51  ;;  %v4724_v9 = vld [vmem:[%s8258_s12] sm:$0xf]  ;;  %v4763_v2 = vperm.slane %v4723_v40, 2 }
 0x32d   : > { %v4681_v3 = vpop.f32.mrf.mxu1  ;;  %v4777_v39 = vperm.slane %v4724_v9, 3 }
 0x32e   : > { %v4716_v27 = vmul.f32 %v4714_v20, %v4602_v10  ;;  %vm4711_vm0 = vcmp.ge.f32.partialorder %v4602_v10, 0.0  ;;  %655 = vst [vmem:[%s642_s26] sm:$0xff] %v651_v56  ;;  %v4764_v3 = vperm.slane %v4723_v40, 3 }
 0x330   : > { %v4720_v19 = vsel %vm4711_vm0, %v4602_v10, %v4716_v27 }
 0x331   : > { %v4725_v28 = vadd.f32 %v4720_v19, %v4719_v25 }
 0x333   : > { %v4603_v49 = vpop.f32.mrf.mxu3 }
 0x33b   : > { %v4653_v18 = vpop.f32.mrf.mxu3 }
 0x33c   : > { %v4692_v55 = vpop.f32.mrf.mxu2  ;;  %v4654_v12 = vadd.f32 %v4653_v18, %v4641_v8  ;;  %v4774_v18 = vperm.slane %v4724_v9, 0 }
 0x33d   : > { %v4693_v21 = vadd.f32 %v4692_v55, %v4680_v53  ;;  %v4775_v55 = vperm.slane %v4724_v9, 1 }
 0x33e   : > { %v4717_v47 = vmul.f32 %v4714_v20, %v4654_v12  ;;  %vm4712_vm2 = vcmp.ge.f32.partialorder %v4654_v12, 0.0 }
 0x340   : > { %v4721_v42 = vsel %vm4712_vm2, %v4654_v12, %v4717_v47 }
 0x341   : > { %v4726_v26 = vadd.f32 %v4725_v28, %v4721_v42 }
 0x343   : > { %v4655_v22 = vpop.f32.mrf.mxu3 }
 0x344   : > { %v4694_v6 = vpop.f32.mrf.mxu2  ;;  %v4776_v22 = vperm.slane %v4724_v9, 2 }
 0x35b   : > { %v4705_v23 = vpop.f32.mrf.mxu3 }
 0x35c   : > { %v4706_v24 = vadd.f32 %v4705_v23, %v4693_v21 }
 0x35e   : > { %v4718_v29 = vmul.f32 %v4714_v20, %v4706_v24  ;;  %vm4713_vm3 = vcmp.ge.f32.partialorder %v4706_v24, 0.0 }
 0x360   : > { %v4722_v30 = vsel %vm4713_vm3, %v4706_v24, %v4718_v29 }
 0x361   : > { %v4727_v57 = vadd.f32 %v4726_v26, %v4722_v30 }
 0x363   : > { %v4707_v31 = vpop.f32.mrf.mxu3  ;;  %4728 = vadd.xlane.f32.xlu0 %v4727_v57 }
 0x3d6   : > { %v4729_v34 = vpop.xlane.xlu0 %4728 }
 0x3d7   : > { %v4730_v35 = vmul.f32 0.001953125, %v4729_v34 }
 0x3d9   : > { %v4731_v45 = vsub.f32 %v4719_v25, %v4730_v35  ;;  %v4732_v36 = vsub.f32 %v4720_v19, %v4730_v35  ;;  %v4733_v37 = vsub.f32 %v4721_v42, %v4730_v35  ;;  %v4734_v38 = vsub.f32 %v4722_v30, %v4730_v35 }
 0x3db   : > { %v4735_v0 = vmul.f32 %v4731_v45, %v4731_v45  ;;  %v4736_v41 = vmul.f32 %v4732_v36, %v4732_v36  ;;  %v4737_v43 = vmul.f32 %v4733_v37, %v4733_v37  ;;  %v4738_v48 = vmul.f32 %v4734_v38, %v4734_v38 }
 0x3dd   : > { %v4739_v44 = vadd.f32 %v4736_v41, %v4735_v0 }
 0x3df   : > { %v4740_v4 = vadd.f32 %v4739_v44, %v4737_v43 }
 0x3e1   : > { %v4741_v32 = vadd.f32 %v4740_v4, %v4738_v48 }
 0x3e3   : > { %4742 = vadd.xlane.f32.xlu0 %v4741_v32 }
 0x456   : > { %v4743_v7 = vpop.xlane.xlu0 %4742 }
 0x457   : > { %v4744_v17 = vmul.f32 0.001953125, %v4743_v7  ;;  %v4829_v7 = vperm.slane %v4790_v52, 1 }
 0x459   : > { %v4745_v59 = vadd.f32 1e-05, %v4744_v17  ;;  %v4830_v17 = vperm.slane %v4790_v52, 2 }
 0x45b   : > { %7671 = vrsqrt.f32 %v4745_v59  ;;  %vm4752_vm5 = vweird.f32 %v4745_v59 }
 0x461   : > { %v7672_v11 = vpop.eup %7671 }
 0x462   : > { %v4747_v60 = vmul.f32 %v7672_v11, %v4745_v59  ;;  %vm4753_vm4 = vweird.f32 %v7672_v11  ;;  %v4831_v59 = vperm.slane %v4790_v52, 3 }
 0x463   : > { %vm4754_vm6 = vmor %vm4752_vm5, %vm4753_vm4 }
 0x464   : > { %v4748_v46 = vmul.f32 %v7672_v11, %v4747_v60 }
 0x466   : > { %v4749_v61 = vmul.f32 0.5, %v4748_v46 }
 0x468   : > { %v4750_v62 = vsub.f32 1.5, %v4749_v61 }
 0x46a   : > { %v4751_v33 = vmul.f32 %v7672_v11, %v4750_v62 }
 0x46c   : > { %v4755_v49 = vsel %vm4754_vm6, %v7672_v11, %v4751_v33 }
 0x46d   : > { %v4756_v6 = vmul.f32 %v4755_v49, %v4731_v45  ;;  %v4757_v63 = vmul.f32 %v4755_v49, %v4732_v36  ;;  %v4758_v8 = vmul.f32 %v4755_v49, %v4733_v37  ;;  %v4759_v10 = vmul.f32 %v4755_v49, %v4734_v38 }
 0x46f   : > { %v4769_v12 = vmul.f32 %v4761_v1, %v4756_v6  ;;  %v4770_v20 = vmul.f32 %v4762_v16, %v4757_v63  ;;  %v4771_v14 = vmul.f32 %v4763_v2, %v4758_v8  ;;  %v4772_v27 = vmul.f32 %v4764_v3, %v4759_v10 }
 0x471   : > { %v4782_v15 = vadd.f32 %v4774_v18, %v4769_v12  ;;  %v4783_v53 = vadd.f32 %v4775_v55, %v4770_v20  ;;  %v4784_v47 = vadd.f32 %v4776_v22, %v4771_v14  ;;  %v4785_v21 = vadd.f32 %v4777_v39, %v4772_v27 }
 0x473   : > { %v4786_v19 = vadd.f32 %v4782_v15, %v651_v56  ;;  %v4787_v23 = vadd.f32 %v4783_v53, %v652_v13  ;;  %v4788_v24 = vadd.f32 %v4784_v47, %v653_v58  ;;  %v4789_v42 = vadd.f32 %v4785_v21, %v654_v54  ;;  %v4791_v58 = vld [vmem:[%s8260_s14] sm:$0xf] }
 0x474   : > { %v4828_v56 = vperm.slane %v4790_v52, 0  ;;  %v4841_v11 = vperm.slane %v4791_v58, 0  ;;  %v4842_v60 = vperm.slane %v4791_v58, 1  ;;  %v4843_v46 = vperm.slane %v4791_v58, 2 }
 0x475   : > { %v4792_v25 = vadd.f32 %v4787_v23, %v4786_v19  ;;  %v4844_v1 = vperm.slane %v4791_v58, 3 }
 0x477   : > { %v4793_v28 = vadd.f32 %v4792_v25, %v4788_v24 }
 0x479   : > { %v4794_v29 = vadd.f32 %v4793_v28, %v4789_v42 }
 0x47b   : > { %4795 = vadd.xlane.f32.xlu1 %v4794_v29 }
 0x4ee   : > { %v4796_v26 = vpop.xlane.xlu1 %4795 }
 0x4ef   : > { %v4797_v30 = vmul.f32 0.001953125, %v4796_v26 }
 0x4f1   : > { %v4798_v57 = vsub.f32 %v4786_v19, %v4797_v30  ;;  %v4799_v31 = vsub.f32 %v4787_v23, %v4797_v30  ;;  %v4800_v34 = vsub.f32 %v4788_v24, %v4797_v30  ;;  %v4801_v35 = vsub.f32 %v4789_v42, %v4797_v30 }
 0x4f3   : > { %v4802_v45 = vmul.f32 %v4798_v57, %v4798_v57  ;;  %v4803_v36 = vmul.f32 %v4799_v31, %v4799_v31  ;;  %v4804_v37 = vmul.f32 %v4800_v34, %v4800_v34  ;;  %v4805_v0 = vmul.f32 %v4801_v35, %v4801_v35 }
 0x4f5   : > { %v4806_v38 = vadd.f32 %v4803_v36, %v4802_v45 }
 0x4f7   : > { %v4807_v41 = vadd.f32 %v4806_v38, %v4804_v37 }
 0x4f9   : > { %v4808_v43 = vadd.f32 %v4807_v41, %v4805_v0 }
 0x4fb   : > { %4809 = vadd.xlane.f32.xlu1 %v4808_v43 }
 0x56e   : > { %v4810_v44 = vpop.xlane.xlu1 %4809 }
 0x56f   : > { %v4811_v48 = vmul.f32 0.001953125, %v4810_v44 }
 0x571   : > { %v4812_v4 = vadd.f32 1e-05, %v4811_v48 }
 0x573   : > { %7673 = vrsqrt.f32 %v4812_v4  ;;  %vm4819_vm8 = vweird.f32 %v4812_v4 }
 0x579   : > { %v7674_v32 = vpop.eup %7673 }
 0x57a   : > { %v4814_v50 = vmul.f32 %v7674_v32, %v4812_v4  ;;  %vm4820_vm7 = vweird.f32 %v7674_v32 }
 0x57b   : > { %vm4821_vm9 = vmor %vm4819_vm8, %vm4820_vm7 }
 0x57c   : > { %v4815_v5 = vmul.f32 %v7674_v32, %v4814_v50 }
 0x57e   : > { %v4816_v51 = vmul.f32 0.5, %v4815_v5 }
 0x580   : > { %v4817_v13 = vsub.f32 1.5, %v4816_v51 }
 0x582   : > { %v4818_v54 = vmul.f32 %v7674_v32, %v4817_v13 }
 0x584   : > { %v4822_v61 = vsel %vm4821_vm9, %v7674_v32, %v4818_v54 }
 0x585   : > { %v4823_v62 = vmul.f32 %v4822_v61, %v4798_v57  ;;  %v4824_v40 = vmul.f32 %v4822_v61, %v4799_v31  ;;  %v4825_v9 = vmul.f32 %v4822_v61, %v4800_v34  ;;  %v4826_v33 = vmul.f32 %v4822_v61, %v4801_v35 }
 0x587   : > { %v4836_v16 = vmul.f32 %v4828_v56, %v4823_v62  ;;  %v4837_v2 = vmul.f32 %v4829_v7, %v4824_v40  ;;  %v4838_v3 = vmul.f32 %v4830_v17, %v4825_v9  ;;  %v4839_v49 = vmul.f32 %v4831_v59, %v4826_v33 }
 0x589   : > { %v4849_v18 = vadd.f32 %v4841_v11, %v4836_v16  ;;  %v4850_v55 = vadd.f32 %v4842_v60, %v4837_v2  ;;  %v4851_v22 = vadd.f32 %v4843_v46, %v4838_v3  ;;  %v4852_v6 = vadd.f32 %v4844_v1, %v4839_v49 }
 0x58b   : > { %4853 = vst [vmem:[%s637_s0] sm:$0xff] %v4849_v18 }
 0x58c   : > { %4854 = vst [vmem:[%s637_s0 + $0x8] sm:$0xff] %v4850_v55 }
 0x58d   : > { %4855 = vst [vmem:[%s637_s0 + $0x10] sm:$0xff] %v4851_v22 }
 0x58e   : > { %4856 = vst [vmem:[%s637_s0 + $0x18] sm:$0xff] %v4852_v6 }
 0x58f PF: > { %s8277_s19 = sld [smem:[#allocation13_spill]] }
 0x595   : > { %s31_s23 = sadd.s32 1, %s8277_s19  }
 0x596   : > { %p28_p7 = scmp.ge.s32.totalorder %s31_s23, 4  }
 0x598   :  { %30 = sbr.rel (!%p28_p7) target bundleno = 8 (0x8), region = 145 }
 0x59d   :  { %4894 = vsyncpa [#allocation4], 1 }
 0x59e   :  { %4896 = vsyncpa [#allocation4 + $0x1], 1 }
 0x59f   :  { %4897 = vsyncpa [#allocation6], 1 }
 0x5a0   :  { %4898 = vsyncpa [#allocation9], 1 }

</bundles_post_ra>
